<compile_context>
chip_gen: v5e
topology: v5e:2x2
jax: 0.10.0
libtpu: 0.0.40
codegen_flags: <defaults>
</compile_context>

<pallas_src>
import functools
import math

import jax
import jax.numpy as jnp
import numpy as np
from jax import lax
from jax.experimental import pallas as pl
from jax.experimental.pallas import tpu as pltpu

_REF_PRECISION = lax.Precision.HIGHEST       # f32 ground-truth reference


# ----------------------------------------------------------------------------
# Parameter helpers (deterministic, in-script)
# ----------------------------------------------------------------------------
def positional_encoding_table(seq_len: int, d_model: int) -> jnp.ndarray:
    pos = np.arange(seq_len, dtype=np.float32)[:, None]
    i = np.arange(d_model, dtype=np.float32)[None, :]
    angle = pos / np.power(10000.0, (2.0 * np.floor(i / 2.0)) / d_model)
    table = np.where((np.arange(d_model)[None, :] % 2) == 0, np.sin(angle), np.cos(angle))
    return jnp.asarray(table, jnp.float32)


def init_params(key, *, channels, embed_dim, prediction_length, decoder_blocks,
                decoder_ff_expansion):
    e, c, t = embed_dim, channels, prediction_length
    eff = e * decoder_ff_expansion
    keys = iter(jax.random.split(key, 8 + 8 * decoder_blocks))

    def nrm(shape, fan_in):
        return jax.random.normal(next(keys), shape, jnp.float32) / math.sqrt(fan_in)

    params = {
        "fc_w": nrm((c, e), c), "fc_b": nrm((1, e), e),      # nn.Linear(channels, embed_dim)
        "mlp_w": nrm((e, c), e), "mlp_b": nrm((1, c), c),    # nn.Linear(embed_dim, channels)
        "pos_encoding": positional_encoding_table(t, e),
        "blocks": [],
    }
    for _ in range(decoder_blocks):
        params["blocks"].append({
            # stacked [Wq, Wk, Wv, Wo] acting on the embed_dim axis (channel-first conv.)
            "w_self": nrm((4, e, e), e), "b_self": nrm((4, e, 1), e),
            "w_cross": nrm((4, e, e), e), "b_cross": nrm((4, e, 1), e),
            "w_ff1": nrm((e, eff), e), "b_ff1": nrm((1, eff), e),
            "w_ff2": nrm((eff, e), eff), "b_ff2": nrm((1, e), e),
        })
    return params


# ----------------------------------------------------------------------------
# In-kernel math helpers (2-D only, no explicit transposes, bf16 single-pass MXU)
# ----------------------------------------------------------------------------
def _mm(a, b):      # a @ b, f32 accumulation
    return lax.dot_general(a.astype(jnp.bfloat16), b.astype(jnp.bfloat16),
                           (((1,), (0,)), ((), ())),
                           preferred_element_type=jnp.float32)


def _mm_nt(a, b):   # a @ b.T  (no transpose op; MXU consumes either orientation)
    return lax.dot_general(a.astype(jnp.bfloat16), b.astype(jnp.bfloat16),
                           (((1,), (1,)), ((), ())),
                           preferred_element_type=jnp.float32)


def _softmax(x):    # kernel softmax: divide routed to the EUP via approx reciprocal
    m = jnp.max(x, axis=-1, keepdims=True)
    e = jnp.exp(x - m)
    return e * pl.reciprocal(jnp.sum(e, axis=-1, keepdims=True), approx=True)


# ----------------------------------------------------------------------------
# Fused kernel: fc + all decoder blocks + mlp, one batch element per grid step
# ----------------------------------------------------------------------------
def _fused_decoder_kernel(hidden_ref, pe_ref, enck_ref, encv_ref,
                          fcw_ref, fcb_ref,
                          wself_ref, bself_ref, wcross_ref, bcross_ref,
                          wff1_ref, bff1_ref, wff2_ref, bff2_ref,
                          mlpw_ref, mlpb_ref, out_ref, *, num_heads, num_blocks):
    # TODO(synk): attention_mask path not implemented (module is exercised with None).
    t, e = pe_ref.shape
    dh = e // num_heads
    scale = 1.0 / math.sqrt(dh)

    x = _mm(hidden_ref[0], fcw_ref[...]) + fcb_ref[...]      # fc: (T, C) -> (T, E)
    pe = pe_ref[...]                                         # (T, E)
    enc_k = enck_ref[0]                                      # (S, E) row-major
    enc_v = encv_ref[0]                                      # (S, E)
    s = enc_k.shape[0]

    for blk in range(num_blocks):                            # blocks resident in VMEM
        # ---- self-attention: temporal (x+pe) and spatial (x) share w_self --------
        w_s = wself_ref[blk]                                 # (E, 4E) bf16, lane-dense
        b_s = bself_ref[blk]                                 # (1, 4E) f32
        x2 = jnp.concatenate([x + pe, x], axis=0)            # (2T, E) merged rows
        proj = _mm(x2, w_s) + b_s                            # ONE matmul: Q|K|V|(O cols unused)
        qt, kt, vt = proj[:t, 0:e], proj[:t, e:2 * e], proj[:t, 2 * e:3 * e]
        qs, ks = proj[t:, 0:e], proj[t:, e:2 * e]            # spatial path needs Q,K only

        attn_t = attn_s = None
        ctx_parts = []
        for h in range(num_heads):                           # H=4, unrolled, 2-D lane slices
            sl = slice(h * dh, (h + 1) * dh)
            pt = _softmax(_mm_nt(qt[:, sl], kt[:, sl]) * scale)   # (T, T)
            ps = _softmax(_mm_nt(qs[:, sl], ks[:, sl]) * scale)   # (T, T)
            attn_t = pt if attn_t is None else attn_t + pt
            attn_s = ps if attn_s is None else attn_s + ps
            ctx_parts.append(_mm(pt, vt[:, sl]))             # (T, dh)
        ctx = jnp.concatenate(ctx_parts, axis=1)             # (T, E): heads along lanes
        out_t = _mm(ctx, w_s[:, 3 * e:]) + b_s[:, 3 * e:]    # ONE fused output projection
        attn_t = attn_t * (1.0 / num_heads)
        attn_s = attn_s * (1.0 / num_heads)

        # torch: st = (spatial @ temporal^T)^T ; dec = st @ decoder_output_rows
        st = _mm_nt(attn_t, attn_s)                          # (T, T)
        dec = _mm(st, out_t)                                 # (T, E)

        # ---- cross attention against encoder key/value states --------------------
        w_c = wcross_ref[blk]                                # (E, 4E) bf16 (loaded at use)
        b_c = bcross_ref[blk]
        x3 = jnp.concatenate([dec, enc_k, enc_v], axis=0)    # (T+2S, E) stacked rows
        projc = _mm(x3, w_c) + b_c                           # ONE matmul for Q, K and V
        qc = projc[:t, 0:e]
        kc = projc[t:t + s, e:2 * e]
        vc = projc[t + s:, 2 * e:3 * e]
        ctx_parts = []
        for h in range(num_heads):
            sl = slice(h * dh, (h + 1) * dh)
            p = _softmax(_mm_nt(qc[:, sl], kc[:, sl]) * scale)    # (T, S)
            ctx_parts.append(_mm(p, vc[:, sl]))
        ctxc = jnp.concatenate(ctx_parts, axis=1)            # (T, E)
        y = _mm(ctxc, w_c[:, 3 * e:]) + b_c[:, 3 * e:]       # ONE fused output projection

        # ---- feed-forward: Linear -> ReLU -> Linear (dropout = identity) ---------
        h1 = jnp.maximum(_mm(y, wff1_ref[blk]) + bff1_ref[blk], 0.0)   # (T, EFF)
        x = _mm(h1, wff2_ref[blk]) + bff2_ref[blk]                     # (T, E)

    out_ref[0] = (_mm(x, mlpw_ref[...]) + mlpb_ref[...]).astype(out_ref.dtype)


# ----------------------------------------------------------------------------
# Wrapper: single pallas_call for the whole forward
# ----------------------------------------------------------------------------
@functools.partial(jax.jit, static_argnames=("num_heads",))
def autoregressive_decoder_forward(hidden_states, key_value_states, params, *, num_heads):
    b, t, c = hidden_states.shape
    e = params["fc_w"].shape[1]
    nb = len(params["blocks"])
    eff = params["blocks"][0]["w_ff1"].shape[-1]
    s = key_value_states[0].shape[-1]

    # --- wrapper-side layout plumbing (one-time XLA work) -----------------------
    enc_k = jnp.swapaxes(key_value_states[0], 1, 2)          # (B, S, E) row-major
    enc_v = jnp.swapaxes(key_value_states[1], 1, 2)          # (B, S, E)

    def stack(name):
        return jnp.stack([blk[name] for blk in params["blocks"]])

    def fuse_qkvo(w_name, b_name):
        # (NB,4,E,E) channel-first -> row-major lane-dense (NB, E, 4E) = Wq|Wk|Wv|Wo
        w = jnp.swapaxes(stack(w_name), -1, -2)              # (NB, 4, E_in, E_out)
        w = jnp.transpose(w, (0, 2, 1, 3)).reshape(nb, e, 4 * e)
        bq = jnp.swapaxes(stack(b_name), -1, -2)             # (NB, 4, 1, E)
        bq = jnp.transpose(bq, (0, 2, 1, 3)).reshape(nb, 1, 4 * e)
        return w.astype(jnp.bfloat16), bq                    # weights bf16, biases f32

    w_self, b_self = fuse_qkvo("w_self", "b_self")
    w_cross, b_cross = fuse_qkvo("w_cross", "b_cross")
    w_ff1, b_ff1 = stack("w_ff1").astype(jnp.bfloat16), stack("b_ff1")
    w_ff2, b_ff2 = stack("w_ff2").astype(jnp.bfloat16), stack("b_ff2")
    fc_w = params["fc_w"].astype(jnp.bfloat16)
    mlp_w = params["mlp_w"].astype(jnp.bfloat16)
    pos_enc = params["pos_encoding"]

    # Resident-weights VMEM guard (v7x has the smallest VMEM; replicated inputs are
    # double-buffered by the default pipelining, hence the factor 2).
    operands = (pos_enc, fc_w, params["fc_b"], w_self, b_self, w_cross, b_cross,
                w_ff1, b_ff1, w_ff2, b_ff2, mlp_w, params["mlp_b"])
    resident = 2 * sum(int(np.prod(a.shape)) * a.dtype.itemsize for a in operands)
    # TODO(synk): if this ever trips (large embed_dim / many blocks), move the block
    # axis into the grid (activation carried in VMEM scratch) or stream block weights
    # with pltpu.emit_pipeline instead of keeping them all resident.
    assert resident < 24 * (1 << 20), f"resident decoder weights ({resident} B) near VMEM limit"

    def rep(shape):                                          # replicated (grid-invariant) spec
        zeros = (0,) * len(shape)
        return pl.BlockSpec(shape, lambda i, _z=zeros: _z)

    kernel = functools.partial(_fused_decoder_kernel, num_heads=num_heads, num_blocks=nb)
    out = pl.pallas_call(
        kernel,
        grid=(b,),
        in_specs=[
            pl.BlockSpec((1, t, c), lambda i: (i, 0, 0)),    # hidden_states
            rep((t, e)),                                     # positional encoding
            pl.BlockSpec((1, s, e), lambda i: (i, 0, 0)),    # encoder keys (row-major)
            pl.BlockSpec((1, s, e), lambda i: (i, 0, 0)),    # encoder values
            rep((c, e)), rep((1, e)),                        # fc
            rep((nb, e, 4 * e)), rep((nb, 1, 4 * e)),        # fused self-attn W / b
            rep((nb, e, 4 * e)), rep((nb, 1, 4 * e)),        # fused cross-attn W / b
            rep((nb, e, eff)), rep((nb, 1, eff)),            # FF layer 1 (stacked)
            rep((nb, eff, e)), rep((nb, 1, e)),              # FF layer 2 (stacked)
            rep((e, c)), rep((1, c)),                        # mlp
        ],
        out_specs=pl.BlockSpec((1, t, c), lambda i: (i, 0, 0)),
        out_shape=jax.ShapeDtypeStruct((b, t, c), jnp.float32),
        compiler_params=pltpu.CompilerParams(dimension_semantics=("parallel",)),
    )(hidden_states, pos_enc, enc_k, enc_v,
      fc_w, params["fc_b"],
      w_self, b_self, w_cross, b_cross,
      w_ff1, b_ff1, w_ff2, b_ff2,
      mlp_w, params["mlp_b"])
    return out


# ----------------------------------------------------------------------------
# Pure-JAX reference (mirrors the torch forward; f32 HIGHEST ground truth)
# ----------------------------------------------------------------------------
def _softmax_ref(x):
    m = jnp.max(x, axis=-1, keepdims=True)
    e = jnp.exp(x - m)
    return e / jnp.sum(e, axis=-1, keepdims=True)


def _mha_ref(x_q, key_value_states, w, b, num_heads):
    if key_value_states is None:
        xk = xv = x_q
    else:
        xk, xv = key_value_states
    proj = lambda wi, bi, x: jnp.einsum("oe,bel->bol", wi, x, precision=_REF_PRECISION) + bi
    q, k, v = proj(w[0], b[0], x_q), proj(w[1], b[1], xk), proj(w[2], b[2], xv)
    bsz, e, lq = q.shape
    lk = k.shape[-1]
    dh = e // num_heads
    qh = q.reshape(bsz, num_heads, dh, lq)
    kh = k.reshape(bsz, num_heads, dh, lk)
    vh = v.reshape(bsz, num_heads, dh, lk)
    scores = jnp.einsum("bhdq,bhdk->bhqk", qh, kh, precision=_REF_PRECISION) / math.sqrt(dh)
    p = _softmax_ref(scores)
    ctx = jnp.einsum("bhqk,bhdk->bhdq", p, vh, precision=_REF_PRECISION).reshape(bsz, e, lq)
    return proj(w[3], b[3], ctx), p.mean(axis=1)


def decoder_block_ref(hidden, key_value_states, pe, blk, num_heads):
    x_time = jnp.swapaxes(hidden + pe, 1, 2)
    dec_out, temporal_attn = _mha_ref(x_time, None, blk["w_self"], blk["b_self"], num_heads)
    _, spatial_attn = _mha_ref(jnp.swapaxes(hidden, 1, 2), None,
                               blk["w_self"], blk["b_self"], num_heads)
    temporal_attn = jnp.swapaxes(temporal_attn, 1, 2)
    st = jnp.swapaxes(jnp.matmul(spatial_attn, temporal_attn, precision=_REF_PRECISION), 1, 2)
    dec_out = jnp.matmul(st, jnp.swapaxes(dec_out, 1, 2), precision=_REF_PRECISION)
    dec_out, _ = _mha_ref(jnp.swapaxes(dec_out, 1, 2), key_value_states,
                          blk["w_cross"], blk["b_cross"], num_heads)
    dec_out = jnp.swapaxes(dec_out, 1, 2)
    h1 = jnp.maximum(
        jnp.einsum("bte,ef->btf", dec_out, blk["w_ff1"], precision=_REF_PRECISION) + blk["b_ff1"],
        0.0)
    return jnp.einsum("btf,fe->bte", h1, blk["w_ff2"], precision=_REF_PRECISION) + blk["b_ff2"]


def autoregressive_decoder_ref(hidden_states, key_value_states, params, num_heads):
    x = jnp.einsum("btc,ce->bte", hidden_states, params["fc_w"],
                   precision=_REF_PRECISION) + params["fc_b"]
    for blk in params["blocks"]:
        x = decoder_block_ref(x, key_value_states, params["pos_encoding"], blk, num_heads)
    return jnp.einsum("bte,ec->btc", x, params["mlp_w"], precision=_REF_PRECISION) + params["mlp_b"]


# ----------------------------------------------------------------------------
if __name__ == "__main__":
    B, T, E, C = 2, 8, 32, 4            # batch, prediction_length, embed_dim, channels
    HEADS, EXP, BLOCKS, S = 4, 2, 2, 8  # decoder_attn_heads, ff_expansion, decoder_blocks, src len

    root = jax.random.PRNGKey(0)
    kp, kh, kk, kv = jax.random.split(root, 4)
    params = init_params(kp, channels=C, embed_dim=E, prediction_length=T,
                         decoder_blocks=BLOCKS, decoder_ff_expansion=EXP)
    hidden_states = jax.random.normal(kh, (B, T, C), jnp.float32)
    key_value_states = (jax.random.normal(kk, (B, E, S), jnp.float32),
                        jax.random.normal(kv, (B, E, S), jnp.float32))

    out = autoregressive_decoder_forward(hidden_states, key_value_states, params,
                                         num_heads=HEADS)
    out = jax.block_until_ready(out)
    assert out.shape == (B, T, C), out.shape

    ref = jax.block_until_ready(
        autoregressive_decoder_ref(hidden_states, key_value_states, params, HEADS))
    # Kernel uses single-pass bf16 MXU (bf16 weights/activations at the matmul inputs,
    # f32 accumulation); reference is f32 HIGHEST, hence the relaxed tolerance
    # (values are O(1), so this still catches real bugs).
    if not jnp.allclose(out, ref, atol=2e-2, rtol=2e-2):
        max_err = float(jnp.max(jnp.abs(out - ref)))
        raise AssertionError(f"Pallas kernel mismatch vs reference (max abs err {max_err})")
    print("KERNEL_OK")
</pallas_src>

<mosaic_0001>
module attributes {stable_mosaic.version = 11 : i64} {
  func.func @_fused_decoder_kernel(%arg0: i32, %arg1: memref<1x8x4xf32, #tpu.memory_space<vmem>>, %arg2: memref<8x32xf32, #tpu.memory_space<vmem>>, %arg3: memref<1x8x32xf32, #tpu.memory_space<vmem>>, %arg4: memref<1x8x32xf32, #tpu.memory_space<vmem>>, %arg5: memref<4x32xbf16, #tpu.memory_space<vmem>>, %arg6: memref<1x32xf32, #tpu.memory_space<vmem>>, %arg7: memref<2x32x128xbf16, #tpu.memory_space<vmem>>, %arg8: memref<2x1x128xf32, #tpu.memory_space<vmem>>, %arg9: memref<2x32x128xbf16, #tpu.memory_space<vmem>>, %arg10: memref<2x1x128xf32, #tpu.memory_space<vmem>>, %arg11: memref<2x32x64xbf16, #tpu.memory_space<vmem>>, %arg12: memref<2x1x64xf32, #tpu.memory_space<vmem>>, %arg13: memref<2x64x32xbf16, #tpu.memory_space<vmem>>, %arg14: memref<2x1x32xf32, #tpu.memory_space<vmem>>, %arg15: memref<32x4xbf16, #tpu.memory_space<vmem>>, %arg16: memref<1x4xf32, #tpu.memory_space<vmem>>, %arg17: memref<1x8x4xf32, #tpu.memory_space<vmem>>) attributes {dimension_semantics = [#tpu.dimension_semantics<parallel>], iteration_bounds = array<i64: 2>, scalar_prefetch = 0 : i64, scratch_operands = 0 : i64, tpu.core_type = #tpu.core_type<tc>, window_params = [{transform_indices = @transform_0, window_bounds = array<i64: 1, 8, 4>}, {pipeline_mode = #tpu.pipeline_mode<synchronous>, transform_indices = @transform_1, window_bounds = array<i64: 8, 32>}, {transform_indices = @transform_2, window_bounds = array<i64: 1, 8, 32>}, {transform_indices = @transform_3, window_bounds = array<i64: 1, 8, 32>}, {pipeline_mode = #tpu.pipeline_mode<synchronous>, transform_indices = @transform_4, window_bounds = array<i64: 4, 32>}, {pipeline_mode = #tpu.pipeline_mode<synchronous>, transform_indices = @transform_5, window_bounds = array<i64: 1, 32>}, {pipeline_mode = #tpu.pipeline_mode<synchronous>, transform_indices = @transform_6, window_bounds = array<i64: 2, 32, 128>}, {pipeline_mode = #tpu.pipeline_mode<synchronous>, transform_indices = @transform_7, window_bounds = array<i64: 2, 1, 128>}, {pipeline_mode = #tpu.pipeline_mode<synchronous>, transform_indices = @transform_8, window_bounds = array<i64: 2, 32, 128>}, {pipeline_mode = #tpu.pipeline_mode<synchronous>, transform_indices = @transform_9, window_bounds = array<i64: 2, 1, 128>}, {pipeline_mode = #tpu.pipeline_mode<synchronous>, transform_indices = @transform_10, window_bounds = array<i64: 2, 32, 64>}, {pipeline_mode = #tpu.pipeline_mode<synchronous>, transform_indices = @transform_11, window_bounds = array<i64: 2, 1, 64>}, {pipeline_mode = #tpu.pipeline_mode<synchronous>, transform_indices = @transform_12, window_bounds = array<i64: 2, 64, 32>}, {pipeline_mode = #tpu.pipeline_mode<synchronous>, transform_indices = @transform_13, window_bounds = array<i64: 2, 1, 32>}, {pipeline_mode = #tpu.pipeline_mode<synchronous>, transform_indices = @transform_14, window_bounds = array<i64: 32, 4>}, {pipeline_mode = #tpu.pipeline_mode<synchronous>, transform_indices = @transform_15, window_bounds = array<i64: 1, 4>}, {transform_indices = @transform_16, window_bounds = array<i64: 1, 8, 4>}]} {
    %c0 = arith.constant 0 : index
    %c0_0 = arith.constant 0 : index
    %c0_1 = arith.constant 0 : index
    %0 = vector.load %arg1[%c0, %c0_0, %c0_1] : memref<1x8x4xf32, #tpu.memory_space<vmem>>, vector<1x8x4xf32>
    %1 = vector.shape_cast %0 : vector<1x8x4xf32> to vector<8x4xf32>
    %c0_2 = arith.constant 0 : index
    %c0_3 = arith.constant 0 : index
    %2 = vector.load %arg5[%c0_2, %c0_3] : memref<4x32xbf16, #tpu.memory_space<vmem>>, vector<4x32xbf16>
    %3 = arith.truncf %1 : vector<8x4xf32> to vector<8x4xbf16>
    %cst = arith.constant dense<0.000000e+00> : vector<8x32xf32>
    %4 = tpu.matmul %3, %2, %cst {dimension_numbers = #tpu.dot_dimension_numbers<[1], [0], [0], [1], [0, 0, 1, 1], [], []>} : vector<8x4xbf16>, vector<4x32xbf16>, vector<8x32xf32> -> vector<8x32xf32>
    %c0_4 = arith.constant 0 : index
    %c0_5 = arith.constant 0 : index
    %5 = vector.load %arg6[%c0_4, %c0_5] : memref<1x32xf32, #tpu.memory_space<vmem>>, vector<1x32xf32>
    %6 = vector.broadcast %5 : vector<1x32xf32> to vector<8x32xf32>
    %7 = arith.addf %4, %6 : vector<8x32xf32>
    %c0_6 = arith.constant 0 : index
    %c0_7 = arith.constant 0 : index
    %8 = vector.load %arg2[%c0_6, %c0_7] : memref<8x32xf32, #tpu.memory_space<vmem>>, vector<8x32xf32>
    %c0_8 = arith.constant 0 : index
    %c0_9 = arith.constant 0 : index
    %c0_10 = arith.constant 0 : index
    %9 = vector.load %arg3[%c0_8, %c0_9, %c0_10] : memref<1x8x32xf32, #tpu.memory_space<vmem>>, vector<1x8x32xf32>
    %10 = vector.shape_cast %9 : vector<1x8x32xf32> to vector<8x32xf32>
    %c0_11 = arith.constant 0 : index
    %c0_12 = arith.constant 0 : index
    %c0_13 = arith.constant 0 : index
    %11 = vector.load %arg4[%c0_11, %c0_12, %c0_13] : memref<1x8x32xf32, #tpu.memory_space<vmem>>, vector<1x8x32xf32>
    %12 = vector.shape_cast %11 : vector<1x8x32xf32> to vector<8x32xf32>
    %c0_14 = arith.constant 0 : index
    %c0_15 = arith.constant 0 : index
    %c0_16 = arith.constant 0 : index
    %13 = vector.load %arg7[%c0_14, %c0_15, %c0_16] : memref<2x32x128xbf16, #tpu.memory_space<vmem>>, vector<1x32x128xbf16>
    %14 = vector.shape_cast %13 : vector<1x32x128xbf16> to vector<32x128xbf16>
    %c0_17 = arith.constant 0 : index
    %c0_18 = arith.constant 0 : index
    %c0_19 = arith.constant 0 : index
    %15 = vector.load %arg8[%c0_17, %c0_18, %c0_19] : memref<2x1x128xf32, #tpu.memory_space<vmem>>, vector<1x1x128xf32>
    %16 = vector.shape_cast %15 : vector<1x1x128xf32> to vector<1x128xf32>
    %17 = arith.addf %7, %8 : vector<8x32xf32>
    %18 = tpu.concatenate %17, %7 in 0 : vector<8x32xf32>, vector<8x32xf32> -> vector<16x32xf32>
    %19 = arith.truncf %18 : vector<16x32xf32> to vector<16x32xbf16>
    %cst_20 = arith.constant dense<0.000000e+00> : vector<16x128xf32>
    %20 = tpu.matmul %19, %14, %cst_20 {dimension_numbers = #tpu.dot_dimension_numbers<[1], [0], [0], [1], [0, 0, 1, 1], [], []>} : vector<16x32xbf16>, vector<32x128xbf16>, vector<16x128xf32> -> vector<16x128xf32>
    %21 = vector.broadcast %16 : vector<1x128xf32> to vector<16x128xf32>
    %22 = arith.addf %20, %21 : vector<16x128xf32>
    %23 = vector.extract_strided_slice %22 {offsets = [0, 0], sizes = [8, 32], strides = [1, 1]} : vector<16x128xf32> to vector<8x32xf32>
    %24 = vector.extract_strided_slice %22 {offsets = [0, 32], sizes = [8, 32], strides = [1, 1]} : vector<16x128xf32> to vector<8x32xf32>
    %25 = vector.extract_strided_slice %22 {offsets = [0, 64], sizes = [8, 32], strides = [1, 1]} : vector<16x128xf32> to vector<8x32xf32>
    %26 = vector.extract_strided_slice %22 {offsets = [8, 0], sizes = [8, 32], strides = [1, 1]} : vector<16x128xf32> to vector<8x32xf32>
    %27 = vector.extract_strided_slice %22 {offsets = [8, 32], sizes = [8, 32], strides = [1, 1]} : vector<16x128xf32> to vector<8x32xf32>
    %28 = vector.extract_strided_slice %23 {offsets = [0, 0], sizes = [8, 8], strides = [1, 1]} : vector<8x32xf32> to vector<8x8xf32>
    %29 = vector.extract_strided_slice %24 {offsets = [0, 0], sizes = [8, 8], strides = [1, 1]} : vector<8x32xf32> to vector<8x8xf32>
    %30 = arith.truncf %28 : vector<8x8xf32> to vector<8x8xbf16>
    %31 = arith.truncf %29 : vector<8x8xf32> to vector<8x8xbf16>
    %cst_21 = arith.constant dense<0.000000e+00> : vector<8x8xf32>
    %32 = tpu.matmul %30, %31, %cst_21 {dimension_numbers = #tpu.dot_dimension_numbers<[1], [1], [0], [0], [0, 0, 1, 0], [], []>} : vector<8x8xbf16>, vector<8x8xbf16>, vector<8x8xf32> -> vector<8x8xf32>
    %cst_22 = arith.constant 0.353553385 : f32
    %33 = vector.broadcast %cst_22 : f32 to vector<8x8xf32>
    %34 = arith.mulf %32, %33 : vector<8x8xf32>
    %cst_23 = arith.constant dense<0xFF800000> : vector<8xf32>
    %35 = vector.multi_reduction <maximumf>, %34, %cst_23 [1] : vector<8x8xf32> to vector<8xf32>
    %36 = vector.shape_cast %35 : vector<8xf32> to vector<8x1xf32>
    %37 = vector.broadcast %36 : vector<8x1xf32> to vector<8x8xf32>
    %38 = arith.subf %34, %37 : vector<8x8xf32>
    %39 = math.exp %38 : vector<8x8xf32>
    %cst_24 = arith.constant dense<0.000000e+00> : vector<8xf32>
    %40 = vector.multi_reduction <add>, %39, %cst_24 [1] : vector<8x8xf32> to vector<8xf32>
    %41 = vector.shape_cast %40 : vector<8xf32> to vector<8x1xf32>
    %42 = tpu.reciprocal %41 {approx = true} : vector<8x1xf32> -> vector<8x1xf32>
    %43 = vector.broadcast %42 : vector<8x1xf32> to vector<8x8xf32>
    %44 = arith.mulf %39, %43 : vector<8x8xf32>
    %45 = vector.extract_strided_slice %26 {offsets = [0, 0], sizes = [8, 8], strides = [1, 1]} : vector<8x32xf32> to vector<8x8xf32>
    %46 = vector.extract_strided_slice %27 {offsets = [0, 0], sizes = [8, 8], strides = [1, 1]} : vector<8x32xf32> to vector<8x8xf32>
    %47 = arith.truncf %45 : vector<8x8xf32> to vector<8x8xbf16>
    %48 = arith.truncf %46 : vector<8x8xf32> to vector<8x8xbf16>
    %cst_25 = arith.constant dense<0.000000e+00> : vector<8x8xf32>
    %49 = tpu.matmul %47, %48, %cst_25 {dimension_numbers = #tpu.dot_dimension_numbers<[1], [1], [0], [0], [0, 0, 1, 0], [], []>} : vector<8x8xbf16>, vector<8x8xbf16>, vector<8x8xf32> -> vector<8x8xf32>
    %cst_26 = arith.constant 0.353553385 : f32
    %50 = vector.broadcast %cst_26 : f32 to vector<8x8xf32>
    %51 = arith.mulf %49, %50 : vector<8x8xf32>
    %cst_27 = arith.constant dense<0xFF800000> : vector<8xf32>
    %52 = vector.multi_reduction <maximumf>, %51, %cst_27 [1] : vector<8x8xf32> to vector<8xf32>
    %53 = vector.shape_cast %52 : vector<8xf32> to vector<8x1xf32>
    %54 = vector.broadcast %53 : vector<8x1xf32> to vector<8x8xf32>
    %55 = arith.subf %51, %54 : vector<8x8xf32>
    %56 = math.exp %55 : vector<8x8xf32>
    %cst_28 = arith.constant dense<0.000000e+00> : vector<8xf32>
    %57 = vector.multi_reduction <add>, %56, %cst_28 [1] : vector<8x8xf32> to vector<8xf32>
    %58 = vector.shape_cast %57 : vector<8xf32> to vector<8x1xf32>
    %59 = tpu.reciprocal %58 {approx = true} : vector<8x1xf32> -> vector<8x1xf32>
    %60 = vector.broadcast %59 : vector<8x1xf32> to vector<8x8xf32>
    %61 = arith.mulf %56, %60 : vector<8x8xf32>
    %62 = vector.extract_strided_slice %25 {offsets = [0, 0], sizes = [8, 8], strides = [1, 1]} : vector<8x32xf32> to vector<8x8xf32>
    %63 = arith.truncf %44 : vector<8x8xf32> to vector<8x8xbf16>
    %64 = arith.truncf %62 : vector<8x8xf32> to vector<8x8xbf16>
    %cst_29 = arith.constant dense<0.000000e+00> : vector<8x8xf32>
    %65 = tpu.matmul %63, %64, %cst_29 {dimension_numbers = #tpu.dot_dimension_numbers<[1], [0], [0], [1], [0, 0, 1, 1], [], []>} : vector<8x8xbf16>, vector<8x8xbf16>, vector<8x8xf32> -> vector<8x8xf32>
    %66 = vector.extract_strided_slice %23 {offsets = [0, 8], sizes = [8, 8], strides = [1, 1]} : vector<8x32xf32> to vector<8x8xf32>
    %67 = vector.extract_strided_slice %24 {offsets = [0, 8], sizes = [8, 8], strides = [1, 1]} : vector<8x32xf32> to vector<8x8xf32>
    %68 = arith.truncf %66 : vector<8x8xf32> to vector<8x8xbf16>
    %69 = arith.truncf %67 : vector<8x8xf32> to vector<8x8xbf16>
    %cst_30 = arith.constant dense<0.000000e+00> : vector<8x8xf32>
    %70 = tpu.matmul %68, %69, %cst_30 {dimension_numbers = #tpu.dot_dimension_numbers<[1], [1], [0], [0], [0, 0, 1, 0], [], []>} : vector<8x8xbf16>, vector<8x8xbf16>, vector<8x8xf32> -> vector<8x8xf32>
    %cst_31 = arith.constant 0.353553385 : f32
    %71 = vector.broadcast %cst_31 : f32 to vector<8x8xf32>
    %72 = arith.mulf %70, %71 : vector<8x8xf32>
    %cst_32 = arith.constant dense<0xFF800000> : vector<8xf32>
    %73 = vector.multi_reduction <maximumf>, %72, %cst_32 [1] : vector<8x8xf32> to vector<8xf32>
    %74 = vector.shape_cast %73 : vector<8xf32> to vector<8x1xf32>
    %75 = vector.broadcast %74 : vector<8x1xf32> to vector<8x8xf32>
    %76 = arith.subf %72, %75 : vector<8x8xf32>
    %77 = math.exp %76 : vector<8x8xf32>
    %cst_33 = arith.constant dense<0.000000e+00> : vector<8xf32>
    %78 = vector.multi_reduction <add>, %77, %cst_33 [1] : vector<8x8xf32> to vector<8xf32>
    %79 = vector.shape_cast %78 : vector<8xf32> to vector<8x1xf32>
    %80 = tpu.reciprocal %79 {approx = true} : vector<8x1xf32> -> vector<8x1xf32>
    %81 = vector.broadcast %80 : vector<8x1xf32> to vector<8x8xf32>
    %82 = arith.mulf %77, %81 : vector<8x8xf32>
    %83 = vector.extract_strided_slice %26 {offsets = [0, 8], sizes = [8, 8], strides = [1, 1]} : vector<8x32xf32> to vector<8x8xf32>
    %84 = vector.extract_strided_slice %27 {offsets = [0, 8], sizes = [8, 8], strides = [1, 1]} : vector<8x32xf32> to vector<8x8xf32>
    %85 = arith.truncf %83 : vector<8x8xf32> to vector<8x8xbf16>
    %86 = arith.truncf %84 : vector<8x8xf32> to vector<8x8xbf16>
    %cst_34 = arith.constant dense<0.000000e+00> : vector<8x8xf32>
    %87 = tpu.matmul %85, %86, %cst_34 {dimension_numbers = #tpu.dot_dimension_numbers<[1], [1], [0], [0], [0, 0, 1, 0], [], []>} : vector<8x8xbf16>, vector<8x8xbf16>, vector<8x8xf32> -> vector<8x8xf32>
    %cst_35 = arith.constant 0.353553385 : f32
    %88 = vector.broadcast %cst_35 : f32 to vector<8x8xf32>
    %89 = arith.mulf %87, %88 : vector<8x8xf32>
    %cst_36 = arith.constant dense<0xFF800000> : vector<8xf32>
    %90 = vector.multi_reduction <maximumf>, %89, %cst_36 [1] : vector<8x8xf32> to vector<8xf32>
    %91 = vector.shape_cast %90 : vector<8xf32> to vector<8x1xf32>
    %92 = vector.broadcast %91 : vector<8x1xf32> to vector<8x8xf32>
    %93 = arith.subf %89, %92 : vector<8x8xf32>
    %94 = math.exp %93 : vector<8x8xf32>
    %cst_37 = arith.constant dense<0.000000e+00> : vector<8xf32>
    %95 = vector.multi_reduction <add>, %94, %cst_37 [1] : vector<8x8xf32> to vector<8xf32>
    %96 = vector.shape_cast %95 : vector<8xf32> to vector<8x1xf32>
    %97 = tpu.reciprocal %96 {approx = true} : vector<8x1xf32> -> vector<8x1xf32>
    %98 = vector.broadcast %97 : vector<8x1xf32> to vector<8x8xf32>
    %99 = arith.mulf %94, %98 : vector<8x8xf32>
    %100 = arith.addf %44, %82 : vector<8x8xf32>
    %101 = arith.addf %61, %99 : vector<8x8xf32>
    %102 = vector.extract_strided_slice %25 {offsets = [0, 8], sizes = [8, 8], strides = [1, 1]} : vector<8x32xf32> to vector<8x8xf32>
    %103 = arith.truncf %82 : vector<8x8xf32> to vector<8x8xbf16>
    %104 = arith.truncf %102 : vector<8x8xf32> to vector<8x8xbf16>
    %cst_38 = arith.constant dense<0.000000e+00> : vector<8x8xf32>
    %105 = tpu.matmul %103, %104, %cst_38 {dimension_numbers = #tpu.dot_dimension_numbers<[1], [0], [0], [1], [0, 0, 1, 1], [], []>} : vector<8x8xbf16>, vector<8x8xbf16>, vector<8x8xf32> -> vector<8x8xf32>
    %106 = vector.extract_strided_slice %23 {offsets = [0, 16], sizes = [8, 8], strides = [1, 1]} : vector<8x32xf32> to vector<8x8xf32>
    %107 = vector.extract_strided_slice %24 {offsets = [0, 16], sizes = [8, 8], strides = [1, 1]} : vector<8x32xf32> to vector<8x8xf32>
    %108 = arith.truncf %106 : vector<8x8xf32> to vector<8x8xbf16>
    %109 = arith.truncf %107 : vector<8x8xf32> to vector<8x8xbf16>
    %cst_39 = arith.constant dense<0.000000e+00> : vector<8x8xf32>
    %110 = tpu.matmul %108, %109, %cst_39 {dimension_numbers = #tpu.dot_dimension_numbers<[1], [1], [0], [0], [0, 0, 1, 0], [], []>} : vector<8x8xbf16>, vector<8x8xbf16>, vector<8x8xf32> -> vector<8x8xf32>
    %cst_40 = arith.constant 0.353553385 : f32
    %111 = vector.broadcast %cst_40 : f32 to vector<8x8xf32>
    %112 = arith.mulf %110, %111 : vector<8x8xf32>
    %cst_41 = arith.constant dense<0xFF800000> : vector<8xf32>
    %113 = vector.multi_reduction <maximumf>, %112, %cst_41 [1] : vector<8x8xf32> to vector<8xf32>
    %114 = vector.shape_cast %113 : vector<8xf32> to vector<8x1xf32>
    %115 = vector.broadcast %114 : vector<8x1xf32> to vector<8x8xf32>
    %116 = arith.subf %112, %115 : vector<8x8xf32>
    %117 = math.exp %116 : vector<8x8xf32>
    %cst_42 = arith.constant dense<0.000000e+00> : vector<8xf32>
    %118 = vector.multi_reduction <add>, %117, %cst_42 [1] : vector<8x8xf32> to vector<8xf32>
    %119 = vector.shape_cast %118 : vector<8xf32> to vector<8x1xf32>
    %120 = tpu.reciprocal %119 {approx = true} : vector<8x1xf32> -> vector<8x1xf32>
    %121 = vector.broadcast %120 : vector<8x1xf32> to vector<8x8xf32>
    %122 = arith.mulf %117, %121 : vector<8x8xf32>
    %123 = vector.extract_strided_slice %26 {offsets = [0, 16], sizes = [8, 8], strides = [1, 1]} : vector<8x32xf32> to vector<8x8xf32>
    %124 = vector.extract_strided_slice %27 {offsets = [0, 16], sizes = [8, 8], strides = [1, 1]} : vector<8x32xf32> to vector<8x8xf32>
    %125 = arith.truncf %123 : vector<8x8xf32> to vector<8x8xbf16>
    %126 = arith.truncf %124 : vector<8x8xf32> to vector<8x8xbf16>
    %cst_43 = arith.constant dense<0.000000e+00> : vector<8x8xf32>
    %127 = tpu.matmul %125, %126, %cst_43 {dimension_numbers = #tpu.dot_dimension_numbers<[1], [1], [0], [0], [0, 0, 1, 0], [], []>} : vector<8x8xbf16>, vector<8x8xbf16>, vector<8x8xf32> -> vector<8x8xf32>
    %cst_44 = arith.constant 0.353553385 : f32
    %128 = vector.broadcast %cst_44 : f32 to vector<8x8xf32>
    %129 = arith.mulf %127, %128 : vector<8x8xf32>
    %cst_45 = arith.constant dense<0xFF800000> : vector<8xf32>
    %130 = vector.multi_reduction <maximumf>, %129, %cst_45 [1] : vector<8x8xf32> to vector<8xf32>
    %131 = vector.shape_cast %130 : vector<8xf32> to vector<8x1xf32>
    %132 = vector.broadcast %131 : vector<8x1xf32> to vector<8x8xf32>
    %133 = arith.subf %129, %132 : vector<8x8xf32>
    %134 = math.exp %133 : vector<8x8xf32>
    %cst_46 = arith.constant dense<0.000000e+00> : vector<8xf32>
    %135 = vector.multi_reduction <add>, %134, %cst_46 [1] : vector<8x8xf32> to vector<8xf32>
    %136 = vector.shape_cast %135 : vector<8xf32> to vector<8x1xf32>
    %137 = tpu.reciprocal %136 {approx = true} : vector<8x1xf32> -> vector<8x1xf32>
    %138 = vector.broadcast %137 : vector<8x1xf32> to vector<8x8xf32>
    %139 = arith.mulf %134, %138 : vector<8x8xf32>
    %140 = arith.addf %100, %122 : vector<8x8xf32>
    %141 = arith.addf %101, %139 : vector<8x8xf32>
    %142 = vector.extract_strided_slice %25 {offsets = [0, 16], sizes = [8, 8], strides = [1, 1]} : vector<8x32xf32> to vector<8x8xf32>
    %143 = arith.truncf %122 : vector<8x8xf32> to vector<8x8xbf16>
    %144 = arith.truncf %142 : vector<8x8xf32> to vector<8x8xbf16>
    %cst_47 = arith.constant dense<0.000000e+00> : vector<8x8xf32>
    %145 = tpu.matmul %143, %144, %cst_47 {dimension_numbers = #tpu.dot_dimension_numbers<[1], [0], [0], [1], [0, 0, 1, 1], [], []>} : vector<8x8xbf16>, vector<8x8xbf16>, vector<8x8xf32> -> vector<8x8xf32>
    %146 = vector.extract_strided_slice %23 {offsets = [0, 24], sizes = [8, 8], strides = [1, 1]} : vector<8x32xf32> to vector<8x8xf32>
    %147 = vector.extract_strided_slice %24 {offsets = [0, 24], sizes = [8, 8], strides = [1, 1]} : vector<8x32xf32> to vector<8x8xf32>
    %148 = arith.truncf %146 : vector<8x8xf32> to vector<8x8xbf16>
    %149 = arith.truncf %147 : vector<8x8xf32> to vector<8x8xbf16>
    %cst_48 = arith.constant dense<0.000000e+00> : vector<8x8xf32>
    %150 = tpu.matmul %148, %149, %cst_48 {dimension_numbers = #tpu.dot_dimension_numbers<[1], [1], [0], [0], [0, 0, 1, 0], [], []>} : vector<8x8xbf16>, vector<8x8xbf16>, vector<8x8xf32> -> vector<8x8xf32>
    %cst_49 = arith.constant 0.353553385 : f32
    %151 = vector.broadcast %cst_49 : f32 to vector<8x8xf32>
    %152 = arith.mulf %150, %151 : vector<8x8xf32>
    %cst_50 = arith.constant dense<0xFF800000> : vector<8xf32>
    %153 = vector.multi_reduction <maximumf>, %152, %cst_50 [1] : vector<8x8xf32> to vector<8xf32>
    %154 = vector.shape_cast %153 : vector<8xf32> to vector<8x1xf32>
    %155 = vector.broadcast %154 : vector<8x1xf32> to vector<8x8xf32>
    %156 = arith.subf %152, %155 : vector<8x8xf32>
    %157 = math.exp %156 : vector<8x8xf32>
    %cst_51 = arith.constant dense<0.000000e+00> : vector<8xf32>
    %158 = vector.multi_reduction <add>, %157, %cst_51 [1] : vector<8x8xf32> to vector<8xf32>
    %159 = vector.shape_cast %158 : vector<8xf32> to vector<8x1xf32>
    %160 = tpu.reciprocal %159 {approx = true} : vector<8x1xf32> -> vector<8x1xf32>
    %161 = vector.broadcast %160 : vector<8x1xf32> to vector<8x8xf32>
    %162 = arith.mulf %157, %161 : vector<8x8xf32>
    %163 = vector.extract_strided_slice %26 {offsets = [0, 24], sizes = [8, 8], strides = [1, 1]} : vector<8x32xf32> to vector<8x8xf32>
    %164 = vector.extract_strided_slice %27 {offsets = [0, 24], sizes = [8, 8], strides = [1, 1]} : vector<8x32xf32> to vector<8x8xf32>
    %165 = arith.truncf %163 : vector<8x8xf32> to vector<8x8xbf16>
    %166 = arith.truncf %164 : vector<8x8xf32> to vector<8x8xbf16>
    %cst_52 = arith.constant dense<0.000000e+00> : vector<8x8xf32>
    %167 = tpu.matmul %165, %166, %cst_52 {dimension_numbers = #tpu.dot_dimension_numbers<[1], [1], [0], [0], [0, 0, 1, 0], [], []>} : vector<8x8xbf16>, vector<8x8xbf16>, vector<8x8xf32> -> vector<8x8xf32>
    %cst_53 = arith.constant 0.353553385 : f32
    %168 = vector.broadcast %cst_53 : f32 to vector<8x8xf32>
    %169 = arith.mulf %167, %168 : vector<8x8xf32>
    %cst_54 = arith.constant dense<0xFF800000> : vector<8xf32>
    %170 = vector.multi_reduction <maximumf>, %169, %cst_54 [1] : vector<8x8xf32> to vector<8xf32>
    %171 = vector.shape_cast %170 : vector<8xf32> to vector<8x1xf32>
    %172 = vector.broadcast %171 : vector<8x1xf32> to vector<8x8xf32>
    %173 = arith.subf %169, %172 : vector<8x8xf32>
    %174 = math.exp %173 : vector<8x8xf32>
    %cst_55 = arith.constant dense<0.000000e+00> : vector<8xf32>
    %175 = vector.multi_reduction <add>, %174, %cst_55 [1] : vector<8x8xf32> to vector<8xf32>
    %176 = vector.shape_cast %175 : vector<8xf32> to vector<8x1xf32>
    %177 = tpu.reciprocal %176 {approx = true} : vector<8x1xf32> -> vector<8x1xf32>
    %178 = vector.broadcast %177 : vector<8x1xf32> to vector<8x8xf32>
    %179 = arith.mulf %174, %178 : vector<8x8xf32>
    %180 = arith.addf %140, %162 : vector<8x8xf32>
    %181 = arith.addf %141, %179 : vector<8x8xf32>
    %182 = vector.extract_strided_slice %25 {offsets = [0, 24], sizes = [8, 8], strides = [1, 1]} : vector<8x32xf32> to vector<8x8xf32>
    %183 = arith.truncf %162 : vector<8x8xf32> to vector<8x8xbf16>
    %184 = arith.truncf %182 : vector<8x8xf32> to vector<8x8xbf16>
    %cst_56 = arith.constant dense<0.000000e+00> : vector<8x8xf32>
    %185 = tpu.matmul %183, %184, %cst_56 {dimension_numbers = #tpu.dot_dimension_numbers<[1], [0], [0], [1], [0, 0, 1, 1], [], []>} : vector<8x8xbf16>, vector<8x8xbf16>, vector<8x8xf32> -> vector<8x8xf32>
    %186 = tpu.concatenate %65, %105, %145, %185 in 1 : vector<8x8xf32>, vector<8x8xf32>, vector<8x8xf32>, vector<8x8xf32> -> vector<8x32xf32>
    %187 = vector.extract_strided_slice %14 {offsets = [0, 96], sizes = [32, 32], strides = [1, 1]} : vector<32x128xbf16> to vector<32x32xbf16>
    %188 = arith.truncf %186 : vector<8x32xf32> to vector<8x32xbf16>
    %cst_57 = arith.constant dense<0.000000e+00> : vector<8x32xf32>
    %189 = tpu.matmul %188, %187, %cst_57 {dimension_numbers = #tpu.dot_dimension_numbers<[1], [0], [0], [1], [0, 0, 1, 1], [], []>} : vector<8x32xbf16>, vector<32x32xbf16>, vector<8x32xf32> -> vector<8x32xf32>
    %190 = vector.extract_strided_slice %16 {offsets = [0, 96], sizes = [1, 32], strides = [1, 1]} : vector<1x128xf32> to vector<1x32xf32>
    %191 = vector.broadcast %190 : vector<1x32xf32> to vector<8x32xf32>
    %192 = arith.addf %189, %191 : vector<8x32xf32>
    %cst_58 = arith.constant 2.500000e-01 : f32
    %193 = vector.broadcast %cst_58 : f32 to vector<8x8xf32>
    %194 = arith.mulf %180, %193 : vector<8x8xf32>
    %cst_59 = arith.constant 2.500000e-01 : f32
    %195 = vector.broadcast %cst_59 : f32 to vector<8x8xf32>
    %196 = arith.mulf %181, %195 : vector<8x8xf32>
    %197 = arith.truncf %194 : vector<8x8xf32> to vector<8x8xbf16>
    %198 = arith.truncf %196 : vector<8x8xf32> to vector<8x8xbf16>
    %cst_60 = arith.constant dense<0.000000e+00> : vector<8x8xf32>
    %199 = tpu.matmul %197, %198, %cst_60 {dimension_numbers = #tpu.dot_dimension_numbers<[1], [1], [0], [0], [0, 0, 1, 0], [], []>} : vector<8x8xbf16>, vector<8x8xbf16>, vector<8x8xf32> -> vector<8x8xf32>
    %200 = arith.truncf %199 : vector<8x8xf32> to vector<8x8xbf16>
    %201 = arith.truncf %192 : vector<8x32xf32> to vector<8x32xbf16>
    %cst_61 = arith.constant dense<0.000000e+00> : vector<8x32xf32>
    %202 = tpu.matmul %200, %201, %cst_61 {dimension_numbers = #tpu.dot_dimension_numbers<[1], [0], [0], [1], [0, 0, 1, 1], [], []>} : vector<8x8xbf16>, vector<8x32xbf16>, vector<8x32xf32> -> vector<8x32xf32>
    %c0_62 = arith.constant 0 : index
    %c0_63 = arith.constant 0 : index
    %c0_64 = arith.constant 0 : index
    %203 = vector.load %arg9[%c0_62, %c0_63, %c0_64] : memref<2x32x128xbf16, #tpu.memory_space<vmem>>, vector<1x32x128xbf16>
    %204 = vector.shape_cast %203 : vector<1x32x128xbf16> to vector<32x128xbf16>
    %c0_65 = arith.constant 0 : index
    %c0_66 = arith.constant 0 : index
    %c0_67 = arith.constant 0 : index
    %205 = vector.load %arg10[%c0_65, %c0_66, %c0_67] : memref<2x1x128xf32, #tpu.memory_space<vmem>>, vector<1x1x128xf32>
    %206 = vector.shape_cast %205 : vector<1x1x128xf32> to vector<1x128xf32>
    %207 = tpu.concatenate %202, %10, %12 in 0 : vector<8x32xf32>, vector<8x32xf32>, vector<8x32xf32> -> vector<24x32xf32>
    %208 = arith.truncf %207 : vector<24x32xf32> to vector<24x32xbf16>
    %cst_68 = arith.constant dense<0.000000e+00> : vector<24x128xf32>
    %209 = tpu.matmul %208, %204, %cst_68 {dimension_numbers = #tpu.dot_dimension_numbers<[1], [0], [0], [1], [0, 0, 1, 1], [], []>} : vector<24x32xbf16>, vector<32x128xbf16>, vector<24x128xf32> -> vector<24x128xf32>
    %210 = vector.broadcast %206 : vector<1x128xf32> to vector<24x128xf32>
    %211 = arith.addf %209, %210 : vector<24x128xf32>
    %212 = vector.extract_strided_slice %211 {offsets = [0, 0], sizes = [8, 32], strides = [1, 1]} : vector<24x128xf32> to vector<8x32xf32>
    %213 = vector.extract_strided_slice %211 {offsets = [8, 32], sizes = [8, 32], strides = [1, 1]} : vector<24x128xf32> to vector<8x32xf32>
    %214 = vector.extract_strided_slice %211 {offsets = [16, 64], sizes = [8, 32], strides = [1, 1]} : vector<24x128xf32> to vector<8x32xf32>
    %215 = vector.extract_strided_slice %212 {offsets = [0, 0], sizes = [8, 8], strides = [1, 1]} : vector<8x32xf32> to vector<8x8xf32>
    %216 = vector.extract_strided_slice %213 {offsets = [0, 0], sizes = [8, 8], strides = [1, 1]} : vector<8x32xf32> to vector<8x8xf32>
    %217 = arith.truncf %215 : vector<8x8xf32> to vector<8x8xbf16>
    %218 = arith.truncf %216 : vector<8x8xf32> to vector<8x8xbf16>
    %cst_69 = arith.constant dense<0.000000e+00> : vector<8x8xf32>
    %219 = tpu.matmul %217, %218, %cst_69 {dimension_numbers = #tpu.dot_dimension_numbers<[1], [1], [0], [0], [0, 0, 1, 0], [], []>} : vector<8x8xbf16>, vector<8x8xbf16>, vector<8x8xf32> -> vector<8x8xf32>
    %cst_70 = arith.constant 0.353553385 : f32
    %220 = vector.broadcast %cst_70 : f32 to vector<8x8xf32>
    %221 = arith.mulf %219, %220 : vector<8x8xf32>
    %cst_71 = arith.constant dense<0xFF800000> : vector<8xf32>
    %222 = vector.multi_reduction <maximumf>, %221, %cst_71 [1] : vector<8x8xf32> to vector<8xf32>
    %223 = vector.shape_cast %222 : vector<8xf32> to vector<8x1xf32>
    %224 = vector.broadcast %223 : vector<8x1xf32> to vector<8x8xf32>
    %225 = arith.subf %221, %224 : vector<8x8xf32>
    %226 = math.exp %225 : vector<8x8xf32>
    %cst_72 = arith.constant dense<0.000000e+00> : vector<8xf32>
    %227 = vector.multi_reduction <add>, %226, %cst_72 [1] : vector<8x8xf32> to vector<8xf32>
    %228 = vector.shape_cast %227 : vector<8xf32> to vector<8x1xf32>
    %229 = tpu.reciprocal %228 {approx = true} : vector<8x1xf32> -> vector<8x1xf32>
    %230 = vector.broadcast %229 : vector<8x1xf32> to vector<8x8xf32>
    %231 = arith.mulf %226, %230 : vector<8x8xf32>
    %232 = vector.extract_strided_slice %214 {offsets = [0, 0], sizes = [8, 8], strides = [1, 1]} : vector<8x32xf32> to vector<8x8xf32>
    %233 = arith.truncf %231 : vector<8x8xf32> to vector<8x8xbf16>
    %234 = arith.truncf %232 : vector<8x8xf32> to vector<8x8xbf16>
    %cst_73 = arith.constant dense<0.000000e+00> : vector<8x8xf32>
    %235 = tpu.matmul %233, %234, %cst_73 {dimension_numbers = #tpu.dot_dimension_numbers<[1], [0], [0], [1], [0, 0, 1, 1], [], []>} : vector<8x8xbf16>, vector<8x8xbf16>, vector<8x8xf32> -> vector<8x8xf32>
    %236 = vector.extract_strided_slice %212 {offsets = [0, 8], sizes = [8, 8], strides = [1, 1]} : vector<8x32xf32> to vector<8x8xf32>
    %237 = vector.extract_strided_slice %213 {offsets = [0, 8], sizes = [8, 8], strides = [1, 1]} : vector<8x32xf32> to vector<8x8xf32>
    %238 = arith.truncf %236 : vector<8x8xf32> to vector<8x8xbf16>
    %239 = arith.truncf %237 : vector<8x8xf32> to vector<8x8xbf16>
    %cst_74 = arith.constant dense<0.000000e+00> : vector<8x8xf32>
    %240 = tpu.matmul %238, %239, %cst_74 {dimension_numbers = #tpu.dot_dimension_numbers<[1], [1], [0], [0], [0, 0, 1, 0], [], []>} : vector<8x8xbf16>, vector<8x8xbf16>, vector<8x8xf32> -> vector<8x8xf32>
    %cst_75 = arith.constant 0.353553385 : f32
    %241 = vector.broadcast %cst_75 : f32 to vector<8x8xf32>
    %242 = arith.mulf %240, %241 : vector<8x8xf32>
    %cst_76 = arith.constant dense<0xFF800000> : vector<8xf32>
    %243 = vector.multi_reduction <maximumf>, %242, %cst_76 [1] : vector<8x8xf32> to vector<8xf32>
    %244 = vector.shape_cast %243 : vector<8xf32> to vector<8x1xf32>
    %245 = vector.broadcast %244 : vector<8x1xf32> to vector<8x8xf32>
    %246 = arith.subf %242, %245 : vector<8x8xf32>
    %247 = math.exp %246 : vector<8x8xf32>
    %cst_77 = arith.constant dense<0.000000e+00> : vector<8xf32>
    %248 = vector.multi_reduction <add>, %247, %cst_77 [1] : vector<8x8xf32> to vector<8xf32>
    %249 = vector.shape_cast %248 : vector<8xf32> to vector<8x1xf32>
    %250 = tpu.reciprocal %249 {approx = true} : vector<8x1xf32> -> vector<8x1xf32>
    %251 = vector.broadcast %250 : vector<8x1xf32> to vector<8x8xf32>
    %252 = arith.mulf %247, %251 : vector<8x8xf32>
    %253 = vector.extract_strided_slice %214 {offsets = [0, 8], sizes = [8, 8], strides = [1, 1]} : vector<8x32xf32> to vector<8x8xf32>
    %254 = arith.truncf %252 : vector<8x8xf32> to vector<8x8xbf16>
    %255 = arith.truncf %253 : vector<8x8xf32> to vector<8x8xbf16>
    %cst_78 = arith.constant dense<0.000000e+00> : vector<8x8xf32>
    %256 = tpu.matmul %254, %255, %cst_78 {dimension_numbers = #tpu.dot_dimension_numbers<[1], [0], [0], [1], [0, 0, 1, 1], [], []>} : vector<8x8xbf16>, vector<8x8xbf16>, vector<8x8xf32> -> vector<8x8xf32>
    %257 = vector.extract_strided_slice %212 {offsets = [0, 16], sizes = [8, 8], strides = [1, 1]} : vector<8x32xf32> to vector<8x8xf32>
    %258 = vector.extract_strided_slice %213 {offsets = [0, 16], sizes = [8, 8], strides = [1, 1]} : vector<8x32xf32> to vector<8x8xf32>
    %259 = arith.truncf %257 : vector<8x8xf32> to vector<8x8xbf16>
    %260 = arith.truncf %258 : vector<8x8xf32> to vector<8x8xbf16>
    %cst_79 = arith.constant dense<0.000000e+00> : vector<8x8xf32>
    %261 = tpu.matmul %259, %260, %cst_79 {dimension_numbers = #tpu.dot_dimension_numbers<[1], [1], [0], [0], [0, 0, 1, 0], [], []>} : vector<8x8xbf16>, vector<8x8xbf16>, vector<8x8xf32> -> vector<8x8xf32>
    %cst_80 = arith.constant 0.353553385 : f32
    %262 = vector.broadcast %cst_80 : f32 to vector<8x8xf32>
    %263 = arith.mulf %261, %262 : vector<8x8xf32>
    %cst_81 = arith.constant dense<0xFF800000> : vector<8xf32>
    %264 = vector.multi_reduction <maximumf>, %263, %cst_81 [1] : vector<8x8xf32> to vector<8xf32>
    %265 = vector.shape_cast %264 : vector<8xf32> to vector<8x1xf32>
    %266 = vector.broadcast %265 : vector<8x1xf32> to vector<8x8xf32>
    %267 = arith.subf %263, %266 : vector<8x8xf32>
    %268 = math.exp %267 : vector<8x8xf32>
    %cst_82 = arith.constant dense<0.000000e+00> : vector<8xf32>
    %269 = vector.multi_reduction <add>, %268, %cst_82 [1] : vector<8x8xf32> to vector<8xf32>
    %270 = vector.shape_cast %269 : vector<8xf32> to vector<8x1xf32>
    %271 = tpu.reciprocal %270 {approx = true} : vector<8x1xf32> -> vector<8x1xf32>
    %272 = vector.broadcast %271 : vector<8x1xf32> to vector<8x8xf32>
    %273 = arith.mulf %268, %272 : vector<8x8xf32>
    %274 = vector.extract_strided_slice %214 {offsets = [0, 16], sizes = [8, 8], strides = [1, 1]} : vector<8x32xf32> to vector<8x8xf32>
    %275 = arith.truncf %273 : vector<8x8xf32> to vector<8x8xbf16>
    %276 = arith.truncf %274 : vector<8x8xf32> to vector<8x8xbf16>
    %cst_83 = arith.constant dense<0.000000e+00> : vector<8x8xf32>
    %277 = tpu.matmul %275, %276, %cst_83 {dimension_numbers = #tpu.dot_dimension_numbers<[1], [0], [0], [1], [0, 0, 1, 1], [], []>} : vector<8x8xbf16>, vector<8x8xbf16>, vector<8x8xf32> -> vector<8x8xf32>
    %278 = vector.extract_strided_slice %212 {offsets = [0, 24], sizes = [8, 8], strides = [1, 1]} : vector<8x32xf32> to vector<8x8xf32>
    %279 = vector.extract_strided_slice %213 {offsets = [0, 24], sizes = [8, 8], strides = [1, 1]} : vector<8x32xf32> to vector<8x8xf32>
    %280 = arith.truncf %278 : vector<8x8xf32> to vector<8x8xbf16>
    %281 = arith.truncf %279 : vector<8x8xf32> to vector<8x8xbf16>
    %cst_84 = arith.constant dense<0.000000e+00> : vector<8x8xf32>
    %282 = tpu.matmul %280, %281, %cst_84 {dimension_numbers = #tpu.dot_dimension_numbers<[1], [1], [0], [0], [0, 0, 1, 0], [], []>} : vector<8x8xbf16>, vector<8x8xbf16>, vector<8x8xf32> -> vector<8x8xf32>
    %cst_85 = arith.constant 0.353553385 : f32
    %283 = vector.broadcast %cst_85 : f32 to vector<8x8xf32>
    %284 = arith.mulf %282, %283 : vector<8x8xf32>
    %cst_86 = arith.constant dense<0xFF800000> : vector<8xf32>
    %285 = vector.multi_reduction <maximumf>, %284, %cst_86 [1] : vector<8x8xf32> to vector<8xf32>
    %286 = vector.shape_cast %285 : vector<8xf32> to vector<8x1xf32>
    %287 = vector.broadcast %286 : vector<8x1xf32> to vector<8x8xf32>
    %288 = arith.subf %284, %287 : vector<8x8xf32>
    %289 = math.exp %288 : vector<8x8xf32>
    %cst_87 = arith.constant dense<0.000000e+00> : vector<8xf32>
    %290 = vector.multi_reduction <add>, %289, %cst_87 [1] : vector<8x8xf32> to vector<8xf32>
    %291 = vector.shape_cast %290 : vector<8xf32> to vector<8x1xf32>
    %292 = tpu.reciprocal %291 {approx = true} : vector<8x1xf32> -> vector<8x1xf32>
    %293 = vector.broadcast %292 : vector<8x1xf32> to vector<8x8xf32>
    %294 = arith.mulf %289, %293 : vector<8x8xf32>
    %295 = vector.extract_strided_slice %214 {offsets = [0, 24], sizes = [8, 8], strides = [1, 1]} : vector<8x32xf32> to vector<8x8xf32>
    %296 = arith.truncf %294 : vector<8x8xf32> to vector<8x8xbf16>
    %297 = arith.truncf %295 : vector<8x8xf32> to vector<8x8xbf16>
    %cst_88 = arith.constant dense<0.000000e+00> : vector<8x8xf32>
    %298 = tpu.matmul %296, %297, %cst_88 {dimension_numbers = #tpu.dot_dimension_numbers<[1], [0], [0], [1], [0, 0, 1, 1], [], []>} : vector<8x8xbf16>, vector<8x8xbf16>, vector<8x8xf32> -> vector<8x8xf32>
    %299 = tpu.concatenate %235, %256, %277, %298 in 1 : vector<8x8xf32>, vector<8x8xf32>, vector<8x8xf32>, vector<8x8xf32> -> vector<8x32xf32>
    %300 = vector.extract_strided_slice %204 {offsets = [0, 96], sizes = [32, 32], strides = [1, 1]} : vector<32x128xbf16> to vector<32x32xbf16>
    %301 = arith.truncf %299 : vector<8x32xf32> to vector<8x32xbf16>
    %cst_89 = arith.constant dense<0.000000e+00> : vector<8x32xf32>
    %302 = tpu.matmul %301, %300, %cst_89 {dimension_numbers = #tpu.dot_dimension_numbers<[1], [0], [0], [1], [0, 0, 1, 1], [], []>} : vector<8x32xbf16>, vector<32x32xbf16>, vector<8x32xf32> -> vector<8x32xf32>
    %303 = vector.extract_strided_slice %206 {offsets = [0, 96], sizes = [1, 32], strides = [1, 1]} : vector<1x128xf32> to vector<1x32xf32>
    %304 = vector.broadcast %303 : vector<1x32xf32> to vector<8x32xf32>
    %305 = arith.addf %302, %304 : vector<8x32xf32>
    %c0_90 = arith.constant 0 : index
    %c0_91 = arith.constant 0 : index
    %c0_92 = arith.constant 0 : index
    %306 = vector.load %arg11[%c0_90, %c0_91, %c0_92] : memref<2x32x64xbf16, #tpu.memory_space<vmem>>, vector<1x32x64xbf16>
    %307 = vector.shape_cast %306 : vector<1x32x64xbf16> to vector<32x64xbf16>
    %308 = arith.truncf %305 : vector<8x32xf32> to vector<8x32xbf16>
    %cst_93 = arith.constant dense<0.000000e+00> : vector<8x64xf32>
    %309 = tpu.matmul %308, %307, %cst_93 {dimension_numbers = #tpu.dot_dimension_numbers<[1], [0], [0], [1], [0, 0, 1, 1], [], []>} : vector<8x32xbf16>, vector<32x64xbf16>, vector<8x64xf32> -> vector<8x64xf32>
    %c0_94 = arith.constant 0 : index
    %c0_95 = arith.constant 0 : index
    %c0_96 = arith.constant 0 : index
    %310 = vector.load %arg12[%c0_94, %c0_95, %c0_96] : memref<2x1x64xf32, #tpu.memory_space<vmem>>, vector<1x1x64xf32>
    %311 = vector.shape_cast %310 : vector<1x1x64xf32> to vector<1x64xf32>
    %312 = vector.broadcast %311 : vector<1x64xf32> to vector<8x64xf32>
    %313 = arith.addf %309, %312 : vector<8x64xf32>
    %cst_97 = arith.constant 0.000000e+00 : f32
    %314 = vector.broadcast %cst_97 : f32 to vector<8x64xf32>
    %315 = arith.maximumf %313, %314 : vector<8x64xf32>
    %c0_98 = arith.constant 0 : index
    %c0_99 = arith.constant 0 : index
    %c0_100 = arith.constant 0 : index
    %316 = vector.load %arg13[%c0_98, %c0_99, %c0_100] : memref<2x64x32xbf16, #tpu.memory_space<vmem>>, vector<1x64x32xbf16>
    %317 = vector.shape_cast %316 : vector<1x64x32xbf16> to vector<64x32xbf16>
    %318 = arith.truncf %315 : vector<8x64xf32> to vector<8x64xbf16>
    %cst_101 = arith.constant dense<0.000000e+00> : vector<8x32xf32>
    %319 = tpu.matmul %318, %317, %cst_101 {dimension_numbers = #tpu.dot_dimension_numbers<[1], [0], [0], [1], [0, 0, 1, 1], [], []>} : vector<8x64xbf16>, vector<64x32xbf16>, vector<8x32xf32> -> vector<8x32xf32>
    %c0_102 = arith.constant 0 : index
    %c0_103 = arith.constant 0 : index
    %c0_104 = arith.constant 0 : index
    %320 = vector.load %arg14[%c0_102, %c0_103, %c0_104] : memref<2x1x32xf32, #tpu.memory_space<vmem>>, vector<1x1x32xf32>
    %321 = vector.shape_cast %320 : vector<1x1x32xf32> to vector<1x32xf32>
    %322 = vector.broadcast %321 : vector<1x32xf32> to vector<8x32xf32>
    %323 = arith.addf %319, %322 : vector<8x32xf32>
    %c1 = arith.constant 1 : index
    %c0_105 = arith.constant 0 : index
    %c0_106 = arith.constant 0 : index
    %324 = vector.load %arg7[%c1, %c0_105, %c0_106] : memref<2x32x128xbf16, #tpu.memory_space<vmem>>, vector<1x32x128xbf16>
    %325 = vector.shape_cast %324 : vector<1x32x128xbf16> to vector<32x128xbf16>
    %c1_107 = arith.constant 1 : index
    %c0_108 = arith.constant 0 : index
    %c0_109 = arith.constant 0 : index
    %326 = vector.load %arg8[%c1_107, %c0_108, %c0_109] : memref<2x1x128xf32, #tpu.memory_space<vmem>>, vector<1x1x128xf32>
    %327 = vector.shape_cast %326 : vector<1x1x128xf32> to vector<1x128xf32>
    %328 = arith.addf %323, %8 : vector<8x32xf32>
    %329 = tpu.concatenate %328, %323 in 0 : vector<8x32xf32>, vector<8x32xf32> -> vector<16x32xf32>
    %330 = arith.truncf %329 : vector<16x32xf32> to vector<16x32xbf16>
    %cst_110 = arith.constant dense<0.000000e+00> : vector<16x128xf32>
    %331 = tpu.matmul %330, %325, %cst_110 {dimension_numbers = #tpu.dot_dimension_numbers<[1], [0], [0], [1], [0, 0, 1, 1], [], []>} : vector<16x32xbf16>, vector<32x128xbf16>, vector<16x128xf32> -> vector<16x128xf32>
    %332 = vector.broadcast %327 : vector<1x128xf32> to vector<16x128xf32>
    %333 = arith.addf %331, %332 : vector<16x128xf32>
    %334 = vector.extract_strided_slice %333 {offsets = [0, 0], sizes = [8, 32], strides = [1, 1]} : vector<16x128xf32> to vector<8x32xf32>
    %335 = vector.extract_strided_slice %333 {offsets = [0, 32], sizes = [8, 32], strides = [1, 1]} : vector<16x128xf32> to vector<8x32xf32>
    %336 = vector.extract_strided_slice %333 {offsets = [0, 64], sizes = [8, 32], strides = [1, 1]} : vector<16x128xf32> to vector<8x32xf32>
    %337 = vector.extract_strided_slice %333 {offsets = [8, 0], sizes = [8, 32], strides = [1, 1]} : vector<16x128xf32> to vector<8x32xf32>
    %338 = vector.extract_strided_slice %333 {offsets = [8, 32], sizes = [8, 32], strides = [1, 1]} : vector<16x128xf32> to vector<8x32xf32>
    %339 = vector.extract_strided_slice %334 {offsets = [0, 0], sizes = [8, 8], strides = [1, 1]} : vector<8x32xf32> to vector<8x8xf32>
    %340 = vector.extract_strided_slice %335 {offsets = [0, 0], sizes = [8, 8], strides = [1, 1]} : vector<8x32xf32> to vector<8x8xf32>
    %341 = arith.truncf %339 : vector<8x8xf32> to vector<8x8xbf16>
    %342 = arith.truncf %340 : vector<8x8xf32> to vector<8x8xbf16>
    %cst_111 = arith.constant dense<0.000000e+00> : vector<8x8xf32>
    %343 = tpu.matmul %341, %342, %cst_111 {dimension_numbers = #tpu.dot_dimension_numbers<[1], [1], [0], [0], [0, 0, 1, 0], [], []>} : vector<8x8xbf16>, vector<8x8xbf16>, vector<8x8xf32> -> vector<8x8xf32>
    %cst_112 = arith.constant 0.353553385 : f32
    %344 = vector.broadcast %cst_112 : f32 to vector<8x8xf32>
    %345 = arith.mulf %343, %344 : vector<8x8xf32>
    %cst_113 = arith.constant dense<0xFF800000> : vector<8xf32>
    %346 = vector.multi_reduction <maximumf>, %345, %cst_113 [1] : vector<8x8xf32> to vector<8xf32>
    %347 = vector.shape_cast %346 : vector<8xf32> to vector<8x1xf32>
    %348 = vector.broadcast %347 : vector<8x1xf32> to vector<8x8xf32>
    %349 = arith.subf %345, %348 : vector<8x8xf32>
    %350 = math.exp %349 : vector<8x8xf32>
    %cst_114 = arith.constant dense<0.000000e+00> : vector<8xf32>
    %351 = vector.multi_reduction <add>, %350, %cst_114 [1] : vector<8x8xf32> to vector<8xf32>
    %352 = vector.shape_cast %351 : vector<8xf32> to vector<8x1xf32>
    %353 = tpu.reciprocal %352 {approx = true} : vector<8x1xf32> -> vector<8x1xf32>
    %354 = vector.broadcast %353 : vector<8x1xf32> to vector<8x8xf32>
    %355 = arith.mulf %350, %354 : vector<8x8xf32>
    %356 = vector.extract_strided_slice %337 {offsets = [0, 0], sizes = [8, 8], strides = [1, 1]} : vector<8x32xf32> to vector<8x8xf32>
    %357 = vector.extract_strided_slice %338 {offsets = [0, 0], sizes = [8, 8], strides = [1, 1]} : vector<8x32xf32> to vector<8x8xf32>
    %358 = arith.truncf %356 : vector<8x8xf32> to vector<8x8xbf16>
    %359 = arith.truncf %357 : vector<8x8xf32> to vector<8x8xbf16>
    %cst_115 = arith.constant dense<0.000000e+00> : vector<8x8xf32>
    %360 = tpu.matmul %358, %359, %cst_115 {dimension_numbers = #tpu.dot_dimension_numbers<[1], [1], [0], [0], [0, 0, 1, 0], [], []>} : vector<8x8xbf16>, vector<8x8xbf16>, vector<8x8xf32> -> vector<8x8xf32>
    %cst_116 = arith.constant 0.353553385 : f32
    %361 = vector.broadcast %cst_116 : f32 to vector<8x8xf32>
    %362 = arith.mulf %360, %361 : vector<8x8xf32>
    %cst_117 = arith.constant dense<0xFF800000> : vector<8xf32>
    %363 = vector.multi_reduction <maximumf>, %362, %cst_117 [1] : vector<8x8xf32> to vector<8xf32>
    %364 = vector.shape_cast %363 : vector<8xf32> to vector<8x1xf32>
    %365 = vector.broadcast %364 : vector<8x1xf32> to vector<8x8xf32>
    %366 = arith.subf %362, %365 : vector<8x8xf32>
    %367 = math.exp %366 : vector<8x8xf32>
    %cst_118 = arith.constant dense<0.000000e+00> : vector<8xf32>
    %368 = vector.multi_reduction <add>, %367, %cst_118 [1] : vector<8x8xf32> to vector<8xf32>
    %369 = vector.shape_cast %368 : vector<8xf32> to vector<8x1xf32>
    %370 = tpu.reciprocal %369 {approx = true} : vector<8x1xf32> -> vector<8x1xf32>
    %371 = vector.broadcast %370 : vector<8x1xf32> to vector<8x8xf32>
    %372 = arith.mulf %367, %371 : vector<8x8xf32>
    %373 = vector.extract_strided_slice %336 {offsets = [0, 0], sizes = [8, 8], strides = [1, 1]} : vector<8x32xf32> to vector<8x8xf32>
    %374 = arith.truncf %355 : vector<8x8xf32> to vector<8x8xbf16>
    %375 = arith.truncf %373 : vector<8x8xf32> to vector<8x8xbf16>
    %cst_119 = arith.constant dense<0.000000e+00> : vector<8x8xf32>
    %376 = tpu.matmul %374, %375, %cst_119 {dimension_numbers = #tpu.dot_dimension_numbers<[1], [0], [0], [1], [0, 0, 1, 1], [], []>} : vector<8x8xbf16>, vector<8x8xbf16>, vector<8x8xf32> -> vector<8x8xf32>
    %377 = vector.extract_strided_slice %334 {offsets = [0, 8], sizes = [8, 8], strides = [1, 1]} : vector<8x32xf32> to vector<8x8xf32>
    %378 = vector.extract_strided_slice %335 {offsets = [0, 8], sizes = [8, 8], strides = [1, 1]} : vector<8x32xf32> to vector<8x8xf32>
    %379 = arith.truncf %377 : vector<8x8xf32> to vector<8x8xbf16>
    %380 = arith.truncf %378 : vector<8x8xf32> to vector<8x8xbf16>
    %cst_120 = arith.constant dense<0.000000e+00> : vector<8x8xf32>
    %381 = tpu.matmul %379, %380, %cst_120 {dimension_numbers = #tpu.dot_dimension_numbers<[1], [1], [0], [0], [0, 0, 1, 0], [], []>} : vector<8x8xbf16>, vector<8x8xbf16>, vector<8x8xf32> -> vector<8x8xf32>
    %cst_121 = arith.constant 0.353553385 : f32
    %382 = vector.broadcast %cst_121 : f32 to vector<8x8xf32>
    %383 = arith.mulf %381, %382 : vector<8x8xf32>
    %cst_122 = arith.constant dense<0xFF800000> : vector<8xf32>
    %384 = vector.multi_reduction <maximumf>, %383, %cst_122 [1] : vector<8x8xf32> to vector<8xf32>
    %385 = vector.shape_cast %384 : vector<8xf32> to vector<8x1xf32>
    %386 = vector.broadcast %385 : vector<8x1xf32> to vector<8x8xf32>
    %387 = arith.subf %383, %386 : vector<8x8xf32>
    %388 = math.exp %387 : vector<8x8xf32>
    %cst_123 = arith.constant dense<0.000000e+00> : vector<8xf32>
    %389 = vector.multi_reduction <add>, %388, %cst_123 [1] : vector<8x8xf32> to vector<8xf32>
    %390 = vector.shape_cast %389 : vector<8xf32> to vector<8x1xf32>
    %391 = tpu.reciprocal %390 {approx = true} : vector<8x1xf32> -> vector<8x1xf32>
    %392 = vector.broadcast %391 : vector<8x1xf32> to vector<8x8xf32>
    %393 = arith.mulf %388, %392 : vector<8x8xf32>
    %394 = vector.extract_strided_slice %337 {offsets = [0, 8], sizes = [8, 8], strides = [1, 1]} : vector<8x32xf32> to vector<8x8xf32>
    %395 = vector.extract_strided_slice %338 {offsets = [0, 8], sizes = [8, 8], strides = [1, 1]} : vector<8x32xf32> to vector<8x8xf32>
    %396 = arith.truncf %394 : vector<8x8xf32> to vector<8x8xbf16>
    %397 = arith.truncf %395 : vector<8x8xf32> to vector<8x8xbf16>
    %cst_124 = arith.constant dense<0.000000e+00> : vector<8x8xf32>
    %398 = tpu.matmul %396, %397, %cst_124 {dimension_numbers = #tpu.dot_dimension_numbers<[1], [1], [0], [0], [0, 0, 1, 0], [], []>} : vector<8x8xbf16>, vector<8x8xbf16>, vector<8x8xf32> -> vector<8x8xf32>
    %cst_125 = arith.constant 0.353553385 : f32
    %399 = vector.broadcast %cst_125 : f32 to vector<8x8xf32>
    %400 = arith.mulf %398, %399 : vector<8x8xf32>
    %cst_126 = arith.constant dense<0xFF800000> : vector<8xf32>
    %401 = vector.multi_reduction <maximumf>, %400, %cst_126 [1] : vector<8x8xf32> to vector<8xf32>
    %402 = vector.shape_cast %401 : vector<8xf32> to vector<8x1xf32>
    %403 = vector.broadcast %402 : vector<8x1xf32> to vector<8x8xf32>
    %404 = arith.subf %400, %403 : vector<8x8xf32>
    %405 = math.exp %404 : vector<8x8xf32>
    %cst_127 = arith.constant dense<0.000000e+00> : vector<8xf32>
    %406 = vector.multi_reduction <add>, %405, %cst_127 [1] : vector<8x8xf32> to vector<8xf32>
    %407 = vector.shape_cast %406 : vector<8xf32> to vector<8x1xf32>
    %408 = tpu.reciprocal %407 {approx = true} : vector<8x1xf32> -> vector<8x1xf32>
    %409 = vector.broadcast %408 : vector<8x1xf32> to vector<8x8xf32>
    %410 = arith.mulf %405, %409 : vector<8x8xf32>
    %411 = arith.addf %355, %393 : vector<8x8xf32>
    %412 = arith.addf %372, %410 : vector<8x8xf32>
    %413 = vector.extract_strided_slice %336 {offsets = [0, 8], sizes = [8, 8], strides = [1, 1]} : vector<8x32xf32> to vector<8x8xf32>
    %414 = arith.truncf %393 : vector<8x8xf32> to vector<8x8xbf16>
    %415 = arith.truncf %413 : vector<8x8xf32> to vector<8x8xbf16>
    %cst_128 = arith.constant dense<0.000000e+00> : vector<8x8xf32>
    %416 = tpu.matmul %414, %415, %cst_128 {dimension_numbers = #tpu.dot_dimension_numbers<[1], [0], [0], [1], [0, 0, 1, 1], [], []>} : vector<8x8xbf16>, vector<8x8xbf16>, vector<8x8xf32> -> vector<8x8xf32>
    %417 = vector.extract_strided_slice %334 {offsets = [0, 16], sizes = [8, 8], strides = [1, 1]} : vector<8x32xf32> to vector<8x8xf32>
    %418 = vector.extract_strided_slice %335 {offsets = [0, 16], sizes = [8, 8], strides = [1, 1]} : vector<8x32xf32> to vector<8x8xf32>
    %419 = arith.truncf %417 : vector<8x8xf32> to vector<8x8xbf16>
    %420 = arith.truncf %418 : vector<8x8xf32> to vector<8x8xbf16>
    %cst_129 = arith.constant dense<0.000000e+00> : vector<8x8xf32>
    %421 = tpu.matmul %419, %420, %cst_129 {dimension_numbers = #tpu.dot_dimension_numbers<[1], [1], [0], [0], [0, 0, 1, 0], [], []>} : vector<8x8xbf16>, vector<8x8xbf16>, vector<8x8xf32> -> vector<8x8xf32>
    %cst_130 = arith.constant 0.353553385 : f32
    %422 = vector.broadcast %cst_130 : f32 to vector<8x8xf32>
    %423 = arith.mulf %421, %422 : vector<8x8xf32>
    %cst_131 = arith.constant dense<0xFF800000> : vector<8xf32>
    %424 = vector.multi_reduction <maximumf>, %423, %cst_131 [1] : vector<8x8xf32> to vector<8xf32>
    %425 = vector.shape_cast %424 : vector<8xf32> to vector<8x1xf32>
    %426 = vector.broadcast %425 : vector<8x1xf32> to vector<8x8xf32>
    %427 = arith.subf %423, %426 : vector<8x8xf32>
    %428 = math.exp %427 : vector<8x8xf32>
    %cst_132 = arith.constant dense<0.000000e+00> : vector<8xf32>
    %429 = vector.multi_reduction <add>, %428, %cst_132 [1] : vector<8x8xf32> to vector<8xf32>
    %430 = vector.shape_cast %429 : vector<8xf32> to vector<8x1xf32>
    %431 = tpu.reciprocal %430 {approx = true} : vector<8x1xf32> -> vector<8x1xf32>
    %432 = vector.broadcast %431 : vector<8x1xf32> to vector<8x8xf32>
    %433 = arith.mulf %428, %432 : vector<8x8xf32>
    %434 = vector.extract_strided_slice %337 {offsets = [0, 16], sizes = [8, 8], strides = [1, 1]} : vector<8x32xf32> to vector<8x8xf32>
    %435 = vector.extract_strided_slice %338 {offsets = [0, 16], sizes = [8, 8], strides = [1, 1]} : vector<8x32xf32> to vector<8x8xf32>
    %436 = arith.truncf %434 : vector<8x8xf32> to vector<8x8xbf16>
    %437 = arith.truncf %435 : vector<8x8xf32> to vector<8x8xbf16>
    %cst_133 = arith.constant dense<0.000000e+00> : vector<8x8xf32>
    %438 = tpu.matmul %436, %437, %cst_133 {dimension_numbers = #tpu.dot_dimension_numbers<[1], [1], [0], [0], [0, 0, 1, 0], [], []>} : vector<8x8xbf16>, vector<8x8xbf16>, vector<8x8xf32> -> vector<8x8xf32>
    %cst_134 = arith.constant 0.353553385 : f32
    %439 = vector.broadcast %cst_134 : f32 to vector<8x8xf32>
    %440 = arith.mulf %438, %439 : vector<8x8xf32>
    %cst_135 = arith.constant dense<0xFF800000> : vector<8xf32>
    %441 = vector.multi_reduction <maximumf>, %440, %cst_135 [1] : vector<8x8xf32> to vector<8xf32>
    %442 = vector.shape_cast %441 : vector<8xf32> to vector<8x1xf32>
    %443 = vector.broadcast %442 : vector<8x1xf32> to vector<8x8xf32>
    %444 = arith.subf %440, %443 : vector<8x8xf32>
    %445 = math.exp %444 : vector<8x8xf32>
    %cst_136 = arith.constant dense<0.000000e+00> : vector<8xf32>
    %446 = vector.multi_reduction <add>, %445, %cst_136 [1] : vector<8x8xf32> to vector<8xf32>
    %447 = vector.shape_cast %446 : vector<8xf32> to vector<8x1xf32>
    %448 = tpu.reciprocal %447 {approx = true} : vector<8x1xf32> -> vector<8x1xf32>
    %449 = vector.broadcast %448 : vector<8x1xf32> to vector<8x8xf32>
    %450 = arith.mulf %445, %449 : vector<8x8xf32>
    %451 = arith.addf %411, %433 : vector<8x8xf32>
    %452 = arith.addf %412, %450 : vector<8x8xf32>
    %453 = vector.extract_strided_slice %336 {offsets = [0, 16], sizes = [8, 8], strides = [1, 1]} : vector<8x32xf32> to vector<8x8xf32>
    %454 = arith.truncf %433 : vector<8x8xf32> to vector<8x8xbf16>
    %455 = arith.truncf %453 : vector<8x8xf32> to vector<8x8xbf16>
    %cst_137 = arith.constant dense<0.000000e+00> : vector<8x8xf32>
    %456 = tpu.matmul %454, %455, %cst_137 {dimension_numbers = #tpu.dot_dimension_numbers<[1], [0], [0], [1], [0, 0, 1, 1], [], []>} : vector<8x8xbf16>, vector<8x8xbf16>, vector<8x8xf32> -> vector<8x8xf32>
    %457 = vector.extract_strided_slice %334 {offsets = [0, 24], sizes = [8, 8], strides = [1, 1]} : vector<8x32xf32> to vector<8x8xf32>
    %458 = vector.extract_strided_slice %335 {offsets = [0, 24], sizes = [8, 8], strides = [1, 1]} : vector<8x32xf32> to vector<8x8xf32>
    %459 = arith.truncf %457 : vector<8x8xf32> to vector<8x8xbf16>
    %460 = arith.truncf %458 : vector<8x8xf32> to vector<8x8xbf16>
    %cst_138 = arith.constant dense<0.000000e+00> : vector<8x8xf32>
    %461 = tpu.matmul %459, %460, %cst_138 {dimension_numbers = #tpu.dot_dimension_numbers<[1], [1], [0], [0], [0, 0, 1, 0], [], []>} : vector<8x8xbf16>, vector<8x8xbf16>, vector<8x8xf32> -> vector<8x8xf32>
    %cst_139 = arith.constant 0.353553385 : f32
    %462 = vector.broadcast %cst_139 : f32 to vector<8x8xf32>
    %463 = arith.mulf %461, %462 : vector<8x8xf32>
    %cst_140 = arith.constant dense<0xFF800000> : vector<8xf32>
    %464 = vector.multi_reduction <maximumf>, %463, %cst_140 [1] : vector<8x8xf32> to vector<8xf32>
    %465 = vector.shape_cast %464 : vector<8xf32> to vector<8x1xf32>
    %466 = vector.broadcast %465 : vector<8x1xf32> to vector<8x8xf32>
    %467 = arith.subf %463, %466 : vector<8x8xf32>
    %468 = math.exp %467 : vector<8x8xf32>
    %cst_141 = arith.constant dense<0.000000e+00> : vector<8xf32>
    %469 = vector.multi_reduction <add>, %468, %cst_141 [1] : vector<8x8xf32> to vector<8xf32>
    %470 = vector.shape_cast %469 : vector<8xf32> to vector<8x1xf32>
    %471 = tpu.reciprocal %470 {approx = true} : vector<8x1xf32> -> vector<8x1xf32>
    %472 = vector.broadcast %471 : vector<8x1xf32> to vector<8x8xf32>
    %473 = arith.mulf %468, %472 : vector<8x8xf32>
    %474 = vector.extract_strided_slice %337 {offsets = [0, 24], sizes = [8, 8], strides = [1, 1]} : vector<8x32xf32> to vector<8x8xf32>
    %475 = vector.extract_strided_slice %338 {offsets = [0, 24], sizes = [8, 8], strides = [1, 1]} : vector<8x32xf32> to vector<8x8xf32>
    %476 = arith.truncf %474 : vector<8x8xf32> to vector<8x8xbf16>
    %477 = arith.truncf %475 : vector<8x8xf32> to vector<8x8xbf16>
    %cst_142 = arith.constant dense<0.000000e+00> : vector<8x8xf32>
    %478 = tpu.matmul %476, %477, %cst_142 {dimension_numbers = #tpu.dot_dimension_numbers<[1], [1], [0], [0], [0, 0, 1, 0], [], []>} : vector<8x8xbf16>, vector<8x8xbf16>, vector<8x8xf32> -> vector<8x8xf32>
    %cst_143 = arith.constant 0.353553385 : f32
    %479 = vector.broadcast %cst_143 : f32 to vector<8x8xf32>
    %480 = arith.mulf %478, %479 : vector<8x8xf32>
    %cst_144 = arith.constant dense<0xFF800000> : vector<8xf32>
    %481 = vector.multi_reduction <maximumf>, %480, %cst_144 [1] : vector<8x8xf32> to vector<8xf32>
    %482 = vector.shape_cast %481 : vector<8xf32> to vector<8x1xf32>
    %483 = vector.broadcast %482 : vector<8x1xf32> to vector<8x8xf32>
    %484 = arith.subf %480, %483 : vector<8x8xf32>
    %485 = math.exp %484 : vector<8x8xf32>
    %cst_145 = arith.constant dense<0.000000e+00> : vector<8xf32>
    %486 = vector.multi_reduction <add>, %485, %cst_145 [1] : vector<8x8xf32> to vector<8xf32>
    %487 = vector.shape_cast %486 : vector<8xf32> to vector<8x1xf32>
    %488 = tpu.reciprocal %487 {approx = true} : vector<8x1xf32> -> vector<8x1xf32>
    %489 = vector.broadcast %488 : vector<8x1xf32> to vector<8x8xf32>
    %490 = arith.mulf %485, %489 : vector<8x8xf32>
    %491 = arith.addf %451, %473 : vector<8x8xf32>
    %492 = arith.addf %452, %490 : vector<8x8xf32>
    %493 = vector.extract_strided_slice %336 {offsets = [0, 24], sizes = [8, 8], strides = [1, 1]} : vector<8x32xf32> to vector<8x8xf32>
    %494 = arith.truncf %473 : vector<8x8xf32> to vector<8x8xbf16>
    %495 = arith.truncf %493 : vector<8x8xf32> to vector<8x8xbf16>
    %cst_146 = arith.constant dense<0.000000e+00> : vector<8x8xf32>
    %496 = tpu.matmul %494, %495, %cst_146 {dimension_numbers = #tpu.dot_dimension_numbers<[1], [0], [0], [1], [0, 0, 1, 1], [], []>} : vector<8x8xbf16>, vector<8x8xbf16>, vector<8x8xf32> -> vector<8x8xf32>
    %497 = tpu.concatenate %376, %416, %456, %496 in 1 : vector<8x8xf32>, vector<8x8xf32>, vector<8x8xf32>, vector<8x8xf32> -> vector<8x32xf32>
    %498 = vector.extract_strided_slice %325 {offsets = [0, 96], sizes = [32, 32], strides = [1, 1]} : vector<32x128xbf16> to vector<32x32xbf16>
    %499 = arith.truncf %497 : vector<8x32xf32> to vector<8x32xbf16>
    %cst_147 = arith.constant dense<0.000000e+00> : vector<8x32xf32>
    %500 = tpu.matmul %499, %498, %cst_147 {dimension_numbers = #tpu.dot_dimension_numbers<[1], [0], [0], [1], [0, 0, 1, 1], [], []>} : vector<8x32xbf16>, vector<32x32xbf16>, vector<8x32xf32> -> vector<8x32xf32>
    %501 = vector.extract_strided_slice %327 {offsets = [0, 96], sizes = [1, 32], strides = [1, 1]} : vector<1x128xf32> to vector<1x32xf32>
    %502 = vector.broadcast %501 : vector<1x32xf32> to vector<8x32xf32>
    %503 = arith.addf %500, %502 : vector<8x32xf32>
    %cst_148 = arith.constant 2.500000e-01 : f32
    %504 = vector.broadcast %cst_148 : f32 to vector<8x8xf32>
    %505 = arith.mulf %491, %504 : vector<8x8xf32>
    %cst_149 = arith.constant 2.500000e-01 : f32
    %506 = vector.broadcast %cst_149 : f32 to vector<8x8xf32>
    %507 = arith.mulf %492, %506 : vector<8x8xf32>
    %508 = arith.truncf %505 : vector<8x8xf32> to vector<8x8xbf16>
    %509 = arith.truncf %507 : vector<8x8xf32> to vector<8x8xbf16>
    %cst_150 = arith.constant dense<0.000000e+00> : vector<8x8xf32>
    %510 = tpu.matmul %508, %509, %cst_150 {dimension_numbers = #tpu.dot_dimension_numbers<[1], [1], [0], [0], [0, 0, 1, 0], [], []>} : vector<8x8xbf16>, vector<8x8xbf16>, vector<8x8xf32> -> vector<8x8xf32>
    %511 = arith.truncf %510 : vector<8x8xf32> to vector<8x8xbf16>
    %512 = arith.truncf %503 : vector<8x32xf32> to vector<8x32xbf16>
    %cst_151 = arith.constant dense<0.000000e+00> : vector<8x32xf32>
    %513 = tpu.matmul %511, %512, %cst_151 {dimension_numbers = #tpu.dot_dimension_numbers<[1], [0], [0], [1], [0, 0, 1, 1], [], []>} : vector<8x8xbf16>, vector<8x32xbf16>, vector<8x32xf32> -> vector<8x32xf32>
    %c1_152 = arith.constant 1 : index
    %c0_153 = arith.constant 0 : index
    %c0_154 = arith.constant 0 : index
    %514 = vector.load %arg9[%c1_152, %c0_153, %c0_154] : memref<2x32x128xbf16, #tpu.memory_space<vmem>>, vector<1x32x128xbf16>
    %515 = vector.shape_cast %514 : vector<1x32x128xbf16> to vector<32x128xbf16>
    %c1_155 = arith.constant 1 : index
    %c0_156 = arith.constant 0 : index
    %c0_157 = arith.constant 0 : index
    %516 = vector.load %arg10[%c1_155, %c0_156, %c0_157] : memref<2x1x128xf32, #tpu.memory_space<vmem>>, vector<1x1x128xf32>
    %517 = vector.shape_cast %516 : vector<1x1x128xf32> to vector<1x128xf32>
    %518 = tpu.concatenate %513, %10, %12 in 0 : vector<8x32xf32>, vector<8x32xf32>, vector<8x32xf32> -> vector<24x32xf32>
    %519 = arith.truncf %518 : vector<24x32xf32> to vector<24x32xbf16>
    %cst_158 = arith.constant dense<0.000000e+00> : vector<24x128xf32>
    %520 = tpu.matmul %519, %515, %cst_158 {dimension_numbers = #tpu.dot_dimension_numbers<[1], [0], [0], [1], [0, 0, 1, 1], [], []>} : vector<24x32xbf16>, vector<32x128xbf16>, vector<24x128xf32> -> vector<24x128xf32>
    %521 = vector.broadcast %517 : vector<1x128xf32> to vector<24x128xf32>
    %522 = arith.addf %520, %521 : vector<24x128xf32>
    %523 = vector.extract_strided_slice %522 {offsets = [0, 0], sizes = [8, 32], strides = [1, 1]} : vector<24x128xf32> to vector<8x32xf32>
    %524 = vector.extract_strided_slice %522 {offsets = [8, 32], sizes = [8, 32], strides = [1, 1]} : vector<24x128xf32> to vector<8x32xf32>
    %525 = vector.extract_strided_slice %522 {offsets = [16, 64], sizes = [8, 32], strides = [1, 1]} : vector<24x128xf32> to vector<8x32xf32>
    %526 = vector.extract_strided_slice %523 {offsets = [0, 0], sizes = [8, 8], strides = [1, 1]} : vector<8x32xf32> to vector<8x8xf32>
    %527 = vector.extract_strided_slice %524 {offsets = [0, 0], sizes = [8, 8], strides = [1, 1]} : vector<8x32xf32> to vector<8x8xf32>
    %528 = arith.truncf %526 : vector<8x8xf32> to vector<8x8xbf16>
    %529 = arith.truncf %527 : vector<8x8xf32> to vector<8x8xbf16>
    %cst_159 = arith.constant dense<0.000000e+00> : vector<8x8xf32>
    %530 = tpu.matmul %528, %529, %cst_159 {dimension_numbers = #tpu.dot_dimension_numbers<[1], [1], [0], [0], [0, 0, 1, 0], [], []>} : vector<8x8xbf16>, vector<8x8xbf16>, vector<8x8xf32> -> vector<8x8xf32>
    %cst_160 = arith.constant 0.353553385 : f32
    %531 = vector.broadcast %cst_160 : f32 to vector<8x8xf32>
    %532 = arith.mulf %530, %531 : vector<8x8xf32>
    %cst_161 = arith.constant dense<0xFF800000> : vector<8xf32>
    %533 = vector.multi_reduction <maximumf>, %532, %cst_161 [1] : vector<8x8xf32> to vector<8xf32>
    %534 = vector.shape_cast %533 : vector<8xf32> to vector<8x1xf32>
    %535 = vector.broadcast %534 : vector<8x1xf32> to vector<8x8xf32>
    %536 = arith.subf %532, %535 : vector<8x8xf32>
    %537 = math.exp %536 : vector<8x8xf32>
    %cst_162 = arith.constant dense<0.000000e+00> : vector<8xf32>
    %538 = vector.multi_reduction <add>, %537, %cst_162 [1] : vector<8x8xf32> to vector<8xf32>
    %539 = vector.shape_cast %538 : vector<8xf32> to vector<8x1xf32>
    %540 = tpu.reciprocal %539 {approx = true} : vector<8x1xf32> -> vector<8x1xf32>
    %541 = vector.broadcast %540 : vector<8x1xf32> to vector<8x8xf32>
    %542 = arith.mulf %537, %541 : vector<8x8xf32>
    %543 = vector.extract_strided_slice %525 {offsets = [0, 0], sizes = [8, 8], strides = [1, 1]} : vector<8x32xf32> to vector<8x8xf32>
    %544 = arith.truncf %542 : vector<8x8xf32> to vector<8x8xbf16>
    %545 = arith.truncf %543 : vector<8x8xf32> to vector<8x8xbf16>
    %cst_163 = arith.constant dense<0.000000e+00> : vector<8x8xf32>
    %546 = tpu.matmul %544, %545, %cst_163 {dimension_numbers = #tpu.dot_dimension_numbers<[1], [0], [0], [1], [0, 0, 1, 1], [], []>} : vector<8x8xbf16>, vector<8x8xbf16>, vector<8x8xf32> -> vector<8x8xf32>
    %547 = vector.extract_strided_slice %523 {offsets = [0, 8], sizes = [8, 8], strides = [1, 1]} : vector<8x32xf32> to vector<8x8xf32>
    %548 = vector.extract_strided_slice %524 {offsets = [0, 8], sizes = [8, 8], strides = [1, 1]} : vector<8x32xf32> to vector<8x8xf32>
    %549 = arith.truncf %547 : vector<8x8xf32> to vector<8x8xbf16>
    %550 = arith.truncf %548 : vector<8x8xf32> to vector<8x8xbf16>
    %cst_164 = arith.constant dense<0.000000e+00> : vector<8x8xf32>
    %551 = tpu.matmul %549, %550, %cst_164 {dimension_numbers = #tpu.dot_dimension_numbers<[1], [1], [0], [0], [0, 0, 1, 0], [], []>} : vector<8x8xbf16>, vector<8x8xbf16>, vector<8x8xf32> -> vector<8x8xf32>
    %cst_165 = arith.constant 0.353553385 : f32
    %552 = vector.broadcast %cst_165 : f32 to vector<8x8xf32>
    %553 = arith.mulf %551, %552 : vector<8x8xf32>
    %cst_166 = arith.constant dense<0xFF800000> : vector<8xf32>
    %554 = vector.multi_reduction <maximumf>, %553, %cst_166 [1] : vector<8x8xf32> to vector<8xf32>
    %555 = vector.shape_cast %554 : vector<8xf32> to vector<8x1xf32>
    %556 = vector.broadcast %555 : vector<8x1xf32> to vector<8x8xf32>
    %557 = arith.subf %553, %556 : vector<8x8xf32>
    %558 = math.exp %557 : vector<8x8xf32>
    %cst_167 = arith.constant dense<0.000000e+00> : vector<8xf32>
    %559 = vector.multi_reduction <add>, %558, %cst_167 [1] : vector<8x8xf32> to vector<8xf32>
    %560 = vector.shape_cast %559 : vector<8xf32> to vector<8x1xf32>
    %561 = tpu.reciprocal %560 {approx = true} : vector<8x1xf32> -> vector<8x1xf32>
    %562 = vector.broadcast %561 : vector<8x1xf32> to vector<8x8xf32>
    %563 = arith.mulf %558, %562 : vector<8x8xf32>
    %564 = vector.extract_strided_slice %525 {offsets = [0, 8], sizes = [8, 8], strides = [1, 1]} : vector<8x32xf32> to vector<8x8xf32>
    %565 = arith.truncf %563 : vector<8x8xf32> to vector<8x8xbf16>
    %566 = arith.truncf %564 : vector<8x8xf32> to vector<8x8xbf16>
    %cst_168 = arith.constant dense<0.000000e+00> : vector<8x8xf32>
    %567 = tpu.matmul %565, %566, %cst_168 {dimension_numbers = #tpu.dot_dimension_numbers<[1], [0], [0], [1], [0, 0, 1, 1], [], []>} : vector<8x8xbf16>, vector<8x8xbf16>, vector<8x8xf32> -> vector<8x8xf32>
    %568 = vector.extract_strided_slice %523 {offsets = [0, 16], sizes = [8, 8], strides = [1, 1]} : vector<8x32xf32> to vector<8x8xf32>
    %569 = vector.extract_strided_slice %524 {offsets = [0, 16], sizes = [8, 8], strides = [1, 1]} : vector<8x32xf32> to vector<8x8xf32>
    %570 = arith.truncf %568 : vector<8x8xf32> to vector<8x8xbf16>
    %571 = arith.truncf %569 : vector<8x8xf32> to vector<8x8xbf16>
    %cst_169 = arith.constant dense<0.000000e+00> : vector<8x8xf32>
    %572 = tpu.matmul %570, %571, %cst_169 {dimension_numbers = #tpu.dot_dimension_numbers<[1], [1], [0], [0], [0, 0, 1, 0], [], []>} : vector<8x8xbf16>, vector<8x8xbf16>, vector<8x8xf32> -> vector<8x8xf32>
    %cst_170 = arith.constant 0.353553385 : f32
    %573 = vector.broadcast %cst_170 : f32 to vector<8x8xf32>
    %574 = arith.mulf %572, %573 : vector<8x8xf32>
    %cst_171 = arith.constant dense<0xFF800000> : vector<8xf32>
    %575 = vector.multi_reduction <maximumf>, %574, %cst_171 [1] : vector<8x8xf32> to vector<8xf32>
    %576 = vector.shape_cast %575 : vector<8xf32> to vector<8x1xf32>
    %577 = vector.broadcast %576 : vector<8x1xf32> to vector<8x8xf32>
    %578 = arith.subf %574, %577 : vector<8x8xf32>
    %579 = math.exp %578 : vector<8x8xf32>
    %cst_172 = arith.constant dense<0.000000e+00> : vector<8xf32>
    %580 = vector.multi_reduction <add>, %579, %cst_172 [1] : vector<8x8xf32> to vector<8xf32>
    %581 = vector.shape_cast %580 : vector<8xf32> to vector<8x1xf32>
    %582 = tpu.reciprocal %581 {approx = true} : vector<8x1xf32> -> vector<8x1xf32>
    %583 = vector.broadcast %582 : vector<8x1xf32> to vector<8x8xf32>
    %584 = arith.mulf %579, %583 : vector<8x8xf32>
    %585 = vector.extract_strided_slice %525 {offsets = [0, 16], sizes = [8, 8], strides = [1, 1]} : vector<8x32xf32> to vector<8x8xf32>
    %586 = arith.truncf %584 : vector<8x8xf32> to vector<8x8xbf16>
    %587 = arith.truncf %585 : vector<8x8xf32> to vector<8x8xbf16>
    %cst_173 = arith.constant dense<0.000000e+00> : vector<8x8xf32>
    %588 = tpu.matmul %586, %587, %cst_173 {dimension_numbers = #tpu.dot_dimension_numbers<[1], [0], [0], [1], [0, 0, 1, 1], [], []>} : vector<8x8xbf16>, vector<8x8xbf16>, vector<8x8xf32> -> vector<8x8xf32>
    %589 = vector.extract_strided_slice %523 {offsets = [0, 24], sizes = [8, 8], strides = [1, 1]} : vector<8x32xf32> to vector<8x8xf32>
    %590 = vector.extract_strided_slice %524 {offsets = [0, 24], sizes = [8, 8], strides = [1, 1]} : vector<8x32xf32> to vector<8x8xf32>
    %591 = arith.truncf %589 : vector<8x8xf32> to vector<8x8xbf16>
    %592 = arith.truncf %590 : vector<8x8xf32> to vector<8x8xbf16>
    %cst_174 = arith.constant dense<0.000000e+00> : vector<8x8xf32>
    %593 = tpu.matmul %591, %592, %cst_174 {dimension_numbers = #tpu.dot_dimension_numbers<[1], [1], [0], [0], [0, 0, 1, 0], [], []>} : vector<8x8xbf16>, vector<8x8xbf16>, vector<8x8xf32> -> vector<8x8xf32>
    %cst_175 = arith.constant 0.353553385 : f32
    %594 = vector.broadcast %cst_175 : f32 to vector<8x8xf32>
    %595 = arith.mulf %593, %594 : vector<8x8xf32>
    %cst_176 = arith.constant dense<0xFF800000> : vector<8xf32>
    %596 = vector.multi_reduction <maximumf>, %595, %cst_176 [1] : vector<8x8xf32> to vector<8xf32>
    %597 = vector.shape_cast %596 : vector<8xf32> to vector<8x1xf32>
    %598 = vector.broadcast %597 : vector<8x1xf32> to vector<8x8xf32>
    %599 = arith.subf %595, %598 : vector<8x8xf32>
    %600 = math.exp %599 : vector<8x8xf32>
    %cst_177 = arith.constant dense<0.000000e+00> : vector<8xf32>
    %601 = vector.multi_reduction <add>, %600, %cst_177 [1] : vector<8x8xf32> to vector<8xf32>
    %602 = vector.shape_cast %601 : vector<8xf32> to vector<8x1xf32>
    %603 = tpu.reciprocal %602 {approx = true} : vector<8x1xf32> -> vector<8x1xf32>
    %604 = vector.broadcast %603 : vector<8x1xf32> to vector<8x8xf32>
    %605 = arith.mulf %600, %604 : vector<8x8xf32>
    %606 = vector.extract_strided_slice %525 {offsets = [0, 24], sizes = [8, 8], strides = [1, 1]} : vector<8x32xf32> to vector<8x8xf32>
    %607 = arith.truncf %605 : vector<8x8xf32> to vector<8x8xbf16>
    %608 = arith.truncf %606 : vector<8x8xf32> to vector<8x8xbf16>
    %cst_178 = arith.constant dense<0.000000e+00> : vector<8x8xf32>
    %609 = tpu.matmul %607, %608, %cst_178 {dimension_numbers = #tpu.dot_dimension_numbers<[1], [0], [0], [1], [0, 0, 1, 1], [], []>} : vector<8x8xbf16>, vector<8x8xbf16>, vector<8x8xf32> -> vector<8x8xf32>
    %610 = tpu.concatenate %546, %567, %588, %609 in 1 : vector<8x8xf32>, vector<8x8xf32>, vector<8x8xf32>, vector<8x8xf32> -> vector<8x32xf32>
    %611 = vector.extract_strided_slice %515 {offsets = [0, 96], sizes = [32, 32], strides = [1, 1]} : vector<32x128xbf16> to vector<32x32xbf16>
    %612 = arith.truncf %610 : vector<8x32xf32> to vector<8x32xbf16>
    %cst_179 = arith.constant dense<0.000000e+00> : vector<8x32xf32>
    %613 = tpu.matmul %612, %611, %cst_179 {dimension_numbers = #tpu.dot_dimension_numbers<[1], [0], [0], [1], [0, 0, 1, 1], [], []>} : vector<8x32xbf16>, vector<32x32xbf16>, vector<8x32xf32> -> vector<8x32xf32>
    %614 = vector.extract_strided_slice %517 {offsets = [0, 96], sizes = [1, 32], strides = [1, 1]} : vector<1x128xf32> to vector<1x32xf32>
    %615 = vector.broadcast %614 : vector<1x32xf32> to vector<8x32xf32>
    %616 = arith.addf %613, %615 : vector<8x32xf32>
    %c1_180 = arith.constant 1 : index
    %c0_181 = arith.constant 0 : index
    %c0_182 = arith.constant 0 : index
    %617 = vector.load %arg11[%c1_180, %c0_181, %c0_182] : memref<2x32x64xbf16, #tpu.memory_space<vmem>>, vector<1x32x64xbf16>
    %618 = vector.shape_cast %617 : vector<1x32x64xbf16> to vector<32x64xbf16>
    %619 = arith.truncf %616 : vector<8x32xf32> to vector<8x32xbf16>
    %cst_183 = arith.constant dense<0.000000e+00> : vector<8x64xf32>
    %620 = tpu.matmul %619, %618, %cst_183 {dimension_numbers = #tpu.dot_dimension_numbers<[1], [0], [0], [1], [0, 0, 1, 1], [], []>} : vector<8x32xbf16>, vector<32x64xbf16>, vector<8x64xf32> -> vector<8x64xf32>
    %c1_184 = arith.constant 1 : index
    %c0_185 = arith.constant 0 : index
    %c0_186 = arith.constant 0 : index
    %621 = vector.load %arg12[%c1_184, %c0_185, %c0_186] : memref<2x1x64xf32, #tpu.memory_space<vmem>>, vector<1x1x64xf32>
    %622 = vector.shape_cast %621 : vector<1x1x64xf32> to vector<1x64xf32>
    %623 = vector.broadcast %622 : vector<1x64xf32> to vector<8x64xf32>
    %624 = arith.addf %620, %623 : vector<8x64xf32>
    %cst_187 = arith.constant 0.000000e+00 : f32
    %625 = vector.broadcast %cst_187 : f32 to vector<8x64xf32>
    %626 = arith.maximumf %624, %625 : vector<8x64xf32>
    %c1_188 = arith.constant 1 : index
    %c0_189 = arith.constant 0 : index
    %c0_190 = arith.constant 0 : index
    %627 = vector.load %arg13[%c1_188, %c0_189, %c0_190] : memref<2x64x32xbf16, #tpu.memory_space<vmem>>, vector<1x64x32xbf16>
    %628 = vector.shape_cast %627 : vector<1x64x32xbf16> to vector<64x32xbf16>
    %629 = arith.truncf %626 : vector<8x64xf32> to vector<8x64xbf16>
    %cst_191 = arith.constant dense<0.000000e+00> : vector<8x32xf32>
    %630 = tpu.matmul %629, %628, %cst_191 {dimension_numbers = #tpu.dot_dimension_numbers<[1], [0], [0], [1], [0, 0, 1, 1], [], []>} : vector<8x64xbf16>, vector<64x32xbf16>, vector<8x32xf32> -> vector<8x32xf32>
    %c1_192 = arith.constant 1 : index
    %c0_193 = arith.constant 0 : index
    %c0_194 = arith.constant 0 : index
    %631 = vector.load %arg14[%c1_192, %c0_193, %c0_194] : memref<2x1x32xf32, #tpu.memory_space<vmem>>, vector<1x1x32xf32>
    %632 = vector.shape_cast %631 : vector<1x1x32xf32> to vector<1x32xf32>
    %633 = vector.broadcast %632 : vector<1x32xf32> to vector<8x32xf32>
    %634 = arith.addf %630, %633 : vector<8x32xf32>
    %c0_195 = arith.constant 0 : index
    %c0_196 = arith.constant 0 : index
    %635 = vector.load %arg15[%c0_195, %c0_196] : memref<32x4xbf16, #tpu.memory_space<vmem>>, vector<32x4xbf16>
    %636 = arith.truncf %634 : vector<8x32xf32> to vector<8x32xbf16>
    %cst_197 = arith.constant dense<0.000000e+00> : vector<8x4xf32>
    %637 = tpu.matmul %636, %635, %cst_197 {dimension_numbers = #tpu.dot_dimension_numbers<[1], [0], [0], [1], [0, 0, 1, 1], [], []>} : vector<8x32xbf16>, vector<32x4xbf16>, vector<8x4xf32> -> vector<8x4xf32>
    %c0_198 = arith.constant 0 : index
    %c0_199 = arith.constant 0 : index
    %638 = vector.load %arg16[%c0_198, %c0_199] : memref<1x4xf32, #tpu.memory_space<vmem>>, vector<1x4xf32>
    %639 = vector.broadcast %638 : vector<1x4xf32> to vector<8x4xf32>
    %640 = arith.addf %637, %639 : vector<8x4xf32>
    %c0_200 = arith.constant 0 : index
    %c0_201 = arith.constant 0 : index
    %c0_202 = arith.constant 0 : index
    %641 = vector.load %arg17[%c0_200, %c0_201, %c0_202] : memref<1x8x4xf32, #tpu.memory_space<vmem>>, vector<1x8x4xf32>
    %642 = vector.shape_cast %641 : vector<1x8x4xf32> to vector<8x4xf32>
    %643 = vector.shape_cast %640 : vector<8x4xf32> to vector<1x8x4xf32>
    tpu.vector_store %arg17[%c0_200, %c0_201, %c0_202], %643 {strides = array<i32>} : memref<1x8x4xf32, #tpu.memory_space<vmem>>, vector<1x8x4xf32>,
    return
  }
  func.func @transform_0(%arg0: i32) -> (i32, i32, i32) {
    %c0_i32 = arith.constant 0 : i32
    %c0_i32_0 = arith.constant 0 : i32
    %c0_i32_1 = arith.constant 0 : i32
    return %arg0, %c0_i32, %c0_i32_0 : i32, i32, i32
  }
  func.func @transform_1(%arg0: i32) -> (i32, i32) {
    %c0_i32 = arith.constant 0 : i32
    %c0_i32_0 = arith.constant 0 : i32
    %c0_i32_1 = arith.constant 0 : i32
    return %c0_i32, %c0_i32_0 : i32, i32
  }
  func.func @transform_2(%arg0: i32) -> (i32, i32, i32) {
    %c0_i32 = arith.constant 0 : i32
    %c0_i32_0 = arith.constant 0 : i32
    %c0_i32_1 = arith.constant 0 : i32
    return %arg0, %c0_i32, %c0_i32_0 : i32, i32, i32
  }
  func.func @transform_3(%arg0: i32) -> (i32, i32, i32) {
    %c0_i32 = arith.constant 0 : i32
    %c0_i32_0 = arith.constant 0 : i32
    %c0_i32_1 = arith.constant 0 : i32
    return %arg0, %c0_i32, %c0_i32_0 : i32, i32, i32
  }
  func.func @transform_4(%arg0: i32) -> (i32, i32) {
    %c0_i32 = arith.constant 0 : i32
    %c0_i32_0 = arith.constant 0 : i32
    %c0_i32_1 = arith.constant 0 : i32
    return %c0_i32, %c0_i32_0 : i32, i32
  }
  func.func @transform_5(%arg0: i32) -> (i32, i32) {
    %c0_i32 = arith.constant 0 : i32
    %c0_i32_0 = arith.constant 0 : i32
    %c0_i32_1 = arith.constant 0 : i32
    return %c0_i32, %c0_i32_0 : i32, i32
  }
  func.func @transform_6(%arg0: i32) -> (i32, i32, i32) {
    %c0_i32 = arith.constant 0 : i32
    %c0_i32_0 = arith.constant 0 : i32
    %c0_i32_1 = arith.constant 0 : i32
    %c0_i32_2 = arith.constant 0 : i32
    return %c0_i32, %c0_i32_0, %c0_i32_1 : i32, i32, i32
  }
  func.func @transform_7(%arg0: i32) -> (i32, i32, i32) {
    %c0_i32 = arith.constant 0 : i32
    %c0_i32_0 = arith.constant 0 : i32
    %c0_i32_1 = arith.constant 0 : i32
    %c0_i32_2 = arith.constant 0 : i32
    return %c0_i32, %c0_i32_0, %c0_i32_1 : i32, i32, i32
  }
  func.func @transform_8(%arg0: i32) -> (i32, i32, i32) {
    %c0_i32 = arith.constant 0 : i32
    %c0_i32_0 = arith.constant 0 : i32
    %c0_i32_1 = arith.constant 0 : i32
    %c0_i32_2 = arith.constant 0 : i32
    return %c0_i32, %c0_i32_0, %c0_i32_1 : i32, i32, i32
  }
  func.func @transform_9(%arg0: i32) -> (i32, i32, i32) {
    %c0_i32 = arith.constant 0 : i32
    %c0_i32_0 = arith.constant 0 : i32
    %c0_i32_1 = arith.constant 0 : i32
    %c0_i32_2 = arith.constant 0 : i32
    return %c0_i32, %c0_i32_0, %c0_i32_1 : i32, i32, i32
  }
  func.func @transform_10(%arg0: i32) -> (i32, i32, i32) {
    %c0_i32 = arith.constant 0 : i32
    %c0_i32_0 = arith.constant 0 : i32
    %c0_i32_1 = arith.constant 0 : i32
    %c0_i32_2 = arith.constant 0 : i32
    return %c0_i32, %c0_i32_0, %c0_i32_1 : i32, i32, i32
  }
  func.func @transform_11(%arg0: i32) -> (i32, i32, i32) {
    %c0_i32 = arith.constant 0 : i32
    %c0_i32_0 = arith.constant 0 : i32
    %c0_i32_1 = arith.constant 0 : i32
    %c0_i32_2 = arith.constant 0 : i32
    return %c0_i32, %c0_i32_0, %c0_i32_1 : i32, i32, i32
  }
  func.func @transform_12(%arg0: i32) -> (i32, i32, i32) {
    %c0_i32 = arith.constant 0 : i32
    %c0_i32_0 = arith.constant 0 : i32
    %c0_i32_1 = arith.constant 0 : i32
    %c0_i32_2 = arith.constant 0 : i32
    return %c0_i32, %c0_i32_0, %c0_i32_1 : i32, i32, i32
  }
  func.func @transform_13(%arg0: i32) -> (i32, i32, i32) {
    %c0_i32 = arith.constant 0 : i32
    %c0_i32_0 = arith.constant 0 : i32
    %c0_i32_1 = arith.constant 0 : i32
    %c0_i32_2 = arith.constant 0 : i32
    return %c0_i32, %c0_i32_0, %c0_i32_1 : i32, i32, i32
  }
  func.func @transform_14(%arg0: i32) -> (i32, i32) {
    %c0_i32 = arith.constant 0 : i32
    %c0_i32_0 = arith.constant 0 : i32
    %c0_i32_1 = arith.constant 0 : i32
    return %c0_i32, %c0_i32_0 : i32, i32
  }
  func.func @transform_15(%arg0: i32) -> (i32, i32) {
    %c0_i32 = arith.constant 0 : i32
    %c0_i32_0 = arith.constant 0 : i32
    %c0_i32_1 = arith.constant 0 : i32
    return %c0_i32, %c0_i32_0 : i32, i32
  }
  func.func @transform_16(%arg0: i32) -> (i32, i32, i32) {
    %c0_i32 = arith.constant 0 : i32
    %c0_i32_0 = arith.constant 0 : i32
    %c0_i32_1 = arith.constant 0 : i32
    return %arg0, %c0_i32, %c0_i32_0 : i32, i32, i32
  }
}

</mosaic_0001>

<bundles_post_ra>
// kernel: autoregressive_decoder_forward.1
= control target key start
LH: loop header
LB: loop body
LE: loop exit
PB: predicated region body
PF: predicated region fallthrough
CT: control target
= control target key end

     0   :  { %s2966_s21 = smov 0   ;;  %s3481_s0 = inlined_call_operand.vmem [shape: f32[2,8,4], index: 0, kind: input, shape index: {}]   ;;  %s3482_s1 = inlined_call_operand.vmem [shape: f32[8,32], index: 1, kind: input, shape index: {}]   ;;  %s3483_s2 = inlined_call_operand.vmem [shape: f32[2,8,32], index: 2, kind: input, shape index: {}]   ;;  %s3484_s3 = inlined_call_operand.vmem [shape: f32[2,8,32], index: 3, kind: input, shape index: {}]   ;;  %s3485_s4 = inlined_call_operand.vmem [shape: bf16[4,32], index: 4, kind: input, shape index: {}]   ;;  %s3486_s5 = inlined_call_operand.vmem [shape: f32[1,32], index: 5, kind: input, shape index: {}]   ;;  %s3487_s6 = inlined_call_operand.vmem [shape: bf16[2,32,128], index: 6, kind: input, shape index: {}]   ;;  %s3488_s7 = inlined_call_operand.vmem [shape: f32[2,1,128], index: 7, kind: input, shape index: {}]   ;;  %s3489_s8 = inlined_call_operand.vmem [shape: bf16[2,32,128], index: 8, kind: input, shape index: {}]   ;;  %s3490_s9 = inlined_call_operand.vmem [shape: f32[2,1,128], index: 9, kind: input, shape index: {}]   ;;  %s3491_s10 = inlined_call_operand.vmem [shape: bf16[2,32,64], index: 10, kind: input, shape index: {}]   ;;  %s3492_s11 = inlined_call_operand.vmem [shape: f32[2,1,64], index: 11, kind: input, shape index: {}]   ;;  %s3493_s12 = inlined_call_operand.vmem [shape: bf16[2,64,32], index: 12, kind: input, shape index: {}]   ;;  %s3494_s13 = inlined_call_operand.vmem [shape: f32[2,1,32], index: 13, kind: input, shape index: {}]   ;;  %s3495_s14 = inlined_call_operand.vmem [shape: bf16[32,4], index: 14, kind: input, shape index: {}]   ;;  %s3496_s15 = inlined_call_operand.vmem [shape: f32[1,4], index: 15, kind: input, shape index: {}]   ;;  %s3497_s16 = inlined_call_operand.vmem [shape: f32[2,8,4], index: 16, kind: output, shape index: {}]  }
   0x1   :  { %3528 = sst [smem:[#allocation2_spill]] %s3481_s0 }
   0x2   :  { %3529 = sst [smem:[#allocation3_spill]] %s3482_s1 }
   0x3   :  { %3530 = sst [smem:[#allocation4_spill]] %s3483_s2 }
   0x4   :  { %3531 = sst [smem:[#allocation5_spill]] %s3484_s3 }
   0x5   :  { %3532 = sst [smem:[#allocation6_spill]] %s3485_s4 }
   0x6   :  { %3533 = sst [smem:[#allocation7_spill]] %s3486_s5 }
   0x7   :  { %3534 = sst [smem:[#allocation8_spill]] %s3487_s6 }
   0x8 LB: > { %s2524_s22 = sadd.s32 4294967295, %s2864_s21   ;;  %p2528_p0 = scmp.ge.s32.totalorder %s2864_s21, 1  ;;  %s2864_s21 = sphi %s2966_s21, %s26_s21  }
   0x9   : > { %p479_p1 = scmp.lt.s32.totalorder %s2864_s21, 3 }
   0xb   : > { %p480_p2 = pnand %p2528_p0, %p479_p1 }
   0xc   : > { %s3535_s4 = sld [smem:[#allocation6_spill]] (!%p480_p2)  ;;  %p535_p3 = scmp.lt.s32.totalorder (!%p480_p2), %s2524_s22, 1 }
   0xd   : > { %483 = sbr.rel (%p480_p2) target bundleno = 6827 (0x1aab), region = 84  ;;  %s3536_s28 = sld [smem:[#allocation2_spill]] (!%p480_p2) }
   0xe   : > { %s3537_s6 = sld [smem:[#allocation8_spill]] (!%p480_p2)  ;;  %s3526_s27 = smov (!%p480_p2), 120  }
   0xf   : > { %s3538_s5 = sld [smem:[#allocation7_spill]] (!%p480_p2)  ;;  %s3510_s30 = smov (!%p480_p2), 56  }
  0x10   : > { %s3539_s1 = sld [smem:[#allocation3_spill]] (!%p480_p2)  ;;  %s3518_s0 = smov (!%p480_p2), 64  }
  0x11   : > { %s3516_s17 = smov (!%p480_p2), 72   ;;  %s3514_s18 = smov (!%p480_p2), 104  }
  0x12   : > { %v553_v0 = vld [vmem:[%s3535_s4] sm:$0x3]  ;;  %vm563_vm0 = vcmask 1041408   ;;  %s3558_s22 = smov (!%p535_p3, %s2524_s22), 1  ;;  %vm559_vm1 = vcmask 31744   ;;  %vm605_vm2 = vcmask 261120  }
  0x13   : > { %v565_v1 = vsel %vm563_vm0, %v553_v0, 0  ;;  %s2977_s25 = sshll.u32 %s3558_s22, 3  ;;  %v3009_v13 = vld [vmem:[%s3488_s7] ss:$0 sm:$0xff]  ;;  %vm627_vm3 = vcmask 64512   ;;  %s3512_s19 = smov 112  }
  0x14   : > { %574 = vmatpush.bf16.msra.mxu0 %v565_v1  ;;  %s538_s29 = scalar_lea.vmem %s3536_s28, %s2977_s25  ;;  %v2987_v4 = vld [vmem:[%s3537_s6 + $0x8] sm:$0xff]  ;;  %v2993_v5 = vld [vmem:[%s3537_s6] sm:$0xff]  ;;  %s3522_s28 = smov 96   ;;  %vm700_vm4 = vcmask 1043456   ;;  %vm1012_vm5 = vcmask 130048   ;;  %vm1014_vm6 = vcmask 195584  }
  0x15   : > { %v552_v2 = vld [vmem:[%s538_s29] sm:$0xff]  ;;  %615 = vmatpush.bf16.msra.mxu1 %v2987_v4  ;;  %s3524_s29 = smov 88   ;;  %s3520_s20 = smov 80   ;;  %vm1480_vm7 = vcmask 523264  }
  0x16   : > { %v554_v3 = vpack.c.bf16 %v552_v2, %v552_v2  ;;  %v2752_v6 = vld [vmem:[%s3538_s5] ss:$0 sm:$0xff]  ;;  %s3498_s22 = smov 48   ;;  %s3506_s23 = smov 40  }
  0x17   : > { %v3002_v8 = vld [vmem:[%s3539_s1] sm:$0xff]  ;;  %s3500_s24 = smov 8   ;;  %s3508_s26 = smov 32  }
  0x18   : > { %2533 = vmatmul.msk.bf16.vlgmr.msra.gmra.mxu0 %vm559_vm1, %v554_v3  ;;  %s3540_s2 = sld [smem:[#allocation4_spill]]  ;;  %s3553_s1 = smov 96  }
  0x19   : > { %616 = vmatpush.bf16.msra.mxu1 %v2993_v5  ;;  %s3541_s3 = sld [smem:[#allocation5_spill]] }
  0x95   : > { %v576_v7 = vpop.f32.mrf.mxu0 }
  0x96   : > { %v577_v9 = vadd.f32 %v2752_v6, %v576_v7 }
  0x98   : > { %v588_v10 = vadd.f32 %v3002_v8, %v577_v9 }
  0x9a   : > { %v589_v11 = vpack.c.bf16 %v577_v9, %v588_v10 }
  0x9c   : > { %2542 = vmatmul.msk.bf16.vlgmr.msra.gmra.mxu1 %vm605_vm2, %v589_v11 }
  0x9d   : > { %v578_v12 = vpop.f32.mrf.mxu0 }
 0x119   : > { %v618_v14 = vpop.f32.mrf.mxu1 }
 0x11a   : > { %v619_v15 = vadd.f32 %v3009_v13, %v618_v14 }
 0x11c   : > { %v3012_v16 = vpack.c.bf16 %v619_v15, %v619_v15 }
 0x11e   : > { %717 = vrot.lane.b32.xlu1 %v3012_v16, %s3526_s27  ;;  %625 = vrot.lane.b32.xlu0 %v3012_v16, %s3522_s28 }
 0x121   : > { %v620_v22 = vpop.f32.mrf.mxu1 }
 0x122   : > { %v621_v31 = vadd.f32 %v3009_v13, %v620_v22 }
 0x124   : > { %v659_v32 = vpack.c.bf16 %v621_v31, %v621_v31 }
 0x126   : > { %719 = vrot.lane.b32.xlu0 %v3012_v16, %s3524_s29 }
 0x12e   : > { %790 = vrot.lane.b32.xlu0 %v3012_v16, %s3510_s30  ;;  %s542_s30 = scalar_lea.vmem %s3540_s2, %s2977_s25  ;;  %s3554_s2 = smov 80  }
 0x190   : > { %v626_v17 = vpop.permute.xlu0 %625  ;;  %v718_v21 = vpop.permute.xlu1 %717 }
 0x191   : > { %v632_v18 = vsel %vm627_vm3, %v626_v17, 0 }
 0x192   : > { %641 = vmatpush.bf16.xpose.msra.mxu2 %v632_v18 }
 0x198   : > { %v720_v19 = vpop.permute.xlu0 %719 }
 0x199   : > { %2543 = vmatmul.msk.bf16.vlgmr.msra.gmra.mxu2 %vm627_vm3, %v3012_v16  ;;  %v725_v20 = vsel %vm627_vm3, %v720_v19, 0 }
 0x19a   : > { %734 = vmatpush.bf16.xpose.msrb.mxu1 %v725_v20 }
 0x1a0   : > { %v791_v39 = vpop.permute.xlu0 %790 }
 0x1a1   : > { %2546 = vmatmul.msk.bf16.vlgmr.msrb.gmra.mxu1 %vm627_vm3, %v718_v21  ;;  %v796_v44 = vsel %vm700_vm4, %v791_v39, 0 }
 0x21c   : > { %v643_v23 = vpop.f32.mrf.mxu2 }
 0x21d   : > { %v647_v24 = vmul.f32 0.35355338, %v643_v23 }
 0x21e   : > { %v736_v25 = vpop.f32.mrf.mxu1 }
 0x21f   : > { %v740_v26 = vmul.f32 0.35355338, %v736_v25  ;;  %v648_v27 = vsel %vm627_vm3, %v647_v24, -inf }
 0x220   : > { %649 = vmax.xlane.f32.xlu1 %v648_v27 }
 0x221   : > { %v741_v28 = vsel %vm627_vm3, %v740_v26, -inf }
 0x222   : > { %742 = vmax.xlane.f32.xlu2 %v741_v28 }
 0x224   : > { %v645_v29 = vpop.f32.mrf.mxu2 }
 0x226   : > { %v738_v30 = vpop.f32.mrf.mxu1 }
 0x239   : > { %695 = vrot.lane.b32.xlu1 %v3012_v16, %s3518_s0 }
 0x23a   : > { %661 = vrot.lane.b32.xlu2 %v659_v32, %s3522_s28 }
 0x241   : > { %907 = vrot.lane.b32.xlu1 %v3012_v16, %s3516_s17 }
 0x249   : > { %905 = vrot.lane.b32.xlu1 %v3012_v16, %s3514_s18 }
 0x251   : > { %752 = vrot.lane.b32.xlu1 %v659_v32, %s3526_s27 }
 0x259   : > { %846 = vrot.lane.b32.xlu1 %v659_v32, %s3512_s19 }
 0x293   : > { %v650_v33 = vpop.xlane.xlu1 %649 }
 0x294   : > { %v651_v34 = vsub.f32 %v647_v24, %v650_v33 }
 0x295   : > { %v743_v35 = vpop.xlane.xlu2 %742 }
 0x296   : > { %v652_v36 = vmul.f32 1.442695, %v651_v34  ;;  %v744_v37 = vsub.f32 %v740_v26, %v743_v35 }
 0x298   : > { %2762 = vpow2.f32 %v652_v36  ;;  %v745_v38 = vmul.f32 1.442695, %v744_v37 }
 0x29a   : > { %2764 = vpow2.f32 %v745_v38 }
 0x29d   : > { %v662_v40 = vpop.permute.xlu2 %661 }
 0x29e   : > { %v2763_v41 = vpop.eup %2762  ;;  %v667_v42 = vsel %vm627_vm3, %v662_v40, 0 }
 0x29f   : > { %676 = vmatpush.bf16.xpose.msra.mxu3 %v667_v42  ;;  %v654_v43 = vsel %vm627_vm3, %v2763_v41, 0.0 }
 0x2a0   : > { %v2765_v45 = vpop.eup %2764  ;;  %655 = vadd.xlane.f32.xlu0 %v654_v43 }
 0x2a1   : > { %v747_v46 = vsel %vm627_vm3, %v2765_v45, 0.0 }
 0x2a2   : > { %748 = vadd.xlane.f32.xlu2 %v747_v46 }
 0x2a6   : > { %2544 = vmatmul.msk.bf16.vlgmr.msra.gmra.mxu3 %vm627_vm3, %v659_v32 }
 0x2a7   : > { %805 = vmatpush.bf16.msrb.mxu3 %v796_v44 }
 0x2ab   : > { %v696_v47 = vpop.permute.xlu1 %695 }
 0x2ac   : > { %v702_v48 = vsel %vm700_vm4, %v696_v47, 0 }
 0x2ad   : > { %711 = vmatpush.bf16.msrb.mxu0 %v702_v48 }
 0x2b3   : > { %v908_v49 = vpop.permute.xlu1 %907 }
 0x2b4   : > { %v913_v50 = vsel %vm627_vm3, %v908_v49, 0  ;;  %811 = vrot.lane.b32.xlu0 %v3012_v16, %s3512_s19  ;;  %s3543_s19 = smov 112  }
 0x2b5   : > { %922 = vmatpush.bf16.xpose.msra.mxu3 %v913_v50 }
 0x2ba   : > { %813 = vrot.lane.b32.xlu2 %v3012_v16, %s3520_s20 }
 0x2bb   : > { %v906_v2 = vpop.permute.xlu1 %905 }
 0x2bc   : > { %754 = vrot.lane.b32.xlu0 %v659_v32, %s3524_s29 }
 0x2c2   : > { %942 = vrot.lane.b32.xlu2 %v659_v32, %s3516_s17 }
 0x2c3   : > { %v753_v9 = vpop.permute.xlu1 %752 }
 0x2c4   : > { %848 = vrot.lane.b32.xlu0 %v659_v32, %s3520_s20 }
 0x2ca   : > { %940 = vrot.lane.b32.xlu2 %v659_v32, %s3514_s18  ;;  %s3542_s18 = smov 104  }
 0x2cb   : > { %v847_v12 = vpop.permute.xlu1 %846 }
 0x313   : > { %v656_v51 = vpop.xlane.xlu0 %655 }
 0x314   : > { %2766 = vrcp.f32 %v656_v51 }
 0x315   : > { %v749_v52 = vpop.xlane.xlu2 %748 }
 0x316   : > { %2768 = vrcp.f32 %v749_v52 }
 0x31a   : > { %v2767_v53 = vpop.eup %2766 }
 0x31b   : > { %v658_v54 = vmul.f32 %v2767_v53, %v2763_v41 }
 0x31c   : > { %v2769_v55 = vpop.eup %2768 }
 0x31d   : > { %v751_v56 = vmul.f32 %v2769_v55, %v2765_v45  ;;  %v814_v57 = vpop.permute.xlu2 %813  ;;  %v694_v58 = vpack.c.bf16 %v658_v54, %v658_v54 }
 0x31e   : > { %v819_v59 = vsel %vm627_vm3, %v814_v57, 0 }
 0x31f   : > { %v3055_v60 = vadd.f32 %v751_v56, %v658_v54  ;;  %2545 = vmatmul.msk.bf16.vlgmr.msrb.gmra.mxu0 %vm627_vm3, %v694_v58  ;;  %v789_v61 = vpack.c.bf16 %v751_v56, %v751_v56 }
 0x320   : > { %828 = vmatpush.bf16.xpose.msra.mxu0 %v819_v59 }
 0x321   : > { %2548 = vmatmul.msk.bf16.vlgmr.msrb.gmra.mxu3 %vm627_vm3, %v789_v61 }
 0x325   : > { %v943_v62 = vpop.permute.xlu2 %942 }
 0x326   : > { %v948_v63 = vsel %vm627_vm3, %v943_v62, 0  ;;  %v812_v0 = vpop.permute.xlu0 %811 }
 0x328   : > { %957 = vmatpush.bf16.xpose.msrb.mxu0 %v948_v63 }
 0x329   : > { %v678_v1 = vpop.f32.mrf.mxu3 }
 0x32a   : > { %v682_v42 = vmul.f32 0.35355338, %v678_v1 }
 0x32c   : > { %v683_v45 = vsel %vm627_vm3, %v682_v42, -inf }
 0x32d   : > { %v941_v14 = vpop.permute.xlu2 %940 }
 0x32e   : > { %v755_v3 = vpop.permute.xlu0 %754 }
 0x32f   : > { %2549 = vmatmul.msk.bf16.vlgmr.msra.gmra.mxu0 %vm627_vm3, %v812_v0  ;;  %v760_v6 = vsel %vm627_vm3, %v755_v3, 0 }
 0x330   : > { %769 = vmatpush.bf16.xpose.msrb.mxu2 %v760_v6 }
 0x331   : > { %v680_v7 = vpop.f32.mrf.mxu3  ;;  %2552 = vmatmul.msk.bf16.vlgmr.msra.gmra.mxu3 %vm627_vm3, %v906_v2 }
 0x336   : > { %v849_v10 = vpop.permute.xlu0 %848 }
 0x337   : > { %v854_v11 = vsel %vm627_vm3, %v849_v10, 0  ;;  %2547 = vmatmul.msk.bf16.vlgmr.msrb.gmra.mxu2 %vm627_vm3, %v753_v9 }
 0x338   : > { %863 = vmatpush.bf16.xpose.msra.mxu1 %v854_v11 }
 0x33f   : > { %2550 = vmatmul.msk.bf16.vlgmr.msra.gmra.mxu1 %vm627_vm3, %v847_v12  ;;  %2553 = vmatmul.msk.bf16.vlgmr.msrb.gmra.mxu0 %vm627_vm3, %v941_v14 }
 0x39c   : > { %v3067_v15 = vpop.f32.mrf.mxu0 }
 0x3a4   : > { %v715_v17 = vpop.f32.mrf.mxu0  ;;  %v807_v18 = vpop.f32.mrf.mxu3 }
 0x3ac   : > { %v809_v19 = vpop.f32.mrf.mxu3  ;;  %v830_v20 = vpop.f32.mrf.mxu0 }
 0x3ad   : > { %v834_v21 = vmul.f32 0.35355338, %v830_v20 }
 0x3af   : > { %v835_v22 = vsel %vm627_vm3, %v834_v21, -inf }
 0x3b0   : > { %836 = vmax.xlane.f32.xlu0 %v835_v22 }
 0x3b4   : > { %v832_v23 = vpop.f32.mrf.mxu0  ;;  %v924_v24 = vpop.f32.mrf.mxu3 }
 0x3b5   : > { %v928_v25 = vmul.f32 0.35355338, %v924_v24 }
 0x3b7   : > { %v929_v26 = vsel %vm627_vm3, %v928_v25, -inf }
 0x3b8   : > { %930 = vmax.xlane.f32.xlu1 %v929_v26 }
 0x3ba   : > { %v771_v27 = vpop.f32.mrf.mxu2 }
 0x3bb   : > { %v775_v46 = vmul.f32 0.35355338, %v771_v27 }
 0x3bc   : > { %v865_v28 = vpop.f32.mrf.mxu1  ;;  %v926_v29 = vpop.f32.mrf.mxu3 }
 0x3bd   : > { %v959_v30 = vpop.f32.mrf.mxu0  ;;  %v776_v47 = vsel %vm627_vm3, %v775_v46, -inf  ;;  %v869_v48 = vmul.f32 0.35355338, %v865_v28 }
 0x3be   : > { %v963_v52 = vmul.f32 0.35355338, %v959_v30 }
 0x3bf   : > { %v870_v51 = vsel %vm627_vm3, %v869_v48, -inf }
 0x3c0   : > { %v964_v53 = vsel %vm627_vm3, %v963_v52, -inf }
 0x3c2   : > { %v773_v31 = vpop.f32.mrf.mxu2 }
 0x3c4   : > { %v867_v32 = vpop.f32.mrf.mxu1 }
 0x3c5   : > { %v961_v33 = vpop.f32.mrf.mxu0 }
 0x3d1   : > { %884 = vrot.lane.b32.xlu1 %v3012_v16, %s3498_s22  ;;  %s3502_s22 = smov 16  }
 0x423   : > { %v837_v34 = vpop.xlane.xlu0 %836 }
 0x424   : > { %v838_v35 = vsub.f32 %v834_v21, %v837_v34 }
 0x426   : > { %v839_v36 = vmul.f32 1.442695, %v838_v35 }
 0x428   : > { %2770 = vpow2.f32 %v839_v36 }
 0x42b   : > { %v931_v37 = vpop.xlane.xlu1 %930 }
 0x42c   : > { %v932_v38 = vsub.f32 %v928_v25, %v931_v37 }
 0x42e   : > { %v2771_v39 = vpop.eup %2770  ;;  %v933_v40 = vmul.f32 1.442695, %v932_v38 }
 0x42f   : > { %v841_v41 = vsel %vm627_vm3, %v2771_v39, 0.0 }
 0x430   : > { %2772 = vpow2.f32 %v933_v40  ;;  %842 = vadd.xlane.f32.xlu2 %v841_v41 }
 0x436   : > { %v2773_v43 = vpop.eup %2772 }
 0x437   : > { %v935_v44 = vsel %vm627_vm3, %v2773_v43, 0.0 }
 0x438   : > { %936 = vadd.xlane.f32.xlu0 %v935_v44  ;;  %684 = vmax.xlane.f32.xlu2 %v683_v45 }
 0x440   : > { %777 = vmax.xlane.f32.xlu2 %v776_v47 }
 0x443   : > { %v885_v49 = vpop.permute.xlu1 %884 }
 0x444   : > { %v890_v50 = vsel %vm700_vm4, %v885_v49, 0 }
 0x445   : > { %899 = vmatpush.bf16.msra.mxu2 %v890_v50 }
 0x448   : > { %871 = vmax.xlane.f32.xlu2 %v870_v51 }
 0x44c   : > { %978 = vrot.lane.b32.xlu0 %v3012_v16, %s3506_s23  ;;  %s3547_s23 = smov 8  }
 0x476   : > { %965 = vmax.xlane.f32.xlu0 %v964_v53 }
 0x48a   : > { %1000 = vrot.lane.b32.xlu0 %v807_v18, %s3500_s24  ;;  %s3504_s24 = smov 24  }
 0x492   : > { %1017 = vrot.lane.b32.xlu0 %v2993_v5, %s3508_s26 }
 0x4a3   : > { %v843_v54 = vpop.xlane.xlu2 %842 }
 0x4a4   : > { %2774 = vrcp.f32 %v843_v54 }
 0x4aa   : > { %v2775_v55 = vpop.eup %2774 }
 0x4ab   : > { %v845_v56 = vmul.f32 %v2775_v55, %v2771_v39  ;;  %v685_v57 = vpop.xlane.xlu2 %684  ;;  %v937_v58 = vpop.xlane.xlu0 %936 }
 0x4ac   : > { %v686_v59 = vsub.f32 %v682_v42, %v685_v57  ;;  %2776 = vrcp.f32 %v937_v58  ;;  %v3112_v57 = vld [vmem:[%s3489_s8 + $0x8] sm:$0xff] }
 0x4ad   : > { %v881_v16 = vadd.f32 %v845_v56, %v3055_v60  ;;  %v883_v61 = vpack.c.bf16 %v845_v56, %v845_v56 }
 0x4ae   : > { %v687_v62 = vmul.f32 1.442695, %v686_v59 }
 0x4af   : > { %2551 = vmatmul.msk.bf16.vlgmr.msra.gmra.mxu2 %vm627_vm3, %v883_v61 }
 0x4b0   : > { %2778 = vpow2.f32 %v687_v62 }
 0x4b2   : > { %v2777_v63 = vpop.eup %2776 }
 0x4b3   : > { %v939_v0 = vmul.f32 %v2777_v63, %v2773_v43  ;;  %v778_v1 = vpop.xlane.xlu2 %777 }
 0x4b4   : > { %v779_v2 = vsub.f32 %v775_v46, %v778_v1 }
 0x4b5   : > { %v3087_v5 = vadd.f32 %v939_v0, %v881_v16  ;;  %v977_v18 = vpack.c.bf16 %v939_v0, %v939_v0 }
 0x4b6   : > { %v2779_v3 = vpop.eup %2778  ;;  %v780_v6 = vmul.f32 1.442695, %v779_v2  ;;  %v3120_v2 = vld [vmem:[%s3489_s8] sm:$0xff] }
 0x4b7   : > { %v689_v7 = vsel %vm627_vm3, %v2779_v3, 0.0  ;;  %v1042_v49 = vmul.f32 0.25, %v3087_v5  ;;  %v3127_v5 = vld [vmem:[%s542_s30] sm:$0xff]  ;;  %s3548_s30 = smov 48  }
 0x4b8   : > { %2780 = vpow2.f32 %v780_v6  ;;  %690 = vadd.xlane.f32.xlu1 %v689_v7 }
 0x4b9   : > { %v1044_v50 = vpack.c.bf16 %v1042_v49, %v1042_v49 }
 0x4bb   : > { %v872_v9 = vpop.xlane.xlu2 %871 }
 0x4bc   : > { %v873_v10 = vsub.f32 %v869_v48, %v872_v9 }
 0x4be   : > { %v2781_v60 = vpop.eup %2780  ;;  %v874_v11 = vmul.f32 1.442695, %v873_v10  ;;  %v979_v12 = vpop.permute.xlu0 %978 }
 0x4bf   : > { %v984_v14 = vsel %vm700_vm4, %v979_v12, 0  ;;  %v782_v17 = vsel %vm627_vm3, %v2781_v60, 0.0 }
 0x4c0   : > { %2782 = vpow2.f32 %v874_v11  ;;  %783 = vadd.xlane.f32.xlu2 %v782_v17  ;;  %993 = vmatpush.bf16.msrb.mxu1 %v984_v14  ;;  %v3142_v11 = vld [vmem:[%s3490_s9] ss:$0 sm:$0xff] }
 0x4c3   : > { %2554 = vmatmul.msk.bf16.vlgmr.msrb.gmra.mxu1 %vm627_vm3, %v977_v18 }
 0x4c4   : > { %1120 = vmatpush.bf16.msra.mxu1 %v3112_v57 }
 0x4c6   : > { %v2783_v19 = vpop.eup %2782 }
 0x4c7   : > { %v876_v20 = vsel %vm627_vm3, %v2783_v19, 0.0 }
 0x4c8   : > { %877 = vadd.xlane.f32.xlu2 %v876_v20  ;;  %1121 = vmatpush.bf16.msra.mxu1 %v3120_v2 }
 0x4e0   : > { %1019 = vrot.lane.b32.xlu2 %v2987_v4, %s3508_s26 }
 0x4e9   : > { %v966_v21 = vpop.xlane.xlu0 %965 }
 0x4ea   : > { %v967_v22 = vsub.f32 %v963_v52, %v966_v21 }
 0x4ec   : > { %v968_v23 = vmul.f32 1.442695, %v967_v22 }
 0x4ee   : > { %2784 = vpow2.f32 %v968_v23 }
 0x4f4   : > { %v2785_v24 = vpop.eup %2784 }
 0x4f5   : > { %v970_v25 = vsel %vm627_vm3, %v2785_v24, 0.0 }
 0x4fc   : > { %v1001_v38 = vpop.permute.xlu0 %1000 }
 0x4fd   : > { %v1011_v51 = vsel %vm627_vm3, %v3067_v15, %v1001_v38 }
 0x504   : > { %v1018_v46 = vpop.permute.xlu0 %1017 }
 0x509   : > { %971 = vadd.xlane.f32.xlu2 %v970_v25 }
 0x52b   : > { %v691_v32 = vpop.xlane.xlu1 %690 }
 0x532   : > { %v901_v26 = vpop.f32.mrf.mxu2 }
 0x533   : > { %1004 = vrot.lane.b32.xlu1 %v901_v26, %s3502_s22  ;;  %v784_v27 = vpop.xlane.xlu2 %783  ;;  %s546_s22 = scalar_lea.vmem %s3541_s3, %s2977_s25 }
 0x534   : > { %2786 = vrcp.f32 %v784_v27  ;;  %v582_v9 = vld [vmem:[%s546_s22] sm:$0xff]  ;;  %s3546_s22 = smov 40  }
 0x535   : > { %2788 = vrcp.f32 %v691_v32  ;;  %v3135_v10 = vpack.c.bf16 %v582_v9, %v582_v9 }
 0x53a   : > { %v903_v28 = vpop.f32.mrf.mxu2  ;;  %v2787_v33 = vpop.eup %2786 }
 0x53b   : > { %v878_v29 = vpop.xlane.xlu2 %877  ;;  %v2789_v34 = vpop.eup %2788  ;;  %v786_v37 = vmul.f32 %v2787_v33, %v2781_v60 }
 0x53c   : > { %2790 = vrcp.f32 %v878_v29  ;;  %v693_v39 = vmul.f32 %v2789_v34, %v2779_v3 }
 0x53e   : > { %v788_v41 = vadd.f32 %v786_v37, %v693_v39 }
 0x540   : > { %v995_v30 = vpop.f32.mrf.mxu1 }
 0x541   : > { %1008 = vrot.lane.b32.xlu2 %v995_v30, %s3504_s24  ;;  %s3545_s24 = smov 32  }
 0x542   : > { %v2791_v36 = vpop.eup %2790 }
 0x543   : > { %v1020_v4 = vpop.permute.xlu2 %1019  ;;  %v880_v40 = vmul.f32 %v2791_v36, %v2783_v19 }
 0x544   : > { %1035 = vmatpush.bf16.msrb.mxu2 %v1020_v4 }
 0x545   : > { %v882_v44 = vadd.f32 %v880_v40, %v788_v41 }
 0x548   : > { %v997_v31 = vpop.f32.mrf.mxu1  ;;  %1036 = vmatpush.bf16.msrb.mxu2 %v1018_v46 }
 0x549   : > { %1023 = vrot.lane.b32.xlu2 %v3009_v13, %s3508_s26  ;;  %s3544_s26 = smov 56  }
 0x57c   : > { %v972_v35 = vpop.xlane.xlu2 %971 }
 0x57d   : > { %2792 = vrcp.f32 %v972_v35 }
 0x583   : > { %v2793_v42 = vpop.eup %2792 }
 0x584   : > { %v974_v43 = vmul.f32 %v2793_v42, %v2785_v24 }
 0x586   : > { %v976_v45 = vadd.f32 %v974_v43, %v882_v44 }
 0x588   : > { %v1043_v13 = vmul.f32 0.25, %v976_v45 }
 0x58a   : > { %v1045_v47 = vpack.c.bf16 %v1043_v13, %v1043_v13 }
 0x58c   : > { %v1050_v48 = vsel %vm627_vm3, %v1045_v47, 0 }
 0x58d   : > { %1059 = vmatpush.bf16.xpose.msrb.mxu3 %v1050_v48 }
 0x594   : > { %2556 = vmatmul.msk.bf16.vlgmr.msrb.gmra.mxu3 %vm627_vm3, %v1044_v50 }
 0x59b   : > { %v1009_v53 = vpop.permute.xlu2 %1008 }
 0x5a3   : > { %v1024_v15 = vpop.permute.xlu2 %1023 }
 0x5a5   : > { %v1005_v52 = vpop.permute.xlu1 %1004 }
 0x5a6   : > { %v1013_v54 = vsel %vm1012_vm5, %v1011_v51, %v1005_v52 }
 0x5a7   : > { %v1015_v55 = vsel %vm1014_vm6, %v1013_v54, %v1009_v53 }
 0x5a8   : > { %v1016_v56 = vpack.c.bf16 %v1015_v55, %v1015_v55 }
 0x5aa   : > { %2555 = vmatmul.msk.bf16.vlgmr.msrb.gmra.mxu2 %vm605_vm2, %v1016_v56 }
 0x617   : > { %v1061_v58 = vpop.f32.mrf.mxu3 }
 0x618   : > { %v1065_v0 = vpack.c.bf16 %v1061_v58, %v1061_v58 }
 0x61f   : > { %v1063_v59 = vpop.f32.mrf.mxu3 }
 0x62d   : > { %v1038_v16 = vpop.f32.mrf.mxu2 }
 0x62e   : > { %v1039_v61 = vadd.f32 %v1038_v16, %v1024_v15 }
 0x630   : > { %v1066_v62 = vpack.c.bf16 %v1039_v61, %v1039_v61 }
 0x632   : > { %v1071_v63 = vsel %vm700_vm4, %v1066_v62, 0 }
 0x633   : > { %1080 = vmatpush.bf16.msra.mxu0 %v1071_v63 }
 0x635   : > { %v1040_v1 = vpop.f32.mrf.mxu2 }
 0x636   : > { %2557 = vmatmul.msk.bf16.vlgmr.msra.gmra.mxu0 %vm627_vm3, %v1065_v0 }
 0x6b3   : > { %v1082_v3 = vpop.f32.mrf.mxu0 }
 0x6b4   : > { %v1091_v6 = vpack.c.bf16 %v3127_v5, %v1082_v3 }
 0x6b6   : > { %2566 = vmatmul.msk.bf16.vlgmr.msra.gmra.mxu1 %vm605_vm2, %v1091_v6 }
 0x6bb   : > { %v1084_v7 = vpop.f32.mrf.mxu0 }
 0x6c6   : > { %2567 = vmatmul.msk.bf16.gmra.mxu1 %vm605_vm2, %v3135_v10 }
 0x733   : > { %v1123_v60 = vpop.f32.mrf.mxu1 }
 0x734   : > { %v1124_v22 = vadd.f32 %v3142_v11, %v1123_v60 }
 0x736   : > { %v1132_v23 = vpack.c.bf16 %v1124_v22, %v1124_v22 }
 0x73b   : > { %v1125_v12 = vpop.f32.mrf.mxu1 }
 0x73c   : > { %v1126_v14 = vadd.f32 %v3142_v11, %v1125_v12 }
 0x73e   : > { %v1133_v17 = vpack.c.bf16 %v1126_v14, %v1126_v14 }
 0x740   : > { %1135 = vrot.lane.b32.xlu1 %v1133_v17, %s3522_s28  ;;  %s3551_s28 = smov 120  }
 0x743   : > { %v1128_v18 = vpop.f32.mrf.mxu1 }
 0x744   : > { %v1129_v19 = vadd.f32 %v3142_v11, %v1128_v18 }
 0x746   : > { %v3148_v21 = vpack.c.bf16 %v1129_v19, %v1129_v19 }
 0x748   : > { %1195 = vrot.lane.b32.xlu1 %v1133_v17, %s3524_s29  ;;  %s3556_s29 = smov 72  }
 0x74b   : > { %v1130_v20 = vpop.f32.mrf.mxu1 }
 0x750   : > { %1171 = vrot.lane.b32.xlu1 %v3148_v21, %s3518_s0  ;;  %s3550_s0 = smov 16  }
 0x758   : > { %1193 = vrot.lane.b32.xlu1 %v1132_v23, %s3526_s27  ;;  %s3555_s27 = smov 64  }
 0x760   : > { %1252 = vrot.lane.b32.xlu1 %v1133_v17, %s3520_s20  ;;  %s3552_s20 = smov 88  }
 0x768   : > { %1309 = vrot.lane.b32.xlu1 %v1133_v17, %s3516_s17  ;;  %s3549_s17 = smov 24  }
 0x7b2   : > { %v1136_v24 = vpop.permute.xlu1 %1135 }
 0x7b3   : > { %v1141_v25 = vsel %vm627_vm3, %v1136_v24, 0 }
 0x7b4   : > { %1150 = vmatpush.bf16.xpose.msra.mxu2 %v1141_v25 }
 0x7ba   : > { %v1196_v26 = vpop.permute.xlu1 %1195 }
 0x7bb   : > { %v1201_v27 = vsel %vm627_vm3, %v1196_v26, 0  ;;  %2568 = vmatmul.msk.bf16.vlgmr.msra.gmra.mxu2 %vm627_vm3, %v1132_v23 }
 0x7bc   : > { %1210 = vmatpush.bf16.xpose.msrb.mxu0 %v1201_v27 }
 0x7c2   : > { %v1172_v28 = vpop.permute.xlu1 %1171 }
 0x7c3   : > { %v1177_v29 = vsel %vm700_vm4, %v1172_v28, 0 }
 0x7c4   : > { %1186 = vmatpush.bf16.msra.mxu3 %v1177_v29 }
 0x7ca   : > { %v1194_v30 = vpop.permute.xlu1 %1193 }
 0x7cb   : > { %2570 = vmatmul.msk.bf16.vlgmr.msrb.gmra.mxu0 %vm627_vm3, %v1194_v30 }
 0x7d2   : > { %v1253_v4 = vpop.permute.xlu1 %1252 }
 0x7d3   : > { %v1258_v31 = vsel %vm627_vm3, %v1253_v4, 0 }
 0x7d4   : > { %1267 = vmatpush.bf16.xpose.msrb.mxu3 %v1258_v31 }
 0x7da   : > { %v1310_v32 = vpop.permute.xlu1 %1309 }
 0x7db   : > { %v1315_v33 = vsel %vm627_vm3, %v1310_v32, 0 }
 0x7dc   : > { %1324 = vmatpush.bf16.xpose.msrb.mxu1 %v1315_v33 }
 0x83e   : > { %v1152_v34 = vpop.f32.mrf.mxu2 }
 0x83f   : > { %v1156_v35 = vmul.f32 0.35355338, %v1152_v34 }
 0x841   : > { %v1157_v36 = vsel %vm627_vm3, %v1156_v35, -inf }
 0x842   : > { %1158 = vmax.xlane.f32.xlu0 %v1157_v36 }
 0x846   : > { %v1154_v37 = vpop.f32.mrf.mxu2 }
 0x848   : > { %v1212_v38 = vpop.f32.mrf.mxu0 }
 0x849   : > { %v1216_v39 = vmul.f32 0.35355338, %v1212_v38 }
 0x84b   : > { %v1217_v40 = vsel %vm627_vm3, %v1216_v39, -inf }
 0x84c   : > { %1218 = vmax.xlane.f32.xlu1 %v1217_v40 }
 0x850   : > { %v1214_v41 = vpop.f32.mrf.mxu0 }
 0x856   : > { %1307 = vrot.lane.b32.xlu0 %v1132_v23, %s3542_s18 }
 0x8b5   : > { %v1159_v42 = vpop.xlane.xlu0 %1158 }
 0x8b6   : > { %v1160_v43 = vsub.f32 %v1156_v35, %v1159_v42 }
 0x8b8   : > { %v1161_v44 = vmul.f32 1.442695, %v1160_v43 }
 0x8ba   : > { %2794 = vpow2.f32 %v1161_v44  ;;  %v2712_v44 = vld [vmem:[%s3491_s10 + $0x8] sm:$0xff] }
 0x8bf   : > { %v1219_v45 = vpop.xlane.xlu1 %1218 }
 0x8c0   : > { %v2795_v46 = vpop.eup %2794  ;;  %v1220_v13 = vsub.f32 %v1216_v39, %v1219_v45 }
 0x8c1   : > { %v1163_v47 = vsel %vm627_vm3, %v2795_v46, 0.0 }
 0x8c2   : > { %v1221_v48 = vmul.f32 1.442695, %v1220_v13  ;;  %1164 = vadd.xlane.f32.xlu2 %v1163_v47 }
 0x8c4   : > { %2796 = vpow2.f32 %v1221_v48 }
 0x8c8   : > { %v1308_v49 = vpop.permute.xlu0 %1307 }
 0x8c9   : > { %2574 = vmatmul.msk.bf16.vlgmr.msrb.gmra.mxu1 %vm627_vm3, %v1308_v49 }
 0x8ca   : > { %v2797_v50 = vpop.eup %2796 }
 0x8cb   : > { %v1223_v51 = vsel %vm627_vm3, %v2797_v50, 0.0 }
 0x8cc   : > { %1224 = vadd.xlane.f32.xlu1 %v1223_v51  ;;  %v2716_v51 = vld [vmem:[%s3493_s12 + $0x18] sm:$0xff] }
 0x8cd   : > { %1488 = vmatpush.bf16.msra.mxu1 %v2716_v51 }
 0x8da   : > { %1250 = vrot.lane.b32.xlu2 %v1132_v23, %s3543_s19 }
 0x8e5   : > { %1229 = vrot.lane.b32.xlu1 %v3148_v21, %s3544_s26 }
 0x8ed   : > { %1382 = vrot.lane.b32.xlu1 %v3112_v57, %s3545_s24 }
 0x935   : > { %v1165_v52 = vpop.xlane.xlu2 %1164 }
 0x936   : > { %2798 = vrcp.f32 %v1165_v52  ;;  %v2715_v52 = vld [vmem:[%s3493_s12 + $0x10] sm:$0xff] }
 0x937   : > { %1489 = vmatpush.bf16.msra.mxu1 %v2715_v52 }
 0x93c   : > { %v2799_v53 = vpop.eup %2798 }
 0x93d   : > { %v1167_v54 = vmul.f32 %v2799_v53, %v2795_v46  ;;  %v1251_v61 = vpop.permute.xlu2 %1250 }
 0x93f   : > { %v1168_v55 = vpack.c.bf16 %v1167_v54, %v1167_v54  ;;  %v1225_v15 = vpop.xlane.xlu1 %1224 }
 0x940   : > { %2800 = vrcp.f32 %v1225_v15  ;;  %v2713_v15 = vld [vmem:[%s3493_s12] sm:$0xff] }
 0x941   : > { %2569 = vmatmul.msk.bf16.vlgmr.msra.gmra.mxu3 %vm627_vm3, %v1168_v55 }
 0x946   : > { %v1326_v56 = vpop.f32.mrf.mxu1  ;;  %v2801_v62 = vpop.eup %2800 }
 0x947   : > { %v1330_v58 = vmul.f32 0.35355338, %v1326_v56  ;;  %v1227_v57 = vmul.f32 %v2801_v62, %v2797_v50 }
 0x949   : > { %v1331_v59 = vsel %vm627_vm3, %v1330_v58, -inf  ;;  %v1228_v1 = vpack.c.bf16 %v1227_v57, %v1227_v57 }
 0x94a   : > { %1332 = vmax.xlane.f32.xlu0 %v1331_v59  ;;  %v2714_v59 = vld [vmem:[%s3493_s12 + $0x8] sm:$0xff] }
 0x94b   : > { %1490 = vmatpush.bf16.msra.mxu1 %v2714_v59 }
 0x94e   : > { %v1328_v16 = vpop.f32.mrf.mxu1 }
 0x94f   : > { %1491 = vmatpush.bf16.msra.mxu1 %v2713_v15  ;;  %v2755_v16 = vld [vmem:[%s3492_s11] ss:$0 sm:$0xff] }
 0x951   : > { %2572 = vmatmul.msk.bf16.vlgmr.msrb.gmra.mxu3 %vm627_vm3, %v1251_v61 }
 0x957   : > { %v1230_v63 = vpop.permute.xlu1 %1229 }
 0x958   : > { %v1235_v0 = vsel %vm700_vm4, %v1230_v63, 0 }
 0x959   : > { %1244 = vmatpush.bf16.msrb.mxu2 %v1235_v0 }
 0x95c   : > { %2571 = vmatmul.msk.bf16.vlgmr.msrb.gmra.mxu2 %vm627_vm3, %v1228_v1  ;;  %v3227_v1 = vld [vmem:[%s3537_s6 + $0x18] sm:$0xff] }
 0x95f   : > { %v1383_v24 = vpop.permute.xlu1 %1382 }
 0x960   : > { %1398 = vmatpush.bf16.msra.mxu3 %v1383_v24 }
 0x9bd   : > { %v1333_v3 = vpop.xlane.xlu0 %1332 }
 0x9be   : > { %v1334_v6 = vsub.f32 %v1330_v58, %v1333_v3  ;;  %v3233_v3 = vld [vmem:[%s3537_s6 + $0x10] sm:$0xff] }
 0x9c0   : > { %v1335_v7 = vmul.f32 1.442695, %v1334_v6  ;;  %v2756_v6 = vld [vmem:[%s3494_s13] ss:$0 sm:$0xff] }
 0x9c2   : > { %2802 = vpow2.f32 %v1335_v7 }
 0x9c4   : > { %v1188_v9 = vpop.f32.mrf.mxu3 }
 0x9c8   : > { %v2803_v60 = vpop.eup %2802 }
 0x9c9   : > { %v1337_v12 = vsel %vm627_vm3, %v2803_v60, 0.0 }
 0x9ca   : > { %1338 = vadd.xlane.f32.xlu0 %v1337_v12 }
 0x9cc   : > { %v1190_v14 = vpop.f32.mrf.mxu3 }
 0x9d4   : > { %v1269_v17 = vpop.f32.mrf.mxu3 }
 0x9d5   : > { %v1273_v18 = vmul.f32 0.35355338, %v1269_v17  ;;  %v3244_v17 = vld [vmem:[%s3488_s7 + $0x1] ss:$0 sm:$0xff] }
 0x9d7   : > { %v1274_v19 = vsel %vm627_vm3, %v1273_v18, -inf }
 0x9d8   : > { %1275 = vmax.xlane.f32.xlu2 %v1274_v19 }
 0x9dc   : > { %v1271_v20 = vpop.f32.mrf.mxu3 }
 0x9de   : > { %1343 = vrot.lane.b32.xlu0 %v3148_v21, %s3546_s22 }
 0x9df   : > { %v1246_v22 = vpop.f32.mrf.mxu2 }
 0x9e0   : > { %1365 = vrot.lane.b32.xlu1 %v1246_v22, %s3547_s23 }
 0x9e7   : > { %v1248_v23 = vpop.f32.mrf.mxu2 }
 0xa3d   : > { %v1339_v25 = vpop.xlane.xlu0 %1338 }
 0xa3e   : > { %2804 = vrcp.f32 %v1339_v25 }
 0xa44   : > { %v2805_v27 = vpop.eup %2804 }
 0xa45   : > { %v1341_v30 = vmul.f32 %v2805_v27, %v2803_v60 }
 0xa47   : > { %v1342_v32 = vpack.c.bf16 %v1341_v30, %v1341_v30 }
 0xa4b   : > { %v1276_v26 = vpop.xlane.xlu2 %1275 }
 0xa4c   : > { %v1277_v28 = vsub.f32 %v1273_v18, %v1276_v26 }
 0xa4e   : > { %v1278_v29 = vmul.f32 1.442695, %v1277_v28 }
 0xa50   : > { %2806 = vpow2.f32 %v1278_v29  ;;  %v1344_v4 = vpop.permute.xlu0 %1343 }
 0xa51   : > { %v1349_v31 = vsel %vm700_vm4, %v1344_v4, 0 }
 0xa52   : > { %1358 = vmatpush.bf16.msra.mxu2 %v1349_v31  ;;  %v1366_v45 = vpop.permute.xlu1 %1365 }
 0xa53   : > { %v1376_v46 = vsel %vm627_vm3, %v1188_v9, %v1366_v45 }
 0xa55   : > { %2575 = vmatmul.msk.bf16.vlgmr.msra.gmra.mxu2 %vm627_vm3, %v1342_v32 }
 0xa56   : > { %v2807_v33 = vpop.eup %2806  ;;  %1530 = vmatpush.bf16.msrb.mxu2 %v3227_v1 }
 0xa57   : > { %v1280_v34 = vsel %vm627_vm3, %v2807_v33, 0.0 }
 0xa58   : > { %1281 = vadd.xlane.f32.xlu2 %v1280_v34 }
 0xa5a   : > { %1531 = vmatpush.bf16.msrb.mxu2 %v3233_v3 }
 0xa70   : > { %1286 = vrot.lane.b32.xlu2 %v3148_v21, %s3548_s30 }
 0xa78   : > { %1380 = vrot.lane.b32.xlu2 %v3120_v2, %s3545_s24 }
 0xacb   : > { %v1282_v35 = vpop.xlane.xlu2 %1281 }
 0xacc   : > { %2808 = vrcp.f32 %v1282_v35 }
 0xad2   : > { %v2809_v36 = vpop.eup %2808 }
 0xad3   : > { %v1284_v37 = vmul.f32 %v2809_v36, %v2807_v33  ;;  %v1287_v38 = vpop.permute.xlu2 %1286 }
 0xad4   : > { %v1292_v39 = vsel %vm700_vm4, %v1287_v38, 0 }
 0xad5   : > { %v1285_v40 = vpack.c.bf16 %v1284_v37, %v1284_v37  ;;  %1301 = vmatpush.bf16.msra.mxu0 %v1292_v39 }
 0xad8   : > { %2573 = vmatmul.msk.bf16.vlgmr.msra.gmra.mxu0 %vm627_vm3, %v1285_v40  ;;  %v1360_v41 = vpop.f32.mrf.mxu2 }
 0xad9   : > { %1373 = vrot.lane.b32.xlu1 %v1360_v41, %s3549_s17  ;;  %1435 = vmatpush.bf16.msrb.mxu0 %v2712_v44 }
 0xadb   : > { %v1381_v2 = vpop.permute.xlu2 %1380 }
 0xadc   : > { %1399 = vmatpush.bf16.msra.mxu3 %v1381_v2 }
 0xae0   : > { %v1362_v42 = vpop.f32.mrf.mxu2 }
 0xb4b   : > { %v1374_v47 = vpop.permute.xlu1 %1373 }
 0xb55   : > { %v1303_v43 = vpop.f32.mrf.mxu0 }
 0xb56   : > { %1369 = vrot.lane.b32.xlu0 %v1303_v43, %s3550_s0 }
 0xb5d   : > { %v1305_v21 = vpop.f32.mrf.mxu0 }
 0xb5e   : > { %1386 = vrot.lane.b32.xlu0 %v3142_v11, %s3545_s24  ;;  %v2711_v11 = vld [vmem:[%s3491_s10] sm:$0xff] }
 0xb5f   : > { %1436 = vmatpush.bf16.msrb.mxu0 %v2711_v11 }
 0xbc8   : > { %v1370_v13 = vpop.permute.xlu0 %1369 }
 0xbc9   : > { %v1377_v48 = vsel %vm1012_vm5, %v1376_v46, %v1370_v13 }
 0xbca   : > { %v1378_v49 = vsel %vm1014_vm6, %v1377_v48, %v1374_v47 }
 0xbcb   : > { %v1379_v50 = vpack.c.bf16 %v1378_v49, %v1378_v49 }
 0xbcd   : > { %2576 = vmatmul.msk.bf16.vlgmr.msra.gmra.mxu3 %vm605_vm2, %v1379_v50 }
 0xbd0   : > { %v1387_v53 = vpop.permute.xlu0 %1386 }
 0xc50   : > { %v1401_v54 = vpop.f32.mrf.mxu3 }
 0xc51   : > { %v1402_v55 = vadd.f32 %v1401_v54, %v1387_v53 }
 0xc53   : > { %v1409_v56 = vpack.c.bf16 %v1402_v55, %v1402_v55 }
 0xc55   : > { %2585 = vmatmul.msk.bf16.vlgmr.msrb.gmra.mxu0 %vm605_vm2, %v1409_v56 }
 0xc58   : > { %v1403_v58 = vpop.f32.mrf.mxu3 }
 0xcd2   : > { %v1438_v61 = vpop.f32.mrf.mxu0 }
 0xcd3   : > { %v1439_v62 = vadd.f32 %v2755_v16, %v1438_v61 }
 0xcd5   : > { %v1442_v57 = vmax.f32 %v1439_v62, 0.0 }
 0xcd7   : > { %v1451_v63 = vpack.c.bf16 %v1442_v57, %v1442_v57 }
 0xcd9   : > { %2602 = vmatmul.msk.bf16.vlgmr.msra.gmra.mxu1 %vm1480_vm7, %v1451_v63 }
 0xcda   : > { %v1440_v0 = vpop.f32.mrf.mxu0 }
 0xd56   : > { %v1493_v7 = vpop.f32.mrf.mxu1 }
 0xd57   : > { %v1494_v9 = vadd.f32 %v2756_v6, %v1493_v7 }
 0xd59   : > { %v1504_v60 = vadd.f32 %v1494_v9, %v3002_v8 }
 0xd5b   : > { %v1505_v12 = vpack.c.bf16 %v1494_v9, %v1504_v60 }
 0xd5d   : > { %2616 = vmatmul.msk.bf16.vlgmr.msrb.gmra.mxu2 %vm605_vm2, %v1505_v12 }
 0xd5e   : > { %v1495_v14 = vpop.f32.mrf.mxu1 }
 0xde0   : > { %v1533_v18 = vpop.f32.mrf.mxu2 }
 0xde1   : > { %v1534_v19 = vadd.f32 %v3244_v17, %v1533_v18 }
 0xde3   : > { %v3247_v20 = vpack.c.bf16 %v1534_v19, %v1534_v19 }
 0xde5   : > { %1630 = vrot.lane.b32.xlu0 %v3247_v20, %s3551_s28  ;;  %1632 = vrot.lane.b32.xlu2 %v3247_v20, %s3552_s20 }
 0xde6   : > { %1540 = vrot.lane.b32.xlu1 %v3247_v20, %s3553_s1 }
 0xde8   : > { %v1535_v8 = vpop.f32.mrf.mxu2 }
 0xde9   : > { %v1536_v22 = vadd.f32 %v3244_v17, %v1535_v8 }
 0xdeb   : > { %v3256_v23 = vpack.c.bf16 %v1536_v22, %v1536_v22 }
 0xded   : > { %1575 = vrot.lane.b32.xlu0 %v3256_v23, %s3553_s1 }
 0xdf5   : > { %1726 = vrot.lane.b32.xlu0 %v3247_v20, %s3554_s2 }
 0xe3f   : > { %v1633_v24 = vpop.permute.xlu2 %1632 }
 0xe40   : > { %v1638_v25 = vsel %vm627_vm3, %v1633_v24, 0 }
 0xe41   : > { %1647 = vmatpush.bf16.xpose.msra.mxu2 %v1638_v25 }
 0xe57   : > { %v1631_v26 = vpop.permute.xlu0 %1630 }
 0xe58   : > { %v1541_v27 = vpop.permute.xlu1 %1540  ;;  %2620 = vmatmul.msk.bf16.vlgmr.msra.gmra.mxu2 %vm627_vm3, %v1631_v26 }
 0xe59   : > { %v1546_v28 = vsel %vm627_vm3, %v1541_v27, 0 }
 0xe5a   : > { %1555 = vmatpush.bf16.xpose.msrb.mxu3 %v1546_v28 }
 0xe5f   : > { %v1576_v29 = vpop.permute.xlu0 %1575 }
 0xe60   : > { %v1581_v30 = vsel %vm627_vm3, %v1576_v29, 0 }
 0xe61   : > { %2617 = vmatmul.msk.bf16.vlgmr.msrb.gmra.mxu3 %vm627_vm3, %v3247_v20  ;;  %1590 = vmatpush.bf16.xpose.msra.mxu0 %v1581_v30 }
 0xe67   : > { %v1727_v49 = vpop.permute.xlu0 %1726 }
 0xe68   : > { %2618 = vmatmul.msk.bf16.vlgmr.msra.gmra.mxu0 %vm627_vm3, %v3256_v23  ;;  %v1732_v51 = vsel %vm627_vm3, %v1727_v49, 0 }
 0xedb   : > { %v1649_v4 = vpop.f32.mrf.mxu2 }
 0xedc   : > { %v1653_v31 = vmul.f32 0.35355338, %v1649_v4 }
 0xede   : > { %v1654_v32 = vsel %vm627_vm3, %v1653_v31, -inf }
 0xedf   : > { %1655 = vmax.xlane.f32.xlu2 %v1654_v32 }
 0xee3   : > { %v1651_v33 = vpop.f32.mrf.mxu2 }
 0xee4   : > { %v1557_v34 = vpop.f32.mrf.mxu3 }
 0xee5   : > { %v1561_v35 = vmul.f32 0.35355338, %v1557_v34  ;;  %v3271_v36 = vpop.f32.mrf.mxu0 }
 0xee6   : > { %v1596_v49 = vmul.f32 0.35355338, %v3271_v36 }
 0xee7   : > { %v1562_v37 = vsel %vm627_vm3, %v1561_v35, -inf }
 0xee8   : > { %1563 = vmax.xlane.f32.xlu1 %v1562_v37 }
 0xeec   : > { %v1559_v38 = vpop.f32.mrf.mxu3 }
 0xeed   : > { %v1594_v39 = vpop.f32.mrf.mxu0 }
 0xef7   : > { %1703 = vrot.lane.b32.xlu2 %v3247_v20, %s3544_s26 }
 0xf01   : > { %1609 = vrot.lane.b32.xlu1 %v3247_v20, %s3555_s27 }
 0xf09   : > { %1820 = vrot.lane.b32.xlu1 %v3247_v20, %s3556_s29 }
 0xf11   : > { %1667 = vrot.lane.b32.xlu1 %v3256_v23, %s3552_s20 }
 0xf19   : > { %1759 = vrot.lane.b32.xlu1 %v3256_v23, %s3543_s19 }
 0xf52   : > { %v1656_v40 = vpop.xlane.xlu2 %1655 }
 0xf53   : > { %v1657_v41 = vsub.f32 %v1653_v31, %v1656_v40 }
 0xf55   : > { %v1658_v42 = vmul.f32 1.442695, %v1657_v41 }
 0xf57   : > { %2810 = vpow2.f32 %v1658_v42 }
 0xf5a   : > { %v1704_v43 = vpop.permute.xlu2 %1703 }
 0xf5b   : > { %v1709_v21 = vsel %vm700_vm4, %v1704_v43, 0  ;;  %v1564_v2 = vpop.xlane.xlu1 %1563 }
 0xf5c   : > { %v1565_v44 = vsub.f32 %v1561_v35, %v1564_v2  ;;  %1718 = vmatpush.bf16.msrb.mxu0 %v1709_v21 }
 0xf5d   : > { %v2811_v45 = vpop.eup %2810 }
 0xf5e   : > { %v1566_v46 = vmul.f32 1.442695, %v1565_v44  ;;  %v1660_v13 = vsel %vm627_vm3, %v2811_v45, 0.0 }
 0xf5f   : > { %1661 = vadd.xlane.f32.xlu2 %v1660_v13 }
 0xf60   : > { %2812 = vpow2.f32 %v1566_v46 }
 0xf66   : > { %v2813_v47 = vpop.eup %2812 }
 0xf67   : > { %v1568_v48 = vsel %vm627_vm3, %v2813_v47, 0.0 }
 0xf68   : > { %1569 = vadd.xlane.f32.xlu0 %v1568_v48 }
 0xf73   : > { %v1610_v50 = vpop.permute.xlu1 %1609 }
 0xf74   : > { %v1615_v11 = vsel %vm700_vm4, %v1610_v50, 0  ;;  %v1597_v50 = vsel %vm627_vm3, %v1596_v49, -inf }
 0xf75   : > { %1624 = vmatpush.bf16.msrb.mxu1 %v1615_v11 }
 0xf77   : > { %1818 = vrot.lane.b32.xlu2 %v3247_v20, %s3542_s18 }
 0xf79   : > { %1741 = vmatpush.bf16.xpose.msra.mxu1 %v1732_v51 }
 0xf7b   : > { %v1821_v52 = vpop.permute.xlu1 %1820 }
 0xf7c   : > { %v1826_v53 = vsel %vm627_vm3, %v1821_v52, 0  ;;  %1724 = vrot.lane.b32.xlu0 %v3247_v20, %s3543_s19 }
 0xf7d   : > { %1835 = vmatpush.bf16.xpose.msra.mxu0 %v1826_v53 }
 0xf7f   : > { %1665 = vrot.lane.b32.xlu2 %v3256_v23, %s3551_s28 }
 0xf83   : > { %v1668_v54 = vpop.permute.xlu1 %1667 }
 0xf84   : > { %v1673_v55 = vsel %vm627_vm3, %v1668_v54, 0  ;;  %1761 = vrot.lane.b32.xlu0 %v3256_v23, %s3554_s2 }
 0xf85   : > { %1682 = vmatpush.bf16.xpose.msra.mxu3 %v1673_v55 }
 0xf8b   : > { %v1760_v12 = vpop.permute.xlu1 %1759 }
 0xf8c   : > { %1855 = vrot.lane.b32.xlu0 %v3256_v23, %s3556_s29 }
 0xf94   : > { %1853 = vrot.lane.b32.xlu0 %v3256_v23, %s3542_s18 }
 0xfd2   : > { %v1662_v56 = vpop.xlane.xlu2 %1661 }
 0xfd3   : > { %2814 = vrcp.f32 %v1662_v56 }
 0xfd9   : > { %v2815_v58 = vpop.eup %2814 }
 0xfda   : > { %v1664_v59 = vmul.f32 %v2815_v58, %v2811_v45  ;;  %v1819_v15 = vpop.permute.xlu2 %1818 }
 0xfdb   : > { %v1570_v16 = vpop.xlane.xlu0 %1569 }
 0xfdc   : > { %v1702_v61 = vpack.c.bf16 %v1664_v59, %v1664_v59  ;;  %2816 = vrcp.f32 %v1570_v16 }
 0xfde   : > { %2622 = vmatmul.msk.bf16.vlgmr.msrb.gmra.mxu0 %vm627_vm3, %v1702_v61 }
 0xfe2   : > { %v2817_v62 = vpop.eup %2816  ;;  %v1666_v57 = vpop.permute.xlu2 %1665 }
 0xfe3   : > { %v1572_v63 = vmul.f32 %v2817_v62, %v2813_v47  ;;  %2621 = vmatmul.msk.bf16.vlgmr.msra.gmra.mxu3 %vm627_vm3, %v1666_v57 }
 0xfe5   : > { %v1608_v0 = vpack.c.bf16 %v1572_v63, %v1572_v63  ;;  %v3305_v6 = vadd.f32 %v1664_v59, %v1572_v63 }
 0xfe7   : > { %2619 = vmatmul.msk.bf16.vlgmr.msrb.gmra.mxu1 %vm627_vm3, %v1608_v0 }
 0xfee   : > { %v1725_v7 = vpop.permute.xlu0 %1724  ;;  %2626 = vmatmul.msk.bf16.vlgmr.msra.gmra.mxu0 %vm627_vm3, %v1819_v15 }
 0xff6   : > { %v1762_v9 = vpop.permute.xlu0 %1761 }
 0xff7   : > { %v1767_v60 = vsel %vm627_vm3, %v1762_v9, 0  ;;  %2623 = vmatmul.msk.bf16.vlgmr.msra.gmra.mxu1 %vm627_vm3, %v1725_v7 }
 0xff8   : > { %1776 = vmatpush.bf16.xpose.msrb.mxu2 %v1767_v60 }
 0xffe   : > { %v1856_v14 = vpop.permute.xlu0 %1855 }
 0xfff   : > { %v1861_v18 = vsel %vm627_vm3, %v1856_v14, 0  ;;  %2624 = vmatmul.msk.bf16.vlgmr.msrb.gmra.mxu2 %vm627_vm3, %v1760_v12 }
0x1000   : > { %1870 = vmatpush.bf16.xpose.msrb.mxu1 %v1861_v18 }
0x1006   : > { %v1854_v19 = vpop.permute.xlu0 %1853 }
0x1007   : > { %2627 = vmatmul.msk.bf16.vlgmr.msrb.gmra.mxu1 %vm627_vm3, %v1854_v19 }
0x105b   : > { %v1720_v8 = vpop.f32.mrf.mxu0 }
0x1063   : > { %v1722_v22 = vpop.f32.mrf.mxu0 }
0x1064   : > { %v3314_v23 = vpop.f32.mrf.mxu1 }
0x1066   : > { %v1684_v24 = vpop.f32.mrf.mxu3 }
0x1067   : > { %v1688_v11 = vmul.f32 0.35355338, %v1684_v24 }
0x1069   : > { %v1689_v51 = vsel %vm627_vm3, %v1688_v11, -inf }
0x106b   : > { %v1837_v25 = vpop.f32.mrf.mxu0 }
0x106c   : > { %v1628_v26 = vpop.f32.mrf.mxu1  ;;  %v1841_v27 = vmul.f32 0.35355338, %v1837_v25 }
0x106e   : > { %v1686_v28 = vpop.f32.mrf.mxu3  ;;  %v1842_v29 = vsel %vm627_vm3, %v1841_v27, -inf }
0x106f   : > { %1843 = vmax.xlane.f32.xlu1 %v1842_v29 }
0x1073   : > { %v1839_v30 = vpop.f32.mrf.mxu0 }
0x1074   : > { %v1743_v4 = vpop.f32.mrf.mxu1 }
0x1075   : > { %v1747_v31 = vmul.f32 0.35355338, %v1743_v4 }
0x1077   : > { %v1748_v32 = vsel %vm627_vm3, %v1747_v31, -inf }
0x1078   : > { %1749 = vmax.xlane.f32.xlu2 %v1748_v32 }
0x107c   : > { %v1745_v33 = vpop.f32.mrf.mxu1 }
0x1082   : > { %v1778_v34 = vpop.f32.mrf.mxu2 }
0x1083   : > { %v1782_v39 = vmul.f32 0.35355338, %v1778_v34 }
0x1084   : > { %v1872_v35 = vpop.f32.mrf.mxu1 }
0x1085   : > { %v1783_v40 = vsel %vm627_vm3, %v1782_v39, -inf  ;;  %v1876_v52 = vmul.f32 0.35355338, %v1872_v35 }
0x1087   : > { %v1877_v53 = vsel %vm627_vm3, %v1876_v52, -inf }
0x1088   : > { %1797 = vrot.lane.b32.xlu1 %v3247_v20, %s3548_s30 }
0x108a   : > { %v1780_v37 = vpop.f32.mrf.mxu2 }
0x108c   : > { %v1874_v38 = vpop.f32.mrf.mxu1 }
0x10b2   : > { %1784 = vmax.xlane.f32.xlu1 %v1783_v40 }
0x10cb   : > { %1913 = vrot.lane.b32.xlu1 %v1720_v8, %s3547_s23 }
0x10d3   : > { %1934 = vrot.lane.b32.xlu1 %v3244_v17, %s3545_s24 }
0x10e2   : > { %v1844_v41 = vpop.xlane.xlu1 %1843 }
0x10e3   : > { %v1845_v42 = vsub.f32 %v1841_v27, %v1844_v41 }
0x10e5   : > { %v1846_v43 = vmul.f32 1.442695, %v1845_v42 }
0x10e7   : > { %2818 = vpow2.f32 %v1846_v43 }
0x10eb   : > { %v1750_v21 = vpop.xlane.xlu2 %1749 }
0x10ec   : > { %v1751_v2 = vsub.f32 %v1747_v31, %v1750_v21 }
0x10ed   : > { %v2819_v44 = vpop.eup %2818 }
0x10ee   : > { %v1752_v45 = vmul.f32 1.442695, %v1751_v2  ;;  %v1848_v46 = vsel %vm627_vm3, %v2819_v44, 0.0 }
0x10ef   : > { %1849 = vadd.xlane.f32.xlu2 %v1848_v46 }
0x10f0   : > { %2820 = vpow2.f32 %v1752_v45 }
0x10f6   : > { %v2821_v13 = vpop.eup %2820 }
0x10f7   : > { %v1754_v47 = vsel %vm627_vm3, %v2821_v13, 0.0 }
0x10f8   : > { %1755 = vadd.xlane.f32.xlu0 %v1754_v47 }
0x10fa   : > { %v1798_v48 = vpop.permute.xlu1 %1797 }
0x10fb   : > { %v1803_v17 = vsel %vm700_vm4, %v1798_v48, 0 }
0x10fc   : > { %1812 = vmatpush.bf16.msrb.mxu3 %v1803_v17 }
0x1100   : > { %1598 = vmax.xlane.f32.xlu0 %v1597_v50 }
0x1107   : > { %1891 = vrot.lane.b32.xlu2 %v3247_v20, %s3546_s22 }
0x1108   : > { %1690 = vmax.xlane.f32.xlu0 %v1689_v51 }
0x1110   : > { %1878 = vmax.xlane.f32.xlu0 %v1877_v53 }
0x1125   : > { %v1785_v9 = vpop.xlane.xlu1 %1784 }
0x1126   : > { %v1786_v18 = vsub.f32 %v1782_v39, %v1785_v9 }
0x1128   : > { %v1787_v22 = vmul.f32 1.442695, %v1786_v18 }
0x113d   : > { %v1914_v51 = vpop.permute.xlu1 %1913 }
0x113e   : > { %v1924_v53 = vsel %vm627_vm3, %v3314_v23, %v1914_v51 }
0x1162   : > { %v1850_v54 = vpop.xlane.xlu2 %1849 }
0x1163   : > { %2822 = vrcp.f32 %v1850_v54 }
0x1169   : > { %v2823_v36 = vpop.eup %2822 }
0x116a   : > { %v1852_v55 = vmul.f32 %v2823_v36, %v2819_v44  ;;  %v1892_v56 = vpop.permute.xlu2 %1891 }
0x116b   : > { %v1756_v58 = vpop.xlane.xlu0 %1755  ;;  %v1897_v59 = vsel %vm700_vm4, %v1892_v56, 0 }
0x116c   : > { %v1890_v15 = vpack.c.bf16 %v1852_v55, %v1852_v55  ;;  %2824 = vrcp.f32 %v1756_v58  ;;  %1906 = vmatpush.bf16.msra.mxu2 %v1897_v59  ;;  %v3357_v59 = vld [vmem:[%s3489_s8 + $0x18] sm:$0xff] }
0x116f   : > { %2628 = vmatmul.msk.bf16.vlgmr.msra.gmra.mxu2 %vm627_vm3, %v1890_v15 }
0x1170   : > { %2029 = vmatpush.bf16.msrb.mxu2 %v3357_v59 }
0x1172   : > { %v2825_v20 = vpop.eup %2824 }
0x1173   : > { %v1758_v16 = vmul.f32 %v2825_v20, %v2821_v13  ;;  %v1599_v61 = vpop.xlane.xlu0 %1598  ;;  %v1935_v20 = vpop.permute.xlu1 %1934 }
0x1174   : > { %v1600_v62 = vsub.f32 %v1596_v49, %v1599_v61 }
0x1175   : > { %v1794_v57 = vadd.f32 %v1758_v16, %v3305_v6  ;;  %v1796_v63 = vpack.c.bf16 %v1758_v16, %v1758_v16 }
0x1176   : > { %v1601_v0 = vmul.f32 1.442695, %v1600_v62 }
0x1177   : > { %v1888_v7 = vadd.f32 %v1852_v55, %v1794_v57  ;;  %2625 = vmatmul.msk.bf16.vlgmr.msrb.gmra.mxu3 %vm627_vm3, %v1796_v63 }
0x1178   : > { %2826 = vpow2.f32 %v1601_v0  ;;  %v3365_v0 = vld [vmem:[%s3489_s8 + $0x10] sm:$0xff] }
0x1179   : > { %v1953_v17 = vmul.f32 0.25, %v1888_v7  ;;  %2030 = vmatpush.bf16.msrb.mxu2 %v3365_v0 }
0x117b   : > { %v1691_v60 = vpop.xlane.xlu0 %1690  ;;  %v1955_v50 = vpack.c.bf16 %v1953_v17, %v1953_v17 }
0x117c   : > { %v1692_v12 = vsub.f32 %v1688_v11, %v1691_v60 }
0x117e   : > { %v2827_v14 = vpop.eup %2826  ;;  %v1693_v19 = vmul.f32 1.442695, %v1692_v12 }
0x117f   : > { %v1603_v8 = vsel %vm627_vm3, %v2827_v14, 0.0 }
0x1180   : > { %2828 = vpow2.f32 %v1693_v19  ;;  %1604 = vadd.xlane.f32.xlu2 %v1603_v8 }
0x1181   : > { %2830 = vpow2.f32 %v1787_v22 }
0x1183   : > { %v1879_v27 = vpop.xlane.xlu0 %1878 }
0x1184   : > { %v1880_v28 = vsub.f32 %v1876_v52, %v1879_v27 }
0x1186   : > { %v2829_v24 = vpop.eup %2828  ;;  %v1881_v29 = vmul.f32 1.442695, %v1880_v28 }
0x1187   : > { %v1695_v6 = vsel %vm627_vm3, %v2829_v24, 0.0  ;;  %v2831_v25 = vpop.eup %2830 }
0x1188   : > { %1696 = vadd.xlane.f32.xlu0 %v1695_v6  ;;  %v1789_v26 = vsel %vm627_vm3, %v2831_v25, 0.0  ;;  %2832 = vpow2.f32 %v1881_v29 }
0x118e   : > { %v2833_v30 = vpop.eup %2832 }
0x118f   : > { %v1883_v4 = vsel %vm627_vm3, %v2833_v30, 0.0 }
0x1190   : > { %1790 = vadd.xlane.f32.xlu0 %v1789_v26 }
0x11a4   : > { %1930 = vrot.lane.b32.xlu0 %v3227_v1, %s3545_s24 }
0x11ce   : > { %1884 = vadd.xlane.f32.xlu0 %v1883_v4 }
0x11f2   : > { %v1908_v31 = vpop.f32.mrf.mxu2 }
0x11f3   : > { %1921 = vrot.lane.b32.xlu0 %v1908_v31, %s3549_s17  ;;  %v1605_v38 = vpop.xlane.xlu2 %1604 }
0x11fa   : > { %v1814_v32 = vpop.f32.mrf.mxu3  ;;  %v1910_v33 = vpop.f32.mrf.mxu2 }
0x11fb   : > { %1917 = vrot.lane.b32.xlu2 %v1814_v32, %s3550_s0  ;;  %1928 = vrot.lane.b32.xlu0 %v3233_v3, %s3545_s24  ;;  %v1697_v1 = vpop.xlane.xlu0 %1696 }
0x11fc   : > { %2834 = vrcp.f32 %v1697_v1 }
0x11fd   : > { %2836 = vrcp.f32 %v1605_v38 }
0x1202   : > { %v1816_v34 = vpop.f32.mrf.mxu3  ;;  %v2835_v39 = vpop.eup %2834 }
0x1203   : > { %v1791_v35 = vpop.xlane.xlu0 %1790  ;;  %v2837_v40 = vpop.eup %2836  ;;  %v1699_v43 = vmul.f32 %v2835_v39, %v2829_v24 }
0x1204   : > { %2838 = vrcp.f32 %v1791_v35  ;;  %v1607_v21 = vmul.f32 %v2837_v40, %v2827_v14  ;;  %v3375_v14 = vld [vmem:[%s3490_s9 + $0x1] ss:$0 sm:$0xff] }
0x1206   : > { %v1701_v44 = vadd.f32 %v1699_v43, %v1607_v21 }
0x120a   : > { %v2839_v42 = vpop.eup %2838 }
0x120b   : > { %v1793_v2 = vmul.f32 %v2839_v42, %v2831_v25 }
0x120d   : > { %v1795_v46 = vadd.f32 %v1793_v2, %v1701_v44 }
0x1216   : > { %v1931_v37 = vpop.permute.xlu0 %1930 }
0x1217   : > { %1946 = vmatpush.bf16.msra.mxu3 %v1931_v37 }
0x1241   : > { %v1885_v41 = vpop.xlane.xlu0 %1884 }
0x1242   : > { %2840 = vrcp.f32 %v1885_v41 }
0x1248   : > { %v2841_v45 = vpop.eup %2840 }
0x1249   : > { %v1887_v3 = vmul.f32 %v2841_v45, %v2833_v30 }
0x124b   : > { %v1889_v13 = vadd.f32 %v1887_v3, %v1795_v46 }
0x124d   : > { %v1954_v47 = vmul.f32 0.25, %v1889_v13 }
0x124f   : > { %v1956_v48 = vpack.c.bf16 %v1954_v47, %v1954_v47 }
0x1251   : > { %v1961_v49 = vsel %vm627_vm3, %v1956_v48, 0 }
0x1252   : > { %1970 = vmatpush.bf16.xpose.msrb.mxu0 %v1961_v49 }
0x1255   : > { %v1918_v52 = vpop.permute.xlu2 %1917 }
0x1256   : > { %v1925_v54 = vsel %vm1012_vm5, %v1924_v53, %v1918_v52 }
0x1259   : > { %2630 = vmatmul.msk.bf16.vlgmr.msrb.gmra.mxu0 %vm627_vm3, %v1955_v50 }
0x1265   : > { %v1922_v11 = vpop.permute.xlu0 %1921 }
0x1266   : > { %v1926_v36 = vsel %vm1014_vm6, %v1925_v54, %v1922_v11 }
0x1267   : > { %v1927_v56 = vpack.c.bf16 %v1926_v36, %v1926_v36 }
0x126d   : > { %v1929_v55 = vpop.permute.xlu0 %1928 }
0x126e   : > { %1947 = vmatpush.bf16.msra.mxu3 %v1929_v55 }
0x1271   : > { %2629 = vmatmul.msk.bf16.vlgmr.msra.gmra.mxu3 %vm605_vm2, %v1927_v56 }
0x12d6   : > { %v1972_v58 = vpop.f32.mrf.mxu0 }
0x12d7   : > { %v1976_v57 = vpack.c.bf16 %v1972_v58, %v1972_v58 }
0x12de   : > { %v1974_v15 = vpop.f32.mrf.mxu0 }
0x12f4   : > { %v1949_v23 = vpop.f32.mrf.mxu3 }
0x12f5   : > { %v1950_v16 = vadd.f32 %v1949_v23, %v1935_v20 }
0x12f7   : > { %v1977_v61 = vpack.c.bf16 %v1950_v16, %v1950_v16 }
0x12f9   : > { %v1982_v62 = vsel %vm700_vm4, %v1977_v61, 0 }
0x12fa   : > { %1991 = vmatpush.bf16.msra.mxu1 %v1982_v62 }
0x12fc   : > { %v1951_v63 = vpop.f32.mrf.mxu3 }
0x12fd   : > { %2631 = vmatmul.msk.bf16.vlgmr.msra.gmra.mxu1 %vm627_vm3, %v1976_v57 }
0x137a   : > { %v1993_v7 = vpop.f32.mrf.mxu1 }
0x137b   : > { %v2004_v9 = vpack.c.bf16 %v3127_v5, %v1993_v7 }
0x137d   : > { %2645 = vmatmul.msk.bf16.vlgmr.msrb.gmra.mxu2 %vm605_vm2, %v2004_v9 }
0x1382   : > { %v1995_v60 = vpop.f32.mrf.mxu1 }
0x138d   : > { %2646 = vmatmul.msk.bf16.gmra.mxu2 %vm605_vm2, %v3135_v10 }
0x1400   : > { %v2032_v12 = vpop.f32.mrf.mxu2 }
0x1401   : > { %v2033_v5 = vadd.f32 %v3375_v14, %v2032_v12 }
0x1403   : > { %v2041_v24 = vpack.c.bf16 %v2033_v5, %v2033_v5 }
0x1408   : > { %v2034_v18 = vpop.f32.mrf.mxu2 }
0x1409   : > { %v2035_v19 = vadd.f32 %v3375_v14, %v2034_v18 }
0x140b   : > { %v2042_v8 = vpack.c.bf16 %v2035_v19, %v2035_v19 }
0x140d   : > { %2104 = vrot.lane.b32.xlu1 %v2042_v8, %s3552_s20  ;;  %2044 = vrot.lane.b32.xlu2 %v2042_v8, %s3553_s1 }
0x1410   : > { %v2037_v22 = vpop.f32.mrf.mxu2 }
0x1411   : > { %v2038_v10 = vadd.f32 %v3375_v14, %v2037_v22 }
0x1413   : > { %v3383_v25 = vpack.c.bf16 %v2038_v10, %v2038_v10 }
0x1415   : > { %2102 = vrot.lane.b32.xlu1 %v2041_v24, %s3551_s28 }
0x1418   : > { %v2039_v6 = vpop.f32.mrf.mxu2 }
0x141d   : > { %2080 = vrot.lane.b32.xlu1 %v3383_v25, %s3555_s27 }
0x1425   : > { %2218 = vrot.lane.b32.xlu1 %v2042_v8, %s3556_s29 }
0x142d   : > { %2216 = vrot.lane.b32.xlu1 %v2041_v24, %s3542_s18 }
0x1435   : > { %2159 = vrot.lane.b32.xlu1 %v2041_v24, %s3543_s19  ;;  %s550_s19 = scalar_lea.vmem %s3497_s16, %s2977_s25 }
0x1467   : > { %v2045_v26 = vpop.permute.xlu2 %2044 }
0x1468   : > { %v2050_v27 = vsel %vm627_vm3, %v2045_v26, 0 }
0x1469   : > { %2059 = vmatpush.bf16.xpose.msrb.mxu3 %v2050_v27 }
0x1470   : > { %2647 = vmatmul.msk.bf16.vlgmr.msrb.gmra.mxu3 %vm627_vm3, %v2041_v24 }
0x147f   : > { %v2105_v28 = vpop.permute.xlu1 %2104 }
0x1480   : > { %v2110_v29 = vsel %vm627_vm3, %v2105_v28, 0 }
0x1481   : > { %2119 = vmatpush.bf16.xpose.msrb.mxu1 %v2110_v29 }
0x1487   : > { %v2103_v30 = vpop.permute.xlu1 %2102 }
0x1488   : > { %2649 = vmatmul.msk.bf16.vlgmr.msrb.gmra.mxu1 %vm627_vm3, %v2103_v30 }
0x148f   : > { %v2081_v4 = vpop.permute.xlu1 %2080 }
0x1490   : > { %v2086_v31 = vsel %vm700_vm4, %v2081_v4, 0 }
0x1491   : > { %2095 = vmatpush.bf16.msra.mxu0 %v2086_v31 }
0x1497   : > { %v2219_v32 = vpop.permute.xlu1 %2218 }
0x1498   : > { %v2224_v33 = vsel %vm627_vm3, %v2219_v32, 0 }
0x1499   : > { %2233 = vmatpush.bf16.xpose.msra.mxu2 %v2224_v33 }
0x149f   : > { %v2217_v34 = vpop.permute.xlu1 %2216 }
0x14a0   : > { %2653 = vmatmul.msk.bf16.vlgmr.msra.gmra.mxu2 %vm627_vm3, %v2217_v34 }
0x14a7   : > { %v2160_v56 = vpop.permute.xlu1 %2159 }
0x14f3   : > { %v2061_v1 = vpop.f32.mrf.mxu3 }
0x14f4   : > { %v2065_v35 = vmul.f32 0.35355338, %v2061_v1 }
0x14f6   : > { %v2066_v37 = vsel %vm627_vm3, %v2065_v35, -inf }
0x14f7   : > { %2067 = vmax.xlane.f32.xlu0 %v2066_v37 }
0x14fb   : > { %v2063_v38 = vpop.f32.mrf.mxu3 }
0x1505   : > { %v2121_v39 = vpop.f32.mrf.mxu1 }
0x1506   : > { %v2125_v13 = vmul.f32 0.35355338, %v2121_v39 }
0x1508   : > { %v2126_v49 = vsel %vm627_vm3, %v2125_v13, -inf }
0x150b   : > { %2161 = vrot.lane.b32.xlu0 %v2042_v8, %s3554_s2 }
0x150d   : > { %v2123_v40 = vpop.f32.mrf.mxu1 }
0x1523   : > { %v2235_v41 = vpop.f32.mrf.mxu2 }
0x1524   : > { %v2239_v42 = vmul.f32 0.35355338, %v2235_v41 }
0x1526   : > { %v2240_v43 = vsel %vm627_vm3, %v2239_v42, -inf }
0x1527   : > { %2241 = vmax.xlane.f32.xlu1 %v2240_v43 }
0x152b   : > { %v2237_v21 = vpop.f32.mrf.mxu2 }
0x156a   : > { %v2068_v2 = vpop.xlane.xlu0 %2067 }
0x156b   : > { %v2069_v44 = vsub.f32 %v2065_v35, %v2068_v2 }
0x156d   : > { %v2070_v45 = vmul.f32 1.442695, %v2069_v44 }
0x156f   : > { %2842 = vpow2.f32 %v2070_v45 }
0x1575   : > { %v2843_v3 = vpop.eup %2842 }
0x1576   : > { %v2072_v46 = vsel %vm627_vm3, %v2843_v3, 0.0 }
0x1577   : > { %2073 = vadd.xlane.f32.xlu2 %v2072_v46 }
0x157d   : > { %v2162_v47 = vpop.permute.xlu0 %2161 }
0x157e   : > { %v2167_v48 = vsel %vm627_vm3, %v2162_v47, 0  ;;  %v2726_v47 = vld [vmem:[%s3493_s12 + $0x38] sm:$0xff] }
0x157f   : > { %2176 = vmatpush.bf16.xpose.msrb.mxu0 %v2167_v48  ;;  %2127 = vmax.xlane.f32.xlu2 %v2126_v49  ;;  %v2725_v48 = vld [vmem:[%s3493_s12 + $0x30] sm:$0xff] }
0x1580   : > { %2400 = vmatpush.bf16.msrb.mxu2 %v2726_v47 }
0x1584   : > { %2401 = vmatpush.bf16.msrb.mxu2 %v2725_v48 }
0x159a   : > { %v2242_v7 = vpop.xlane.xlu1 %2241 }
0x159b   : > { %v2243_v9 = vsub.f32 %v2239_v42, %v2242_v7  ;;  %v2761_v7 = vld [vmem:[%s3496_s15] ss:$0 sm:$0xff] }
0x15ea   : > { %v2074_v17 = vpop.xlane.xlu2 %2073 }
0x15eb   : > { %2844 = vrcp.f32 %v2074_v17 }
0x15f1   : > { %v2845_v50 = vpop.eup %2844 }
0x15f2   : > { %v2076_v11 = vmul.f32 %v2845_v50, %v2843_v3  ;;  %v2128_v51 = vpop.xlane.xlu2 %2127 }
0x15f3   : > { %v2129_v52 = vsub.f32 %v2125_v13, %v2128_v51  ;;  %v2721_v13 = vld [vmem:[%s3491_s10 + $0x10] sm:$0xff] }
0x15f4   : > { %v2077_v53 = vpack.c.bf16 %v2076_v11, %v2076_v11 }
0x15f5   : > { %v2130_v54 = vmul.f32 1.442695, %v2129_v52  ;;  %v2724_v52 = vld [vmem:[%s3493_s12 + $0x28] sm:$0xff] }
0x15f6   : > { %2648 = vmatmul.msk.bf16.vlgmr.msra.gmra.mxu0 %vm627_vm3, %v2077_v53  ;;  %2402 = vmatpush.bf16.msrb.mxu2 %v2724_v52  ;;  %v2723_v53 = vld [vmem:[%s3493_s12 + $0x20] sm:$0xff] }
0x15f7   : > { %2846 = vpow2.f32 %v2130_v54  ;;  %v2728_v54 = vld [vmem:[%s3495_s14 + $0x8] sm:$0xff] }
0x15fa   : > { %2403 = vmatpush.bf16.msrb.mxu2 %v2723_v53 }
0x15fd   : > { %v2847_v36 = vpop.eup %2846 }
0x15fe   : > { %v2132_v55 = vsel %vm627_vm3, %v2847_v36, 0.0 }
0x15ff   : > { %2133 = vadd.xlane.f32.xlu0 %v2132_v55 }
0x1606   : > { %2651 = vmatmul.msk.bf16.vlgmr.msrb.gmra.mxu0 %vm627_vm3, %v2160_v56 }
0x1613   : > { %2195 = vrot.lane.b32.xlu0 %v3383_v25, %s3548_s30 }
0x161b   : > { %2291 = vrot.lane.b32.xlu0 %v3357_v59, %s3545_s24  ;;  %v2244_v59 = vmul.f32 1.442695, %v2243_v9 }
0x161d   : > { %2848 = vpow2.f32 %v2244_v59 }
0x1623   : > { %v2849_v60 = vpop.eup %2848 }
0x1624   : > { %v2246_v12 = vsel %vm627_vm3, %v2849_v60, 0.0 }
0x1672   : > { %v2134_v20 = vpop.xlane.xlu0 %2133 }
0x1673   : > { %v3410_v58 = vpop.f32.mrf.mxu0  ;;  %2850 = vrcp.f32 %v2134_v20 }
0x1679   : > { %v2851_v5 = vpop.eup %2850 }
0x167a   : > { %v2136_v22 = vmul.f32 %v2851_v5, %v2847_v36  ;;  %v2759_v36 = vld [vmem:[%s3492_s11 + $0x1] ss:$0 sm:$0xff] }
0x167b   : > { %v2099_v15 = vpop.f32.mrf.mxu0 }
0x167c   : > { %v2137_v26 = vpack.c.bf16 %v2136_v22, %v2136_v22 }
0x1683   : > { %v2178_v23 = vpop.f32.mrf.mxu0 }
0x1684   : > { %v2182_v16 = vmul.f32 0.35355338, %v2178_v23  ;;  %v2727_v23 = vld [vmem:[%s3495_s14] sm:$0xff] }
0x1685   : > { %v2196_v61 = vpop.permute.xlu0 %2195 }
0x1686   : > { %v2201_v62 = vsel %vm700_vm4, %v2196_v61, 0  ;;  %v2183_v57 = vsel %vm627_vm3, %v2182_v16, -inf }
0x1687   : > { %2184 = vmax.xlane.f32.xlu2 %v2183_v57  ;;  %2210 = vmatpush.bf16.msra.mxu1 %v2201_v62 }
0x168b   : > { %v2180_v63 = vpop.f32.mrf.mxu0 }
0x168d   : > { %v2292_v43 = vpop.permute.xlu0 %2291 }
0x168e   : > { %2307 = vmatpush.bf16.msra.mxu0 %v2292_v43 }
0x169f   : > { %2138 = vrot.lane.b32.xlu2 %v3383_v25, %s3544_s26 }
0x16c8   : > { %2247 = vadd.xlane.f32.xlu2 %v2246_v12 }
0x16fa   : > { %v2185_v18 = vpop.xlane.xlu2 %2184 }
0x16fb   : > { %v2186_v19 = vsub.f32 %v2182_v16, %v2185_v18  ;;  %v2760_v16 = vld [vmem:[%s3494_s13 + $0x1] ss:$0 sm:$0xff] }
0x16fd   : > { %v2187_v8 = vmul.f32 1.442695, %v2186_v19 }
0x16ff   : > { %2852 = vpow2.f32 %v2187_v8 }
0x1702   : > { %v2139_v24 = vpop.permute.xlu2 %2138 }
0x1703   : > { %v2144_v10 = vsel %vm700_vm4, %v2139_v24, 0 }
0x1704   : > { %2153 = vmatpush.bf16.msra.mxu3 %v2144_v10 }
0x1705   : > { %v2853_v6 = vpop.eup %2852 }
0x1706   : > { %v2189_v27 = vsel %vm627_vm3, %v2853_v6, 0.0 }
0x1707   : > { %2190 = vadd.xlane.f32.xlu1 %v2189_v27  ;;  %2650 = vmatmul.msk.bf16.vlgmr.msra.gmra.mxu3 %vm627_vm3, %v2137_v26 }
0x1720   : > { %2252 = vrot.lane.b32.xlu1 %v3383_v25, %s3546_s22 }
0x173b   : > { %v2248_v31 = vpop.xlane.xlu2 %2247 }
0x177a   : > { %v2191_v28 = vpop.xlane.xlu1 %2190 }
0x177b   : > { %2854 = vrcp.f32 %v2191_v28 }
0x177c   : > { %2856 = vrcp.f32 %v2248_v31 }
0x1781   : > { %v2855_v29 = vpop.eup %2854 }
0x1782   : > { %v2193_v30 = vmul.f32 %v2855_v29, %v2853_v6  ;;  %v2857_v33 = vpop.eup %2856 }
0x1783   : > { %v2250_v34 = vmul.f32 %v2857_v33, %v2849_v60 }
0x1784   : > { %v2194_v4 = vpack.c.bf16 %v2193_v30, %v2193_v30 }
0x1785   : > { %v2251_v25 = vpack.c.bf16 %v2250_v34, %v2250_v34 }
0x1786   : > { %2652 = vmatmul.msk.bf16.vlgmr.msra.gmra.mxu1 %vm627_vm3, %v2194_v4 }
0x178a   : > { %v2155_v32 = vpop.f32.mrf.mxu3 }
0x178b   : > { %2274 = vrot.lane.b32.xlu1 %v2155_v32, %s3547_s23 }
0x1792   : > { %v2253_v1 = vpop.permute.xlu1 %2252  ;;  %v2157_v35 = vpop.f32.mrf.mxu3 }
0x1793   : > { %v2258_v37 = vsel %vm700_vm4, %v2253_v1, 0  ;;  %2289 = vrot.lane.b32.xlu1 %v3365_v0, %s3545_s24  ;;  %v2722_v0 = vld [vmem:[%s3491_s10 + $0x18] sm:$0xff] }
0x1794   : > { %2267 = vmatpush.bf16.msrb.mxu3 %v2258_v37  ;;  %2346 = vmatpush.bf16.msrb.mxu1 %v2722_v0 }
0x1797   : > { %2654 = vmatmul.msk.bf16.vlgmr.msrb.gmra.mxu3 %vm627_vm3, %v2251_v25 }
0x1798   : > { %2347 = vmatpush.bf16.msrb.mxu1 %v2721_v13  ;;  %2439 = vmatpush.bf16.msra.mxu3 %v2728_v54 }
0x179c   : > { %2440 = vmatpush.bf16.msra.mxu3 %v2727_v23 }
0x17fd   : > { %v2275_v42 = vpop.permute.xlu1 %2274 }
0x17fe   : > { %v2285_v44 = vsel %vm627_vm3, %v3410_v58, %v2275_v42 }
0x1803   : > { %v2212_v38 = vpop.f32.mrf.mxu1 }
0x1804   : > { %2278 = vrot.lane.b32.xlu2 %v2212_v38, %s3550_s0 }
0x1805   : > { %v2290_v21 = vpop.permute.xlu1 %2289 }
0x1806   : > { %2308 = vmatpush.bf16.msra.mxu0 %v2290_v21 }
0x180b   : > { %v2214_v39 = vpop.f32.mrf.mxu1 }
0x181a   : > { %v2269_v40 = vpop.f32.mrf.mxu3 }
0x181b   : > { %2282 = vrot.lane.b32.xlu0 %v2269_v40, %s3549_s17 }
0x1822   : > { %v2271_v41 = vpop.f32.mrf.mxu3 }
0x1823   : > { %2295 = vrot.lane.b32.xlu0 %v3375_v14, %s3545_s24 }
0x185e   : > { %v2279_v2 = vpop.permute.xlu2 %2278 }
0x185f   : > { %v2286_v45 = vsel %vm1012_vm5, %v2285_v44, %v2279_v2 }
0x188d   : > { %v2283_v3 = vpop.permute.xlu0 %2282 }
0x188e   : > { %v2287_v46 = vsel %vm1014_vm6, %v2286_v45, %v2283_v3 }
0x188f   : > { %v2288_v14 = vpack.c.bf16 %v2287_v46, %v2287_v46 }
0x1891   : > { %2655 = vmatmul.msk.bf16.vlgmr.msra.gmra.mxu0 %vm605_vm2, %v2288_v14 }
0x1895   : > { %v2296_v49 = vpop.permute.xlu0 %2295 }
0x190e   : > { %v2310_v17 = vpop.f32.mrf.mxu0 }
0x190f   : > { %v2311_v50 = vadd.f32 %v2310_v17, %v2296_v49 }
0x1911   : > { %v2319_v11 = vpack.c.bf16 %v2311_v50, %v2311_v50 }
0x1913   : > { %2669 = vmatmul.msk.bf16.vlgmr.msrb.gmra.mxu1 %vm605_vm2, %v2319_v11 }
0x1916   : > { %v2312_v51 = vpop.f32.mrf.mxu0 }
0x1990   : > { %v2349_v55 = vpop.f32.mrf.mxu1 }
0x1991   : > { %v2350_v56 = vadd.f32 %v2759_v36, %v2349_v55 }
0x1993   : > { %v2353_v58 = vmax.f32 %v2350_v56, 0.0 }
0x1995   : > { %v2363_v15 = vpack.c.bf16 %v2353_v58, %v2353_v58 }
0x1997   : > { %2695 = vmatmul.msk.bf16.vlgmr.msrb.gmra.mxu2 %vm1480_vm7, %v2363_v15 }
0x1998   : > { %v2351_v20 = vpop.f32.mrf.mxu1 }
0x1a1a   : > { %v2405_v61 = vpop.f32.mrf.mxu2 }
0x1a1b   : > { %v2406_v62 = vadd.f32 %v2760_v16, %v2405_v61 }
0x1a1d   : > { %v2413_v57 = vpack.c.bf16 %v2406_v62, %v2406_v62 }
0x1a1f   : > { %2704 = vmatmul.msk.bf16.vlgmr.msra.gmra.mxu3 %vm605_vm2, %v2413_v57 }
0x1a22   : > { %v2407_v63 = vpop.f32.mrf.mxu2 }
0x1aa2   : > { %v2442_v9 = vpop.f32.mrf.mxu3 }
0x1aa3   : > { %v2443_v59 = vadd.f32 %v2761_v7, %v2442_v9 }
0x1aa5   : > { %2446 = vst.msk [vmem:[%s550_s19] sm:$0xff] %vm559_vm1, %v2443_v59 }
0x1aaa   : > { %v2444_v60 = vpop.f32.mrf.mxu3 }
0x1aab PF: > { %s26_s21 = sadd.s32 1, %s2864_s21  }
0x1aac   : > { %p23_p4 = scmp.ge.s32.totalorder %s26_s21, 4  }
0x1aae   :  { %25 = sbr.rel (!%p23_p4) target bundleno = 8 (0x8), region = 128 }

</bundles_post_ra>
